<compile_context>
chip_gen: v6e
topology: v6e:2x2x1
jax: 0.10.0
libtpu: 0.0.40
codegen_flags: <defaults>
</compile_context>

<pallas_src>
import functools

import numpy as np
import jax
import jax.numpy as jnp
from jax import lax
from jax.experimental import pallas as pl
from jax.experimental.pallas import tpu as pltpu

F32 = jnp.float32
BF16 = jnp.bfloat16


def _gelu(x):
    # upd_GELU: sigmoid(1.702 * x) * x
    return x / (1.0 + jnp.exp(-1.702 * x))


def _softplus(z):
    # Softplus(beta=1, threshold=1000), numerically stable, f32.
    sp = jnp.log(1.0 + jnp.exp(-jnp.abs(z))) + jnp.maximum(z, 0.0)
    return jnp.where(z > 1000.0, z, sp)


def _mm(a_f32, w_bf16):
    # bf16 MXU operands, f32 accumulation.
    return jnp.dot(a_f32.astype(BF16), w_bf16, preferred_element_type=F32)


def _conv_bn_pool(h, w, s, b, *, K, dilation, pad, pool):
    """GELU -> Conv1d(stride 1, no bias) -> eval BatchNorm -> MaxPool, VMEM-resident.

    h: (L_in, Cin) f32; w: (K*Cin, Cout) bf16 in im2col layout; s/b: (1, Cout) f32.
    """
    L_in, Cin = h.shape
    Cout = w.shape[1]
    L_conv = L_in + 2 * pad - dilation * (K - 1)
    L_pool = L_conv // pool
    L_use = L_pool * pool          # MaxPool1d(pool) drops the trailing partial window
    hg = _gelu(h)                  # GELU before conv (conv zero-pads the GELU'd signal)
    if pad > 0:
        z = jnp.zeros((pad, Cin), F32)
        hg = jnp.concatenate([z, hg, z], axis=0)
    if K > 1:                      # im2col: one full-depth matmul instead of K shallow ones
        cols = jnp.concatenate(
            [hg[k * dilation:k * dilation + L_use, :] for k in range(K)], axis=1)
    else:
        cols = hg[:L_use, :]
    y = _mm(cols, w) * s + b
    if pool > 1:
        y = jnp.max(y.reshape(L_pool, pool, Cout), axis=1)
    return y


def _fused_kernel(x1_ref, w1_ref, s1_ref, b1_ref,
                  w2_ref, s2_ref, b2_ref,
                  w3_ref, s3_ref, b3_ref,
                  dw1_ref, ds1_ref, db1_ref,
                  dw2_ref, ds2_ref, db2_ref,
                  w4_ref, s4_ref, b4_ref,
                  lw_ref, lb_ref, o_ref, *, convdc, pool1):
    # ---- conv_block_1: GELU -> Conv1d(Cin->64, k=15, p=7) -> BN -> MaxPool(8)
    # x1_ref[0]: (pool1*L1, K1*Cin) im2col slab built HBM-side, intra-pool-position-major rows.
    # One big full-depth matmul; BN is applied first (as in torch) and MaxPool(8) is a
    # jnp.maximum chain over pool1 sublane-aligned static row slices (L1 is a multiple of 8).
    y1 = _mm(_gelu(x1_ref[0].astype(F32)), w1_ref[...]) * s1_ref[...] + b1_ref[...]
    L1 = y1.shape[0] // pool1
    h = y1[0:L1]
    for j in range(1, pool1):
        h = jnp.maximum(h, y1[j * L1:(j + 1) * L1])

    # ---- conv_block_2 / conv_block_3 (GELU -> conv -> BN -> MaxPool(4))
    h = _conv_bn_pool(h, w2_ref[...], s2_ref[...], b2_ref[...],
                      K=5, dilation=1, pad=3, pool=4)
    h = _conv_bn_pool(h, w3_ref[...], s3_ref[...], b3_ref[...],
                      K=5, dilation=1, pad=3, pool=4)

    # ---- dilated residual tower, residual sum folded in-kernel
    y = None
    for i in range(convdc):
        d = 2 ** i
        t = _conv_bn_pool(h, dw1_ref[i], ds1_ref[i], db1_ref[i],
                          K=3, dilation=d, pad=d, pool=1)
        t = _conv_bn_pool(t, dw2_ref[i], ds2_ref[i], db2_ref[i],
                          K=1, dilation=1, pad=0, pool=1)
        y = t if y is None else y + t

    # ---- conv_block_4: GELU -> 1x1 Conv -> BN
    r = _mm(_gelu(y), w4_ref[...]) * s4_ref[...] + b4_ref[...]

    # ---- conv_block_5: GELU -> Linear(64, T) -> Softplus(beta=1, threshold=1000)
    z = _mm(_gelu(r), lw_ref[...]) + lb_ref[...]
    o_ref[0] = _softplus(z).astype(o_ref.dtype)


def basenji_forward(x, p, convdc=6):
    """x: (B, L, n_channel) channels-last (== torch (B, n_channel, L))."""
    B, L, Cin = x.shape
    K1, pad1, pool1 = 15, 7, 8
    T = p["lin_w"].shape[1]

    # Static length bookkeeping (stride-1 convs, MaxPool(k) with default stride=k).
    L1c = L + 2 * pad1 - (K1 - 1)
    L1 = L1c // pool1
    L1u = L1 * pool1
    L2 = (L1 + 2 * 3 - (5 - 1)) // 4
    L3 = (L2 + 2 * 3 - (5 - 1)) // 4

    # HBM-side im2col for conv1, laid out (B, pool1*L1, K1*Cin) with intra-pool-position-major
    # rows: cheap XLA gather, gives the kernel a single aligned full-depth MXU matmul and a
    # reshape-free, sublane-aligned max-pool.
    xp = jnp.pad(x, ((0, 0), (pad1, pad1), (0, 0)))          # gelu(0)==0 in-kernel
    cols = jnp.stack([xp[:, k:k + L1u, :] for k in range(K1)], axis=2)   # (B, L1u, K1, Cin)
    x1 = (cols.reshape(B, L1, pool1, K1 * Cin)
              .transpose(0, 2, 1, 3)                                      # (B, pool1, L1, K*Cin)
              .reshape(B, pool1 * L1, K1 * Cin))                          # row = j*L1 + l1

    # Pack weights once: im2col-flattened, bf16 for the MXU; BN scale/bias stay f32.
    def wflat(w):            # (K, Cin, Cout) -> (K*Cin, Cout)
        return w.reshape(-1, w.shape[-1]).astype(BF16)

    def row(v):
        return v.reshape(1, -1).astype(F32)

    w1, w2, w3, w4 = (wflat(p[k]) for k in ("conv1_w", "conv2_w", "conv3_w", "conv4_w"))
    lw = p["lin_w"].astype(BF16)
    dw1 = jnp.stack([wflat(w) for w in p["dil_w1"]])          # (convdc, 3*72, 32)
    dw2 = jnp.stack([wflat(w) for w in p["dil_w2"]])          # (convdc, 32, 72)
    s1, b1 = row(p["bn1_s"]), row(p["bn1_b"])
    s2, b2 = row(p["bn2_s"]), row(p["bn2_b"])
    s3, b3 = row(p["bn3_s"]), row(p["bn3_b"])
    s4, b4 = row(p["bn4_s"]), row(p["bn4_b"])
    ds1 = jnp.stack([row(v) for v in p["dil_bn1_s"]])         # (convdc, 1, 32)
    db1 = jnp.stack([row(v) for v in p["dil_bn1_b"]])
    ds2 = jnp.stack([row(v) for v in p["dil_bn2_s"]])         # (convdc, 1, 72)
    db2 = jnp.stack([row(v) for v in p["dil_bn2_b"]])
    lb = row(p["lin_b"])

    inputs = (x1, w1, s1, b1, w2, s2, b2, w3, s3, b3,
              dw1, ds1, db1, dw2, ds2, db2, w4, s4, b4, lw, lb)

    def const_spec(a):       # whole array resident; constant block index => DMA'd once
        return pl.BlockSpec(a.shape, lambda i, _n=a.ndim: (0,) * _n)

    in_specs = [pl.BlockSpec((1, pool1 * L1, K1 * Cin), lambda i: (i, 0, 0))]
    in_specs += [const_spec(a) for a in inputs[1:]]

    return pl.pallas_call(
        functools.partial(_fused_kernel, convdc=convdc, pool1=pool1),
        out_shape=jax.ShapeDtypeStruct((B, L3, T), x.dtype),
        grid=(B,),
        in_specs=in_specs,
        out_specs=pl.BlockSpec((1, L3, T), lambda i: (i, 0, 0)),
        compiler_params=pltpu.CompilerParams(
            dimension_semantics=("parallel",)),   # one batch element per TensorCore
    )(*inputs)


# ---------------------------------------------------------------------------
# Pure-JAX reference (independent conv / pool ops) for correctness checking
# ---------------------------------------------------------------------------
def _ref_block(x, w, s, b, *, dilation, pad, pool):
    xg = _gelu(x)
    y = lax.conv_general_dilated(
        xg, w, window_strides=(1,), padding=[(pad, pad)],
        rhs_dilation=(dilation,), dimension_numbers=("NWC", "WIO", "NWC"))
    y = y * s[None, None, :] + b[None, None, :]
    if pool > 1:
        y = lax.reduce_window(y, -jnp.inf, lax.max, (1, pool, 1), (1, pool, 1), "VALID")
    return y


def basenji_ref(x, p, convdc=6):
    h = _ref_block(x, p["conv1_w"], p["bn1_s"], p["bn1_b"], dilation=1, pad=7, pool=8)
    h = _ref_block(h, p["conv2_w"], p["bn2_s"], p["bn2_b"], dilation=1, pad=3, pool=4)
    h = _ref_block(h, p["conv3_w"], p["bn3_s"], p["bn3_b"], dilation=1, pad=3, pool=4)
    y = None
    for i in range(convdc):
        d = 2 ** i
        t = _ref_block(h, p["dil_w1"][i], p["dil_bn1_s"][i], p["dil_bn1_b"][i],
                       dilation=d, pad=d, pool=1)
        t = _ref_block(t, p["dil_w2"][i], p["dil_bn2_s"][i], p["dil_bn2_b"][i],
                       dilation=1, pad=0, pool=1)
        y = t if y is None else y + t
    r = _ref_block(y, p["conv4_w"], p["bn4_s"], p["bn4_b"], dilation=1, pad=0, pool=1)
    rg = _gelu(r)
    z = jnp.einsum("blc,ct->blt", rg, p["lin_w"]) + p["lin_b"][None, None, :]
    return _softplus(z)


# ---------------------------------------------------------------------------
# Deterministic parameter init (shapes from BasenjiModel.__init__)
# NOTE: the torch code zeroes the dilation BN(32) gamma (which nulls the whole
# dilated path); we use gamma=1 so the kernels are actually exercised. Forward
# semantics are identical; only the deterministic init values differ.
# ---------------------------------------------------------------------------
def init_params(key, n_channel=4, num_targets=8, convdc=6):
    keys = iter(jax.random.split(key, 32))

    def tn(shape, std):
        return (std * jax.random.truncated_normal(next(keys), -2.0, 2.0, shape)).astype(jnp.float32)

    eps = 1e-5

    def bn(c):
        # eval-mode BatchNorm: gamma=1, beta=0, running_mean=0, running_var=1
        return (jnp.full((c,), 1.0 / np.sqrt(1.0 + eps), jnp.float32),
                jnp.zeros((c,), jnp.float32))

    p = {}
    p["conv1_w"] = tn((15, n_channel, 64), np.sqrt(2 / 60))
    p["bn1_s"], p["bn1_b"] = bn(64)
    p["conv2_w"] = tn((5, 64, 64), np.sqrt(2 / 322))
    p["bn2_s"], p["bn2_b"] = bn(64)
    p["conv3_w"] = tn((5, 64, 72), np.sqrt(2 / 322))
    p["bn3_s"], p["bn3_b"] = bn(72)
    p["dil_w1"], p["dil_w2"] = [], []
    p["dil_bn1_s"], p["dil_bn1_b"], p["dil_bn2_s"], p["dil_bn2_b"] = [], [], [], []
    for _ in range(convdc):
        p["dil_w1"].append(tn((3, 72, 32), np.sqrt(2 / 218)))
        s, b = bn(32)
        p["dil_bn1_s"].append(s); p["dil_bn1_b"].append(b)
        p["dil_w2"].append(tn((1, 32, 72), np.sqrt(2 / 32)))
        s, b = bn(72)
        p["dil_bn2_s"].append(s); p["dil_bn2_b"].append(b)
    p["conv4_w"] = tn((1, 72, 64), np.sqrt(2 / 72))
    p["bn4_s"], p["bn4_b"] = bn(64)
    p["lin_w"] = tn((64, num_targets), np.sqrt(2 / 64))
    p["lin_b"] = (0.01 * jax.random.normal(next(keys), (num_targets,))).astype(jnp.float32)
    return p


if __name__ == "__main__":
    key = jax.random.PRNGKey(0)
    k_p, k_x = jax.random.split(key)
    B, L, C, T = 2, 512, 4, 8           # (B, L, C) channels-last == torch (B, C=4, L=512)
    params = init_params(k_p, n_channel=C, num_targets=T)
    x = jax.random.normal(k_x, (B, L, C), jnp.float32)

    fwd = jax.jit(functools.partial(basenji_forward, convdc=6))
    out = jax.block_until_ready(fwd(x, params))

    ref = jax.block_until_ready(basenji_ref(x, params))
    assert out.shape == ref.shape, (out.shape, ref.shape)
    np.testing.assert_allclose(np.asarray(out), np.asarray(ref), rtol=2e-2, atol=2e-2)
    print("KERNEL_OK")
</pallas_src>

<mosaic_0001>
module attributes {stable_mosaic.version = 11 : i64} {
  func.func @_fused_kernel(%arg0: i32, %arg1: memref<1x512x60xf32, #tpu.memory_space<vmem>>, %arg2: memref<60x64xbf16, #tpu.memory_space<vmem>>, %arg3: memref<1x64xf32, #tpu.memory_space<vmem>>, %arg4: memref<1x64xf32, #tpu.memory_space<vmem>>, %arg5: memref<320x64xbf16, #tpu.memory_space<vmem>>, %arg6: memref<1x64xf32, #tpu.memory_space<vmem>>, %arg7: memref<1x64xf32, #tpu.memory_space<vmem>>, %arg8: memref<320x72xbf16, #tpu.memory_space<vmem>>, %arg9: memref<1x72xf32, #tpu.memory_space<vmem>>, %arg10: memref<1x72xf32, #tpu.memory_space<vmem>>, %arg11: memref<6x216x32xbf16, #tpu.memory_space<vmem>>, %arg12: memref<6x1x32xf32, #tpu.memory_space<vmem>>, %arg13: memref<6x1x32xf32, #tpu.memory_space<vmem>>, %arg14: memref<6x32x72xbf16, #tpu.memory_space<vmem>>, %arg15: memref<6x1x72xf32, #tpu.memory_space<vmem>>, %arg16: memref<6x1x72xf32, #tpu.memory_space<vmem>>, %arg17: memref<72x64xbf16, #tpu.memory_space<vmem>>, %arg18: memref<1x64xf32, #tpu.memory_space<vmem>>, %arg19: memref<1x64xf32, #tpu.memory_space<vmem>>, %arg20: memref<64x8xbf16, #tpu.memory_space<vmem>>, %arg21: memref<1x8xf32, #tpu.memory_space<vmem>>, %arg22: memref<1x4x8xf32, #tpu.memory_space<vmem>>) attributes {dimension_semantics = [#tpu.dimension_semantics<parallel>], iteration_bounds = array<i64: 2>, scalar_prefetch = 0 : i64, scratch_operands = 0 : i64, tpu.core_type = #tpu.core_type<tc>, window_params = [{transform_indices = @transform_0, window_bounds = array<i64: 1, 512, 60>}, {pipeline_mode = #tpu.pipeline_mode<synchronous>, transform_indices = @transform_1, window_bounds = array<i64: 60, 64>}, {pipeline_mode = #tpu.pipeline_mode<synchronous>, transform_indices = @transform_2, window_bounds = array<i64: 1, 64>}, {pipeline_mode = #tpu.pipeline_mode<synchronous>, transform_indices = @transform_3, window_bounds = array<i64: 1, 64>}, {pipeline_mode = #tpu.pipeline_mode<synchronous>, transform_indices = @transform_4, window_bounds = array<i64: 320, 64>}, {pipeline_mode = #tpu.pipeline_mode<synchronous>, transform_indices = @transform_5, window_bounds = array<i64: 1, 64>}, {pipeline_mode = #tpu.pipeline_mode<synchronous>, transform_indices = @transform_6, window_bounds = array<i64: 1, 64>}, {pipeline_mode = #tpu.pipeline_mode<synchronous>, transform_indices = @transform_7, window_bounds = array<i64: 320, 72>}, {pipeline_mode = #tpu.pipeline_mode<synchronous>, transform_indices = @transform_8, window_bounds = array<i64: 1, 72>}, {pipeline_mode = #tpu.pipeline_mode<synchronous>, transform_indices = @transform_9, window_bounds = array<i64: 1, 72>}, {pipeline_mode = #tpu.pipeline_mode<synchronous>, transform_indices = @transform_10, window_bounds = array<i64: 6, 216, 32>}, {pipeline_mode = #tpu.pipeline_mode<synchronous>, transform_indices = @transform_11, window_bounds = array<i64: 6, 1, 32>}, {pipeline_mode = #tpu.pipeline_mode<synchronous>, transform_indices = @transform_12, window_bounds = array<i64: 6, 1, 32>}, {pipeline_mode = #tpu.pipeline_mode<synchronous>, transform_indices = @transform_13, window_bounds = array<i64: 6, 32, 72>}, {pipeline_mode = #tpu.pipeline_mode<synchronous>, transform_indices = @transform_14, window_bounds = array<i64: 6, 1, 72>}, {pipeline_mode = #tpu.pipeline_mode<synchronous>, transform_indices = @transform_15, window_bounds = array<i64: 6, 1, 72>}, {pipeline_mode = #tpu.pipeline_mode<synchronous>, transform_indices = @transform_16, window_bounds = array<i64: 72, 64>}, {pipeline_mode = #tpu.pipeline_mode<synchronous>, transform_indices = @transform_17, window_bounds = array<i64: 1, 64>}, {pipeline_mode = #tpu.pipeline_mode<synchronous>, transform_indices = @transform_18, window_bounds = array<i64: 1, 64>}, {pipeline_mode = #tpu.pipeline_mode<synchronous>, transform_indices = @transform_19, window_bounds = array<i64: 64, 8>}, {pipeline_mode = #tpu.pipeline_mode<synchronous>, transform_indices = @transform_20, window_bounds = array<i64: 1, 8>}, {transform_indices = @transform_21, window_bounds = array<i64: 1, 4, 8>}]} {
    %c0 = arith.constant 0 : index
    %c0_0 = arith.constant 0 : index
    %c0_1 = arith.constant 0 : index
    %0 = vector.load %arg1[%c0, %c0_0, %c0_1] : memref<1x512x60xf32, #tpu.memory_space<vmem>>, vector<1x512x60xf32>
    %1 = vector.shape_cast %0 : vector<1x512x60xf32> to vector<512x60xf32>
    %cst = arith.constant -1.702000e+00 : f32
    %2 = vector.broadcast %cst : f32 to vector<512x60xf32>
    %3 = arith.mulf %2, %1 : vector<512x60xf32>
    %4 = math.exp %3 : vector<512x60xf32>
    %cst_2 = arith.constant 1.000000e+00 : f32
    %5 = vector.broadcast %cst_2 : f32 to vector<512x60xf32>
    %6 = arith.addf %5, %4 : vector<512x60xf32>
    %7 = arith.divf %1, %6 : vector<512x60xf32>
    %c0_3 = arith.constant 0 : index
    %c0_4 = arith.constant 0 : index
    %8 = vector.load %arg2[%c0_3, %c0_4] : memref<60x64xbf16, #tpu.memory_space<vmem>>, vector<60x64xbf16>
    %9 = arith.truncf %7 : vector<512x60xf32> to vector<512x60xbf16>
    %cst_5 = arith.constant dense<0.000000e+00> : vector<512x64xf32>
    %10 = tpu.matmul %9, %8, %cst_5 {dimension_numbers = #tpu.dot_dimension_numbers<[1], [0], [0], [1], [0, 0, 1, 1], [], []>} : vector<512x60xbf16>, vector<60x64xbf16>, vector<512x64xf32> -> vector<512x64xf32>
    %c0_6 = arith.constant 0 : index
    %c0_7 = arith.constant 0 : index
    %11 = vector.load %arg3[%c0_6, %c0_7] : memref<1x64xf32, #tpu.memory_space<vmem>>, vector<1x64xf32>
    %12 = vector.broadcast %11 : vector<1x64xf32> to vector<512x64xf32>
    %13 = arith.mulf %10, %12 : vector<512x64xf32>
    %c0_8 = arith.constant 0 : index
    %c0_9 = arith.constant 0 : index
    %14 = vector.load %arg4[%c0_8, %c0_9] : memref<1x64xf32, #tpu.memory_space<vmem>>, vector<1x64xf32>
    %15 = vector.broadcast %14 : vector<1x64xf32> to vector<512x64xf32>
    %16 = arith.addf %13, %15 : vector<512x64xf32>
    %17 = vector.extract_strided_slice %16 {offsets = [0, 0], sizes = [64, 64], strides = [1, 1]} : vector<512x64xf32> to vector<64x64xf32>
    %18 = vector.extract_strided_slice %16 {offsets = [64, 0], sizes = [64, 64], strides = [1, 1]} : vector<512x64xf32> to vector<64x64xf32>
    %19 = arith.maximumf %17, %18 : vector<64x64xf32>
    %20 = vector.extract_strided_slice %16 {offsets = [128, 0], sizes = [64, 64], strides = [1, 1]} : vector<512x64xf32> to vector<64x64xf32>
    %21 = arith.maximumf %19, %20 : vector<64x64xf32>
    %22 = vector.extract_strided_slice %16 {offsets = [192, 0], sizes = [64, 64], strides = [1, 1]} : vector<512x64xf32> to vector<64x64xf32>
    %23 = arith.maximumf %21, %22 : vector<64x64xf32>
    %24 = vector.extract_strided_slice %16 {offsets = [256, 0], sizes = [64, 64], strides = [1, 1]} : vector<512x64xf32> to vector<64x64xf32>
    %25 = arith.maximumf %23, %24 : vector<64x64xf32>
    %26 = vector.extract_strided_slice %16 {offsets = [320, 0], sizes = [64, 64], strides = [1, 1]} : vector<512x64xf32> to vector<64x64xf32>
    %27 = arith.maximumf %25, %26 : vector<64x64xf32>
    %28 = vector.extract_strided_slice %16 {offsets = [384, 0], sizes = [64, 64], strides = [1, 1]} : vector<512x64xf32> to vector<64x64xf32>
    %29 = arith.maximumf %27, %28 : vector<64x64xf32>
    %30 = vector.extract_strided_slice %16 {offsets = [448, 0], sizes = [64, 64], strides = [1, 1]} : vector<512x64xf32> to vector<64x64xf32>
    %31 = arith.maximumf %29, %30 : vector<64x64xf32>
    %c0_10 = arith.constant 0 : index
    %c0_11 = arith.constant 0 : index
    %32 = vector.load %arg5[%c0_10, %c0_11] : memref<320x64xbf16, #tpu.memory_space<vmem>>, vector<320x64xbf16>
    %c0_12 = arith.constant 0 : index
    %c0_13 = arith.constant 0 : index
    %33 = vector.load %arg6[%c0_12, %c0_13] : memref<1x64xf32, #tpu.memory_space<vmem>>, vector<1x64xf32>
    %c0_14 = arith.constant 0 : index
    %c0_15 = arith.constant 0 : index
    %34 = vector.load %arg7[%c0_14, %c0_15] : memref<1x64xf32, #tpu.memory_space<vmem>>, vector<1x64xf32>
    %cst_16 = arith.constant -1.702000e+00 : f32
    %35 = vector.broadcast %cst_16 : f32 to vector<64x64xf32>
    %36 = arith.mulf %35, %31 : vector<64x64xf32>
    %37 = math.exp %36 : vector<64x64xf32>
    %cst_17 = arith.constant 1.000000e+00 : f32
    %38 = vector.broadcast %cst_17 : f32 to vector<64x64xf32>
    %39 = arith.addf %38, %37 : vector<64x64xf32>
    %40 = arith.divf %31, %39 : vector<64x64xf32>
    %cst_18 = arith.constant 0.000000e+00 : f32
    %41 = vector.broadcast %cst_18 : f32 to vector<3x64xf32>
    %42 = tpu.concatenate %41, %40, %41 in 0 : vector<3x64xf32>, vector<64x64xf32>, vector<3x64xf32> -> vector<70x64xf32>
    %43 = vector.extract_strided_slice %42 {offsets = [0, 0], sizes = [64, 64], strides = [1, 1]} : vector<70x64xf32> to vector<64x64xf32>
    %44 = vector.extract_strided_slice %42 {offsets = [1, 0], sizes = [64, 64], strides = [1, 1]} : vector<70x64xf32> to vector<64x64xf32>
    %45 = vector.extract_strided_slice %42 {offsets = [2, 0], sizes = [64, 64], strides = [1, 1]} : vector<70x64xf32> to vector<64x64xf32>
    %46 = vector.extract_strided_slice %42 {offsets = [3, 0], sizes = [64, 64], strides = [1, 1]} : vector<70x64xf32> to vector<64x64xf32>
    %47 = vector.extract_strided_slice %42 {offsets = [4, 0], sizes = [64, 64], strides = [1, 1]} : vector<70x64xf32> to vector<64x64xf32>
    %48 = tpu.concatenate %43, %44, %45, %46, %47 in 1 : vector<64x64xf32>, vector<64x64xf32>, vector<64x64xf32>, vector<64x64xf32>, vector<64x64xf32> -> vector<64x320xf32>
    %49 = arith.truncf %48 : vector<64x320xf32> to vector<64x320xbf16>
    %cst_19 = arith.constant dense<0.000000e+00> : vector<64x64xf32>
    %50 = tpu.matmul %49, %32, %cst_19 {dimension_numbers = #tpu.dot_dimension_numbers<[1], [0], [0], [1], [0, 0, 1, 1], [], []>} : vector<64x320xbf16>, vector<320x64xbf16>, vector<64x64xf32> -> vector<64x64xf32>
    %51 = vector.broadcast %33 : vector<1x64xf32> to vector<64x64xf32>
    %52 = arith.mulf %50, %51 : vector<64x64xf32>
    %53 = vector.broadcast %34 : vector<1x64xf32> to vector<64x64xf32>
    %54 = arith.addf %52, %53 : vector<64x64xf32>
    %55 = vector.shape_cast %54 : vector<64x64xf32> to vector<16x4x64xf32>
    %cst_20 = arith.constant dense<0xFF800000> : vector<16x64xf32>
    %56 = vector.multi_reduction <maximumf>, %55, %cst_20 [1] : vector<16x4x64xf32> to vector<16x64xf32>
    %c0_21 = arith.constant 0 : index
    %c0_22 = arith.constant 0 : index
    %57 = vector.load %arg8[%c0_21, %c0_22] : memref<320x72xbf16, #tpu.memory_space<vmem>>, vector<320x72xbf16>
    %c0_23 = arith.constant 0 : index
    %c0_24 = arith.constant 0 : index
    %58 = vector.load %arg9[%c0_23, %c0_24] : memref<1x72xf32, #tpu.memory_space<vmem>>, vector<1x72xf32>
    %c0_25 = arith.constant 0 : index
    %c0_26 = arith.constant 0 : index
    %59 = vector.load %arg10[%c0_25, %c0_26] : memref<1x72xf32, #tpu.memory_space<vmem>>, vector<1x72xf32>
    %cst_27 = arith.constant -1.702000e+00 : f32
    %60 = vector.broadcast %cst_27 : f32 to vector<16x64xf32>
    %61 = arith.mulf %60, %56 : vector<16x64xf32>
    %62 = math.exp %61 : vector<16x64xf32>
    %cst_28 = arith.constant 1.000000e+00 : f32
    %63 = vector.broadcast %cst_28 : f32 to vector<16x64xf32>
    %64 = arith.addf %63, %62 : vector<16x64xf32>
    %65 = arith.divf %56, %64 : vector<16x64xf32>
    %cst_29 = arith.constant 0.000000e+00 : f32
    %66 = vector.broadcast %cst_29 : f32 to vector<3x64xf32>
    %67 = tpu.concatenate %66, %65, %66 in 0 : vector<3x64xf32>, vector<16x64xf32>, vector<3x64xf32> -> vector<22x64xf32>
    %68 = vector.extract_strided_slice %67 {offsets = [0, 0], sizes = [16, 64], strides = [1, 1]} : vector<22x64xf32> to vector<16x64xf32>
    %69 = vector.extract_strided_slice %67 {offsets = [1, 0], sizes = [16, 64], strides = [1, 1]} : vector<22x64xf32> to vector<16x64xf32>
    %70 = vector.extract_strided_slice %67 {offsets = [2, 0], sizes = [16, 64], strides = [1, 1]} : vector<22x64xf32> to vector<16x64xf32>
    %71 = vector.extract_strided_slice %67 {offsets = [3, 0], sizes = [16, 64], strides = [1, 1]} : vector<22x64xf32> to vector<16x64xf32>
    %72 = vector.extract_strided_slice %67 {offsets = [4, 0], sizes = [16, 64], strides = [1, 1]} : vector<22x64xf32> to vector<16x64xf32>
    %73 = tpu.concatenate %68, %69, %70, %71, %72 in 1 : vector<16x64xf32>, vector<16x64xf32>, vector<16x64xf32>, vector<16x64xf32>, vector<16x64xf32> -> vector<16x320xf32>
    %74 = arith.truncf %73 : vector<16x320xf32> to vector<16x320xbf16>
    %cst_30 = arith.constant dense<0.000000e+00> : vector<16x72xf32>
    %75 = tpu.matmul %74, %57, %cst_30 {dimension_numbers = #tpu.dot_dimension_numbers<[1], [0], [0], [1], [0, 0, 1, 1], [], []>} : vector<16x320xbf16>, vector<320x72xbf16>, vector<16x72xf32> -> vector<16x72xf32>
    %76 = vector.broadcast %58 : vector<1x72xf32> to vector<16x72xf32>
    %77 = arith.mulf %75, %76 : vector<16x72xf32>
    %78 = vector.broadcast %59 : vector<1x72xf32> to vector<16x72xf32>
    %79 = arith.addf %77, %78 : vector<16x72xf32>
    %80 = vector.shape_cast %79 : vector<16x72xf32> to vector<4x4x72xf32>
    %cst_31 = arith.constant dense<0xFF800000> : vector<4x72xf32>
    %81 = vector.multi_reduction <maximumf>, %80, %cst_31 [1] : vector<4x4x72xf32> to vector<4x72xf32>
    %c0_32 = arith.constant 0 : index
    %c0_33 = arith.constant 0 : index
    %c0_34 = arith.constant 0 : index
    %82 = vector.load %arg11[%c0_32, %c0_33, %c0_34] : memref<6x216x32xbf16, #tpu.memory_space<vmem>>, vector<1x216x32xbf16>
    %83 = vector.shape_cast %82 : vector<1x216x32xbf16> to vector<216x32xbf16>
    %c0_35 = arith.constant 0 : index
    %c0_36 = arith.constant 0 : index
    %c0_37 = arith.constant 0 : index
    %84 = vector.load %arg12[%c0_35, %c0_36, %c0_37] : memref<6x1x32xf32, #tpu.memory_space<vmem>>, vector<1x1x32xf32>
    %85 = vector.shape_cast %84 : vector<1x1x32xf32> to vector<1x32xf32>
    %c0_38 = arith.constant 0 : index
    %c0_39 = arith.constant 0 : index
    %c0_40 = arith.constant 0 : index
    %86 = vector.load %arg13[%c0_38, %c0_39, %c0_40] : memref<6x1x32xf32, #tpu.memory_space<vmem>>, vector<1x1x32xf32>
    %87 = vector.shape_cast %86 : vector<1x1x32xf32> to vector<1x32xf32>
    %cst_41 = arith.constant -1.702000e+00 : f32
    %88 = vector.broadcast %cst_41 : f32 to vector<4x72xf32>
    %89 = arith.mulf %88, %81 : vector<4x72xf32>
    %90 = math.exp %89 : vector<4x72xf32>
    %cst_42 = arith.constant 1.000000e+00 : f32
    %91 = vector.broadcast %cst_42 : f32 to vector<4x72xf32>
    %92 = arith.addf %91, %90 : vector<4x72xf32>
    %93 = arith.divf %81, %92 : vector<4x72xf32>
    %cst_43 = arith.constant 0.000000e+00 : f32
    %94 = vector.broadcast %cst_43 : f32 to vector<1x72xf32>
    %95 = tpu.concatenate %94, %93, %94 in 0 : vector<1x72xf32>, vector<4x72xf32>, vector<1x72xf32> -> vector<6x72xf32>
    %96 = vector.extract_strided_slice %95 {offsets = [0, 0], sizes = [4, 72], strides = [1, 1]} : vector<6x72xf32> to vector<4x72xf32>
    %97 = vector.extract_strided_slice %95 {offsets = [1, 0], sizes = [4, 72], strides = [1, 1]} : vector<6x72xf32> to vector<4x72xf32>
    %98 = vector.extract_strided_slice %95 {offsets = [2, 0], sizes = [4, 72], strides = [1, 1]} : vector<6x72xf32> to vector<4x72xf32>
    %99 = tpu.concatenate %96, %97, %98 in 1 : vector<4x72xf32>, vector<4x72xf32>, vector<4x72xf32> -> vector<4x216xf32>
    %100 = arith.truncf %99 : vector<4x216xf32> to vector<4x216xbf16>
    %cst_44 = arith.constant dense<0.000000e+00> : vector<4x32xf32>
    %101 = tpu.matmul %100, %83, %cst_44 {dimension_numbers = #tpu.dot_dimension_numbers<[1], [0], [0], [1], [0, 0, 1, 1], [], []>} : vector<4x216xbf16>, vector<216x32xbf16>, vector<4x32xf32> -> vector<4x32xf32>
    %102 = vector.broadcast %85 : vector<1x32xf32> to vector<4x32xf32>
    %103 = arith.mulf %101, %102 : vector<4x32xf32>
    %104 = vector.broadcast %87 : vector<1x32xf32> to vector<4x32xf32>
    %105 = arith.addf %103, %104 : vector<4x32xf32>
    %c0_45 = arith.constant 0 : index
    %c0_46 = arith.constant 0 : index
    %c0_47 = arith.constant 0 : index
    %106 = vector.load %arg14[%c0_45, %c0_46, %c0_47] : memref<6x32x72xbf16, #tpu.memory_space<vmem>>, vector<1x32x72xbf16>
    %107 = vector.shape_cast %106 : vector<1x32x72xbf16> to vector<32x72xbf16>
    %c0_48 = arith.constant 0 : index
    %c0_49 = arith.constant 0 : index
    %c0_50 = arith.constant 0 : index
    %108 = vector.load %arg15[%c0_48, %c0_49, %c0_50] : memref<6x1x72xf32, #tpu.memory_space<vmem>>, vector<1x1x72xf32>
    %109 = vector.shape_cast %108 : vector<1x1x72xf32> to vector<1x72xf32>
    %c0_51 = arith.constant 0 : index
    %c0_52 = arith.constant 0 : index
    %c0_53 = arith.constant 0 : index
    %110 = vector.load %arg16[%c0_51, %c0_52, %c0_53] : memref<6x1x72xf32, #tpu.memory_space<vmem>>, vector<1x1x72xf32>
    %111 = vector.shape_cast %110 : vector<1x1x72xf32> to vector<1x72xf32>
    %cst_54 = arith.constant -1.702000e+00 : f32
    %112 = vector.broadcast %cst_54 : f32 to vector<4x32xf32>
    %113 = arith.mulf %112, %105 : vector<4x32xf32>
    %114 = math.exp %113 : vector<4x32xf32>
    %cst_55 = arith.constant 1.000000e+00 : f32
    %115 = vector.broadcast %cst_55 : f32 to vector<4x32xf32>
    %116 = arith.addf %115, %114 : vector<4x32xf32>
    %117 = arith.divf %105, %116 : vector<4x32xf32>
    %118 = arith.truncf %117 : vector<4x32xf32> to vector<4x32xbf16>
    %cst_56 = arith.constant dense<0.000000e+00> : vector<4x72xf32>
    %119 = tpu.matmul %118, %107, %cst_56 {dimension_numbers = #tpu.dot_dimension_numbers<[1], [0], [0], [1], [0, 0, 1, 1], [], []>} : vector<4x32xbf16>, vector<32x72xbf16>, vector<4x72xf32> -> vector<4x72xf32>
    %120 = vector.broadcast %109 : vector<1x72xf32> to vector<4x72xf32>
    %121 = arith.mulf %119, %120 : vector<4x72xf32>
    %122 = vector.broadcast %111 : vector<1x72xf32> to vector<4x72xf32>
    %123 = arith.addf %121, %122 : vector<4x72xf32>
    %c1 = arith.constant 1 : index
    %c0_57 = arith.constant 0 : index
    %c0_58 = arith.constant 0 : index
    %124 = vector.load %arg11[%c1, %c0_57, %c0_58] : memref<6x216x32xbf16, #tpu.memory_space<vmem>>, vector<1x216x32xbf16>
    %125 = vector.shape_cast %124 : vector<1x216x32xbf16> to vector<216x32xbf16>
    %c1_59 = arith.constant 1 : index
    %c0_60 = arith.constant 0 : index
    %c0_61 = arith.constant 0 : index
    %126 = vector.load %arg12[%c1_59, %c0_60, %c0_61] : memref<6x1x32xf32, #tpu.memory_space<vmem>>, vector<1x1x32xf32>
    %127 = vector.shape_cast %126 : vector<1x1x32xf32> to vector<1x32xf32>
    %c1_62 = arith.constant 1 : index
    %c0_63 = arith.constant 0 : index
    %c0_64 = arith.constant 0 : index
    %128 = vector.load %arg13[%c1_62, %c0_63, %c0_64] : memref<6x1x32xf32, #tpu.memory_space<vmem>>, vector<1x1x32xf32>
    %129 = vector.shape_cast %128 : vector<1x1x32xf32> to vector<1x32xf32>
    %cst_65 = arith.constant -1.702000e+00 : f32
    %130 = vector.broadcast %cst_65 : f32 to vector<4x72xf32>
    %131 = arith.mulf %130, %81 : vector<4x72xf32>
    %132 = math.exp %131 : vector<4x72xf32>
    %cst_66 = arith.constant 1.000000e+00 : f32
    %133 = vector.broadcast %cst_66 : f32 to vector<4x72xf32>
    %134 = arith.addf %133, %132 : vector<4x72xf32>
    %135 = arith.divf %81, %134 : vector<4x72xf32>
    %cst_67 = arith.constant 0.000000e+00 : f32
    %136 = vector.broadcast %cst_67 : f32 to vector<2x72xf32>
    %137 = tpu.concatenate %136, %135, %136 in 0 : vector<2x72xf32>, vector<4x72xf32>, vector<2x72xf32> -> vector<8x72xf32>
    %138 = vector.extract_strided_slice %137 {offsets = [0, 0], sizes = [4, 72], strides = [1, 1]} : vector<8x72xf32> to vector<4x72xf32>
    %139 = vector.extract_strided_slice %137 {offsets = [2, 0], sizes = [4, 72], strides = [1, 1]} : vector<8x72xf32> to vector<4x72xf32>
    %140 = vector.extract_strided_slice %137 {offsets = [4, 0], sizes = [4, 72], strides = [1, 1]} : vector<8x72xf32> to vector<4x72xf32>
    %141 = tpu.concatenate %138, %139, %140 in 1 : vector<4x72xf32>, vector<4x72xf32>, vector<4x72xf32> -> vector<4x216xf32>
    %142 = arith.truncf %141 : vector<4x216xf32> to vector<4x216xbf16>
    %cst_68 = arith.constant dense<0.000000e+00> : vector<4x32xf32>
    %143 = tpu.matmul %142, %125, %cst_68 {dimension_numbers = #tpu.dot_dimension_numbers<[1], [0], [0], [1], [0, 0, 1, 1], [], []>} : vector<4x216xbf16>, vector<216x32xbf16>, vector<4x32xf32> -> vector<4x32xf32>
    %144 = vector.broadcast %127 : vector<1x32xf32> to vector<4x32xf32>
    %145 = arith.mulf %143, %144 : vector<4x32xf32>
    %146 = vector.broadcast %129 : vector<1x32xf32> to vector<4x32xf32>
    %147 = arith.addf %145, %146 : vector<4x32xf32>
    %c1_69 = arith.constant 1 : index
    %c0_70 = arith.constant 0 : index
    %c0_71 = arith.constant 0 : index
    %148 = vector.load %arg14[%c1_69, %c0_70, %c0_71] : memref<6x32x72xbf16, #tpu.memory_space<vmem>>, vector<1x32x72xbf16>
    %149 = vector.shape_cast %148 : vector<1x32x72xbf16> to vector<32x72xbf16>
    %c1_72 = arith.constant 1 : index
    %c0_73 = arith.constant 0 : index
    %c0_74 = arith.constant 0 : index
    %150 = vector.load %arg15[%c1_72, %c0_73, %c0_74] : memref<6x1x72xf32, #tpu.memory_space<vmem>>, vector<1x1x72xf32>
    %151 = vector.shape_cast %150 : vector<1x1x72xf32> to vector<1x72xf32>
    %c1_75 = arith.constant 1 : index
    %c0_76 = arith.constant 0 : index
    %c0_77 = arith.constant 0 : index
    %152 = vector.load %arg16[%c1_75, %c0_76, %c0_77] : memref<6x1x72xf32, #tpu.memory_space<vmem>>, vector<1x1x72xf32>
    %153 = vector.shape_cast %152 : vector<1x1x72xf32> to vector<1x72xf32>
    %cst_78 = arith.constant -1.702000e+00 : f32
    %154 = vector.broadcast %cst_78 : f32 to vector<4x32xf32>
    %155 = arith.mulf %154, %147 : vector<4x32xf32>
    %156 = math.exp %155 : vector<4x32xf32>
    %cst_79 = arith.constant 1.000000e+00 : f32
    %157 = vector.broadcast %cst_79 : f32 to vector<4x32xf32>
    %158 = arith.addf %157, %156 : vector<4x32xf32>
    %159 = arith.divf %147, %158 : vector<4x32xf32>
    %160 = arith.truncf %159 : vector<4x32xf32> to vector<4x32xbf16>
    %cst_80 = arith.constant dense<0.000000e+00> : vector<4x72xf32>
    %161 = tpu.matmul %160, %149, %cst_80 {dimension_numbers = #tpu.dot_dimension_numbers<[1], [0], [0], [1], [0, 0, 1, 1], [], []>} : vector<4x32xbf16>, vector<32x72xbf16>, vector<4x72xf32> -> vector<4x72xf32>
    %162 = vector.broadcast %151 : vector<1x72xf32> to vector<4x72xf32>
    %163 = arith.mulf %161, %162 : vector<4x72xf32>
    %164 = vector.broadcast %153 : vector<1x72xf32> to vector<4x72xf32>
    %165 = arith.addf %163, %164 : vector<4x72xf32>
    %166 = arith.addf %123, %165 : vector<4x72xf32>
    %c2 = arith.constant 2 : index
    %c0_81 = arith.constant 0 : index
    %c0_82 = arith.constant 0 : index
    %167 = vector.load %arg11[%c2, %c0_81, %c0_82] : memref<6x216x32xbf16, #tpu.memory_space<vmem>>, vector<1x216x32xbf16>
    %168 = vector.shape_cast %167 : vector<1x216x32xbf16> to vector<216x32xbf16>
    %c2_83 = arith.constant 2 : index
    %c0_84 = arith.constant 0 : index
    %c0_85 = arith.constant 0 : index
    %169 = vector.load %arg12[%c2_83, %c0_84, %c0_85] : memref<6x1x32xf32, #tpu.memory_space<vmem>>, vector<1x1x32xf32>
    %170 = vector.shape_cast %169 : vector<1x1x32xf32> to vector<1x32xf32>
    %c2_86 = arith.constant 2 : index
    %c0_87 = arith.constant 0 : index
    %c0_88 = arith.constant 0 : index
    %171 = vector.load %arg13[%c2_86, %c0_87, %c0_88] : memref<6x1x32xf32, #tpu.memory_space<vmem>>, vector<1x1x32xf32>
    %172 = vector.shape_cast %171 : vector<1x1x32xf32> to vector<1x32xf32>
    %cst_89 = arith.constant -1.702000e+00 : f32
    %173 = vector.broadcast %cst_89 : f32 to vector<4x72xf32>
    %174 = arith.mulf %173, %81 : vector<4x72xf32>
    %175 = math.exp %174 : vector<4x72xf32>
    %cst_90 = arith.constant 1.000000e+00 : f32
    %176 = vector.broadcast %cst_90 : f32 to vector<4x72xf32>
    %177 = arith.addf %176, %175 : vector<4x72xf32>
    %178 = arith.divf %81, %177 : vector<4x72xf32>
    %cst_91 = arith.constant 0.000000e+00 : f32
    %179 = vector.broadcast %cst_91 : f32 to vector<4x72xf32>
    %180 = tpu.concatenate %179, %178, %179 in 0 : vector<4x72xf32>, vector<4x72xf32>, vector<4x72xf32> -> vector<12x72xf32>
    %181 = vector.extract_strided_slice %180 {offsets = [0, 0], sizes = [4, 72], strides = [1, 1]} : vector<12x72xf32> to vector<4x72xf32>
    %182 = vector.extract_strided_slice %180 {offsets = [4, 0], sizes = [4, 72], strides = [1, 1]} : vector<12x72xf32> to vector<4x72xf32>
    %183 = vector.extract_strided_slice %180 {offsets = [8, 0], sizes = [4, 72], strides = [1, 1]} : vector<12x72xf32> to vector<4x72xf32>
    %184 = tpu.concatenate %181, %182, %183 in 1 : vector<4x72xf32>, vector<4x72xf32>, vector<4x72xf32> -> vector<4x216xf32>
    %185 = arith.truncf %184 : vector<4x216xf32> to vector<4x216xbf16>
    %cst_92 = arith.constant dense<0.000000e+00> : vector<4x32xf32>
    %186 = tpu.matmul %185, %168, %cst_92 {dimension_numbers = #tpu.dot_dimension_numbers<[1], [0], [0], [1], [0, 0, 1, 1], [], []>} : vector<4x216xbf16>, vector<216x32xbf16>, vector<4x32xf32> -> vector<4x32xf32>
    %187 = vector.broadcast %170 : vector<1x32xf32> to vector<4x32xf32>
    %188 = arith.mulf %186, %187 : vector<4x32xf32>
    %189 = vector.broadcast %172 : vector<1x32xf32> to vector<4x32xf32>
    %190 = arith.addf %188, %189 : vector<4x32xf32>
    %c2_93 = arith.constant 2 : index
    %c0_94 = arith.constant 0 : index
    %c0_95 = arith.constant 0 : index
    %191 = vector.load %arg14[%c2_93, %c0_94, %c0_95] : memref<6x32x72xbf16, #tpu.memory_space<vmem>>, vector<1x32x72xbf16>
    %192 = vector.shape_cast %191 : vector<1x32x72xbf16> to vector<32x72xbf16>
    %c2_96 = arith.constant 2 : index
    %c0_97 = arith.constant 0 : index
    %c0_98 = arith.constant 0 : index
    %193 = vector.load %arg15[%c2_96, %c0_97, %c0_98] : memref<6x1x72xf32, #tpu.memory_space<vmem>>, vector<1x1x72xf32>
    %194 = vector.shape_cast %193 : vector<1x1x72xf32> to vector<1x72xf32>
    %c2_99 = arith.constant 2 : index
    %c0_100 = arith.constant 0 : index
    %c0_101 = arith.constant 0 : index
    %195 = vector.load %arg16[%c2_99, %c0_100, %c0_101] : memref<6x1x72xf32, #tpu.memory_space<vmem>>, vector<1x1x72xf32>
    %196 = vector.shape_cast %195 : vector<1x1x72xf32> to vector<1x72xf32>
    %cst_102 = arith.constant -1.702000e+00 : f32
    %197 = vector.broadcast %cst_102 : f32 to vector<4x32xf32>
    %198 = arith.mulf %197, %190 : vector<4x32xf32>
    %199 = math.exp %198 : vector<4x32xf32>
    %cst_103 = arith.constant 1.000000e+00 : f32
    %200 = vector.broadcast %cst_103 : f32 to vector<4x32xf32>
    %201 = arith.addf %200, %199 : vector<4x32xf32>
    %202 = arith.divf %190, %201 : vector<4x32xf32>
    %203 = arith.truncf %202 : vector<4x32xf32> to vector<4x32xbf16>
    %cst_104 = arith.constant dense<0.000000e+00> : vector<4x72xf32>
    %204 = tpu.matmul %203, %192, %cst_104 {dimension_numbers = #tpu.dot_dimension_numbers<[1], [0], [0], [1], [0, 0, 1, 1], [], []>} : vector<4x32xbf16>, vector<32x72xbf16>, vector<4x72xf32> -> vector<4x72xf32>
    %205 = vector.broadcast %194 : vector<1x72xf32> to vector<4x72xf32>
    %206 = arith.mulf %204, %205 : vector<4x72xf32>
    %207 = vector.broadcast %196 : vector<1x72xf32> to vector<4x72xf32>
    %208 = arith.addf %206, %207 : vector<4x72xf32>
    %209 = arith.addf %166, %208 : vector<4x72xf32>
    %c3 = arith.constant 3 : index
    %c0_105 = arith.constant 0 : index
    %c0_106 = arith.constant 0 : index
    %210 = vector.load %arg11[%c3, %c0_105, %c0_106] : memref<6x216x32xbf16, #tpu.memory_space<vmem>>, vector<1x216x32xbf16>
    %211 = vector.shape_cast %210 : vector<1x216x32xbf16> to vector<216x32xbf16>
    %c3_107 = arith.constant 3 : index
    %c0_108 = arith.constant 0 : index
    %c0_109 = arith.constant 0 : index
    %212 = vector.load %arg12[%c3_107, %c0_108, %c0_109] : memref<6x1x32xf32, #tpu.memory_space<vmem>>, vector<1x1x32xf32>
    %213 = vector.shape_cast %212 : vector<1x1x32xf32> to vector<1x32xf32>
    %c3_110 = arith.constant 3 : index
    %c0_111 = arith.constant 0 : index
    %c0_112 = arith.constant 0 : index
    %214 = vector.load %arg13[%c3_110, %c0_111, %c0_112] : memref<6x1x32xf32, #tpu.memory_space<vmem>>, vector<1x1x32xf32>
    %215 = vector.shape_cast %214 : vector<1x1x32xf32> to vector<1x32xf32>
    %cst_113 = arith.constant -1.702000e+00 : f32
    %216 = vector.broadcast %cst_113 : f32 to vector<4x72xf32>
    %217 = arith.mulf %216, %81 : vector<4x72xf32>
    %218 = math.exp %217 : vector<4x72xf32>
    %cst_114 = arith.constant 1.000000e+00 : f32
    %219 = vector.broadcast %cst_114 : f32 to vector<4x72xf32>
    %220 = arith.addf %219, %218 : vector<4x72xf32>
    %221 = arith.divf %81, %220 : vector<4x72xf32>
    %cst_115 = arith.constant 0.000000e+00 : f32
    %222 = vector.broadcast %cst_115 : f32 to vector<8x72xf32>
    %223 = tpu.concatenate %222, %221, %222 in 0 : vector<8x72xf32>, vector<4x72xf32>, vector<8x72xf32> -> vector<20x72xf32>
    %224 = vector.extract_strided_slice %223 {offsets = [0, 0], sizes = [4, 72], strides = [1, 1]} : vector<20x72xf32> to vector<4x72xf32>
    %225 = vector.extract_strided_slice %223 {offsets = [8, 0], sizes = [4, 72], strides = [1, 1]} : vector<20x72xf32> to vector<4x72xf32>
    %226 = vector.extract_strided_slice %223 {offsets = [16, 0], sizes = [4, 72], strides = [1, 1]} : vector<20x72xf32> to vector<4x72xf32>
    %227 = tpu.concatenate %224, %225, %226 in 1 : vector<4x72xf32>, vector<4x72xf32>, vector<4x72xf32> -> vector<4x216xf32>
    %228 = arith.truncf %227 : vector<4x216xf32> to vector<4x216xbf16>
    %cst_116 = arith.constant dense<0.000000e+00> : vector<4x32xf32>
    %229 = tpu.matmul %228, %211, %cst_116 {dimension_numbers = #tpu.dot_dimension_numbers<[1], [0], [0], [1], [0, 0, 1, 1], [], []>} : vector<4x216xbf16>, vector<216x32xbf16>, vector<4x32xf32> -> vector<4x32xf32>
    %230 = vector.broadcast %213 : vector<1x32xf32> to vector<4x32xf32>
    %231 = arith.mulf %229, %230 : vector<4x32xf32>
    %232 = vector.broadcast %215 : vector<1x32xf32> to vector<4x32xf32>
    %233 = arith.addf %231, %232 : vector<4x32xf32>
    %c3_117 = arith.constant 3 : index
    %c0_118 = arith.constant 0 : index
    %c0_119 = arith.constant 0 : index
    %234 = vector.load %arg14[%c3_117, %c0_118, %c0_119] : memref<6x32x72xbf16, #tpu.memory_space<vmem>>, vector<1x32x72xbf16>
    %235 = vector.shape_cast %234 : vector<1x32x72xbf16> to vector<32x72xbf16>
    %c3_120 = arith.constant 3 : index
    %c0_121 = arith.constant 0 : index
    %c0_122 = arith.constant 0 : index
    %236 = vector.load %arg15[%c3_120, %c0_121, %c0_122] : memref<6x1x72xf32, #tpu.memory_space<vmem>>, vector<1x1x72xf32>
    %237 = vector.shape_cast %236 : vector<1x1x72xf32> to vector<1x72xf32>
    %c3_123 = arith.constant 3 : index
    %c0_124 = arith.constant 0 : index
    %c0_125 = arith.constant 0 : index
    %238 = vector.load %arg16[%c3_123, %c0_124, %c0_125] : memref<6x1x72xf32, #tpu.memory_space<vmem>>, vector<1x1x72xf32>
    %239 = vector.shape_cast %238 : vector<1x1x72xf32> to vector<1x72xf32>
    %cst_126 = arith.constant -1.702000e+00 : f32
    %240 = vector.broadcast %cst_126 : f32 to vector<4x32xf32>
    %241 = arith.mulf %240, %233 : vector<4x32xf32>
    %242 = math.exp %241 : vector<4x32xf32>
    %cst_127 = arith.constant 1.000000e+00 : f32
    %243 = vector.broadcast %cst_127 : f32 to vector<4x32xf32>
    %244 = arith.addf %243, %242 : vector<4x32xf32>
    %245 = arith.divf %233, %244 : vector<4x32xf32>
    %246 = arith.truncf %245 : vector<4x32xf32> to vector<4x32xbf16>
    %cst_128 = arith.constant dense<0.000000e+00> : vector<4x72xf32>
    %247 = tpu.matmul %246, %235, %cst_128 {dimension_numbers = #tpu.dot_dimension_numbers<[1], [0], [0], [1], [0, 0, 1, 1], [], []>} : vector<4x32xbf16>, vector<32x72xbf16>, vector<4x72xf32> -> vector<4x72xf32>
    %248 = vector.broadcast %237 : vector<1x72xf32> to vector<4x72xf32>
    %249 = arith.mulf %247, %248 : vector<4x72xf32>
    %250 = vector.broadcast %239 : vector<1x72xf32> to vector<4x72xf32>
    %251 = arith.addf %249, %250 : vector<4x72xf32>
    %252 = arith.addf %209, %251 : vector<4x72xf32>
    %c4 = arith.constant 4 : index
    %c0_129 = arith.constant 0 : index
    %c0_130 = arith.constant 0 : index
    %253 = vector.load %arg11[%c4, %c0_129, %c0_130] : memref<6x216x32xbf16, #tpu.memory_space<vmem>>, vector<1x216x32xbf16>
    %254 = vector.shape_cast %253 : vector<1x216x32xbf16> to vector<216x32xbf16>
    %c4_131 = arith.constant 4 : index
    %c0_132 = arith.constant 0 : index
    %c0_133 = arith.constant 0 : index
    %255 = vector.load %arg12[%c4_131, %c0_132, %c0_133] : memref<6x1x32xf32, #tpu.memory_space<vmem>>, vector<1x1x32xf32>
    %256 = vector.shape_cast %255 : vector<1x1x32xf32> to vector<1x32xf32>
    %c4_134 = arith.constant 4 : index
    %c0_135 = arith.constant 0 : index
    %c0_136 = arith.constant 0 : index
    %257 = vector.load %arg13[%c4_134, %c0_135, %c0_136] : memref<6x1x32xf32, #tpu.memory_space<vmem>>, vector<1x1x32xf32>
    %258 = vector.shape_cast %257 : vector<1x1x32xf32> to vector<1x32xf32>
    %cst_137 = arith.constant -1.702000e+00 : f32
    %259 = vector.broadcast %cst_137 : f32 to vector<4x72xf32>
    %260 = arith.mulf %259, %81 : vector<4x72xf32>
    %261 = math.exp %260 : vector<4x72xf32>
    %cst_138 = arith.constant 1.000000e+00 : f32
    %262 = vector.broadcast %cst_138 : f32 to vector<4x72xf32>
    %263 = arith.addf %262, %261 : vector<4x72xf32>
    %264 = arith.divf %81, %263 : vector<4x72xf32>
    %cst_139 = arith.constant 0.000000e+00 : f32
    %265 = vector.broadcast %cst_139 : f32 to vector<16x72xf32>
    %266 = tpu.concatenate %265, %264, %265 in 0 : vector<16x72xf32>, vector<4x72xf32>, vector<16x72xf32> -> vector<36x72xf32>
    %267 = vector.extract_strided_slice %266 {offsets = [0, 0], sizes = [4, 72], strides = [1, 1]} : vector<36x72xf32> to vector<4x72xf32>
    %268 = vector.extract_strided_slice %266 {offsets = [16, 0], sizes = [4, 72], strides = [1, 1]} : vector<36x72xf32> to vector<4x72xf32>
    %269 = vector.extract_strided_slice %266 {offsets = [32, 0], sizes = [4, 72], strides = [1, 1]} : vector<36x72xf32> to vector<4x72xf32>
    %270 = tpu.concatenate %267, %268, %269 in 1 : vector<4x72xf32>, vector<4x72xf32>, vector<4x72xf32> -> vector<4x216xf32>
    %271 = arith.truncf %270 : vector<4x216xf32> to vector<4x216xbf16>
    %cst_140 = arith.constant dense<0.000000e+00> : vector<4x32xf32>
    %272 = tpu.matmul %271, %254, %cst_140 {dimension_numbers = #tpu.dot_dimension_numbers<[1], [0], [0], [1], [0, 0, 1, 1], [], []>} : vector<4x216xbf16>, vector<216x32xbf16>, vector<4x32xf32> -> vector<4x32xf32>
    %273 = vector.broadcast %256 : vector<1x32xf32> to vector<4x32xf32>
    %274 = arith.mulf %272, %273 : vector<4x32xf32>
    %275 = vector.broadcast %258 : vector<1x32xf32> to vector<4x32xf32>
    %276 = arith.addf %274, %275 : vector<4x32xf32>
    %c4_141 = arith.constant 4 : index
    %c0_142 = arith.constant 0 : index
    %c0_143 = arith.constant 0 : index
    %277 = vector.load %arg14[%c4_141, %c0_142, %c0_143] : memref<6x32x72xbf16, #tpu.memory_space<vmem>>, vector<1x32x72xbf16>
    %278 = vector.shape_cast %277 : vector<1x32x72xbf16> to vector<32x72xbf16>
    %c4_144 = arith.constant 4 : index
    %c0_145 = arith.constant 0 : index
    %c0_146 = arith.constant 0 : index
    %279 = vector.load %arg15[%c4_144, %c0_145, %c0_146] : memref<6x1x72xf32, #tpu.memory_space<vmem>>, vector<1x1x72xf32>
    %280 = vector.shape_cast %279 : vector<1x1x72xf32> to vector<1x72xf32>
    %c4_147 = arith.constant 4 : index
    %c0_148 = arith.constant 0 : index
    %c0_149 = arith.constant 0 : index
    %281 = vector.load %arg16[%c4_147, %c0_148, %c0_149] : memref<6x1x72xf32, #tpu.memory_space<vmem>>, vector<1x1x72xf32>
    %282 = vector.shape_cast %281 : vector<1x1x72xf32> to vector<1x72xf32>
    %cst_150 = arith.constant -1.702000e+00 : f32
    %283 = vector.broadcast %cst_150 : f32 to vector<4x32xf32>
    %284 = arith.mulf %283, %276 : vector<4x32xf32>
    %285 = math.exp %284 : vector<4x32xf32>
    %cst_151 = arith.constant 1.000000e+00 : f32
    %286 = vector.broadcast %cst_151 : f32 to vector<4x32xf32>
    %287 = arith.addf %286, %285 : vector<4x32xf32>
    %288 = arith.divf %276, %287 : vector<4x32xf32>
    %289 = arith.truncf %288 : vector<4x32xf32> to vector<4x32xbf16>
    %cst_152 = arith.constant dense<0.000000e+00> : vector<4x72xf32>
    %290 = tpu.matmul %289, %278, %cst_152 {dimension_numbers = #tpu.dot_dimension_numbers<[1], [0], [0], [1], [0, 0, 1, 1], [], []>} : vector<4x32xbf16>, vector<32x72xbf16>, vector<4x72xf32> -> vector<4x72xf32>
    %291 = vector.broadcast %280 : vector<1x72xf32> to vector<4x72xf32>
    %292 = arith.mulf %290, %291 : vector<4x72xf32>
    %293 = vector.broadcast %282 : vector<1x72xf32> to vector<4x72xf32>
    %294 = arith.addf %292, %293 : vector<4x72xf32>
    %295 = arith.addf %252, %294 : vector<4x72xf32>
    %c5 = arith.constant 5 : index
    %c0_153 = arith.constant 0 : index
    %c0_154 = arith.constant 0 : index
    %296 = vector.load %arg11[%c5, %c0_153, %c0_154] : memref<6x216x32xbf16, #tpu.memory_space<vmem>>, vector<1x216x32xbf16>
    %297 = vector.shape_cast %296 : vector<1x216x32xbf16> to vector<216x32xbf16>
    %c5_155 = arith.constant 5 : index
    %c0_156 = arith.constant 0 : index
    %c0_157 = arith.constant 0 : index
    %298 = vector.load %arg12[%c5_155, %c0_156, %c0_157] : memref<6x1x32xf32, #tpu.memory_space<vmem>>, vector<1x1x32xf32>
    %299 = vector.shape_cast %298 : vector<1x1x32xf32> to vector<1x32xf32>
    %c5_158 = arith.constant 5 : index
    %c0_159 = arith.constant 0 : index
    %c0_160 = arith.constant 0 : index
    %300 = vector.load %arg13[%c5_158, %c0_159, %c0_160] : memref<6x1x32xf32, #tpu.memory_space<vmem>>, vector<1x1x32xf32>
    %301 = vector.shape_cast %300 : vector<1x1x32xf32> to vector<1x32xf32>
    %cst_161 = arith.constant -1.702000e+00 : f32
    %302 = vector.broadcast %cst_161 : f32 to vector<4x72xf32>
    %303 = arith.mulf %302, %81 : vector<4x72xf32>
    %304 = math.exp %303 : vector<4x72xf32>
    %cst_162 = arith.constant 1.000000e+00 : f32
    %305 = vector.broadcast %cst_162 : f32 to vector<4x72xf32>
    %306 = arith.addf %305, %304 : vector<4x72xf32>
    %307 = arith.divf %81, %306 : vector<4x72xf32>
    %cst_163 = arith.constant 0.000000e+00 : f32
    %308 = vector.broadcast %cst_163 : f32 to vector<32x72xf32>
    %309 = tpu.concatenate %308, %307, %308 in 0 : vector<32x72xf32>, vector<4x72xf32>, vector<32x72xf32> -> vector<68x72xf32>
    %310 = vector.extract_strided_slice %309 {offsets = [0, 0], sizes = [4, 72], strides = [1, 1]} : vector<68x72xf32> to vector<4x72xf32>
    %311 = vector.extract_strided_slice %309 {offsets = [32, 0], sizes = [4, 72], strides = [1, 1]} : vector<68x72xf32> to vector<4x72xf32>
    %312 = vector.extract_strided_slice %309 {offsets = [64, 0], sizes = [4, 72], strides = [1, 1]} : vector<68x72xf32> to vector<4x72xf32>
    %313 = tpu.concatenate %310, %311, %312 in 1 : vector<4x72xf32>, vector<4x72xf32>, vector<4x72xf32> -> vector<4x216xf32>
    %314 = arith.truncf %313 : vector<4x216xf32> to vector<4x216xbf16>
    %cst_164 = arith.constant dense<0.000000e+00> : vector<4x32xf32>
    %315 = tpu.matmul %314, %297, %cst_164 {dimension_numbers = #tpu.dot_dimension_numbers<[1], [0], [0], [1], [0, 0, 1, 1], [], []>} : vector<4x216xbf16>, vector<216x32xbf16>, vector<4x32xf32> -> vector<4x32xf32>
    %316 = vector.broadcast %299 : vector<1x32xf32> to vector<4x32xf32>
    %317 = arith.mulf %315, %316 : vector<4x32xf32>
    %318 = vector.broadcast %301 : vector<1x32xf32> to vector<4x32xf32>
    %319 = arith.addf %317, %318 : vector<4x32xf32>
    %c5_165 = arith.constant 5 : index
    %c0_166 = arith.constant 0 : index
    %c0_167 = arith.constant 0 : index
    %320 = vector.load %arg14[%c5_165, %c0_166, %c0_167] : memref<6x32x72xbf16, #tpu.memory_space<vmem>>, vector<1x32x72xbf16>
    %321 = vector.shape_cast %320 : vector<1x32x72xbf16> to vector<32x72xbf16>
    %c5_168 = arith.constant 5 : index
    %c0_169 = arith.constant 0 : index
    %c0_170 = arith.constant 0 : index
    %322 = vector.load %arg15[%c5_168, %c0_169, %c0_170] : memref<6x1x72xf32, #tpu.memory_space<vmem>>, vector<1x1x72xf32>
    %323 = vector.shape_cast %322 : vector<1x1x72xf32> to vector<1x72xf32>
    %c5_171 = arith.constant 5 : index
    %c0_172 = arith.constant 0 : index
    %c0_173 = arith.constant 0 : index
    %324 = vector.load %arg16[%c5_171, %c0_172, %c0_173] : memref<6x1x72xf32, #tpu.memory_space<vmem>>, vector<1x1x72xf32>
    %325 = vector.shape_cast %324 : vector<1x1x72xf32> to vector<1x72xf32>
    %cst_174 = arith.constant -1.702000e+00 : f32
    %326 = vector.broadcast %cst_174 : f32 to vector<4x32xf32>
    %327 = arith.mulf %326, %319 : vector<4x32xf32>
    %328 = math.exp %327 : vector<4x32xf32>
    %cst_175 = arith.constant 1.000000e+00 : f32
    %329 = vector.broadcast %cst_175 : f32 to vector<4x32xf32>
    %330 = arith.addf %329, %328 : vector<4x32xf32>
    %331 = arith.divf %319, %330 : vector<4x32xf32>
    %332 = arith.truncf %331 : vector<4x32xf32> to vector<4x32xbf16>
    %cst_176 = arith.constant dense<0.000000e+00> : vector<4x72xf32>
    %333 = tpu.matmul %332, %321, %cst_176 {dimension_numbers = #tpu.dot_dimension_numbers<[1], [0], [0], [1], [0, 0, 1, 1], [], []>} : vector<4x32xbf16>, vector<32x72xbf16>, vector<4x72xf32> -> vector<4x72xf32>
    %334 = vector.broadcast %323 : vector<1x72xf32> to vector<4x72xf32>
    %335 = arith.mulf %333, %334 : vector<4x72xf32>
    %336 = vector.broadcast %325 : vector<1x72xf32> to vector<4x72xf32>
    %337 = arith.addf %335, %336 : vector<4x72xf32>
    %338 = arith.addf %295, %337 : vector<4x72xf32>
    %cst_177 = arith.constant -1.702000e+00 : f32
    %339 = vector.broadcast %cst_177 : f32 to vector<4x72xf32>
    %340 = arith.mulf %339, %338 : vector<4x72xf32>
    %341 = math.exp %340 : vector<4x72xf32>
    %cst_178 = arith.constant 1.000000e+00 : f32
    %342 = vector.broadcast %cst_178 : f32 to vector<4x72xf32>
    %343 = arith.addf %342, %341 : vector<4x72xf32>
    %344 = arith.divf %338, %343 : vector<4x72xf32>
    %c0_179 = arith.constant 0 : index
    %c0_180 = arith.constant 0 : index
    %345 = vector.load %arg17[%c0_179, %c0_180] : memref<72x64xbf16, #tpu.memory_space<vmem>>, vector<72x64xbf16>
    %346 = arith.truncf %344 : vector<4x72xf32> to vector<4x72xbf16>
    %cst_181 = arith.constant dense<0.000000e+00> : vector<4x64xf32>
    %347 = tpu.matmul %346, %345, %cst_181 {dimension_numbers = #tpu.dot_dimension_numbers<[1], [0], [0], [1], [0, 0, 1, 1], [], []>} : vector<4x72xbf16>, vector<72x64xbf16>, vector<4x64xf32> -> vector<4x64xf32>
    %c0_182 = arith.constant 0 : index
    %c0_183 = arith.constant 0 : index
    %348 = vector.load %arg18[%c0_182, %c0_183] : memref<1x64xf32, #tpu.memory_space<vmem>>, vector<1x64xf32>
    %349 = vector.broadcast %348 : vector<1x64xf32> to vector<4x64xf32>
    %350 = arith.mulf %347, %349 : vector<4x64xf32>
    %c0_184 = arith.constant 0 : index
    %c0_185 = arith.constant 0 : index
    %351 = vector.load %arg19[%c0_184, %c0_185] : memref<1x64xf32, #tpu.memory_space<vmem>>, vector<1x64xf32>
    %352 = vector.broadcast %351 : vector<1x64xf32> to vector<4x64xf32>
    %353 = arith.addf %350, %352 : vector<4x64xf32>
    %cst_186 = arith.constant -1.702000e+00 : f32
    %354 = vector.broadcast %cst_186 : f32 to vector<4x64xf32>
    %355 = arith.mulf %354, %353 : vector<4x64xf32>
    %356 = math.exp %355 : vector<4x64xf32>
    %cst_187 = arith.constant 1.000000e+00 : f32
    %357 = vector.broadcast %cst_187 : f32 to vector<4x64xf32>
    %358 = arith.addf %357, %356 : vector<4x64xf32>
    %359 = arith.divf %353, %358 : vector<4x64xf32>
    %c0_188 = arith.constant 0 : index
    %c0_189 = arith.constant 0 : index
    %360 = vector.load %arg20[%c0_188, %c0_189] : memref<64x8xbf16, #tpu.memory_space<vmem>>, vector<64x8xbf16>
    %361 = arith.truncf %359 : vector<4x64xf32> to vector<4x64xbf16>
    %cst_190 = arith.constant dense<0.000000e+00> : vector<4x8xf32>
    %362 = tpu.matmul %361, %360, %cst_190 {dimension_numbers = #tpu.dot_dimension_numbers<[1], [0], [0], [1], [0, 0, 1, 1], [], []>} : vector<4x64xbf16>, vector<64x8xbf16>, vector<4x8xf32> -> vector<4x8xf32>
    %c0_191 = arith.constant 0 : index
    %c0_192 = arith.constant 0 : index
    %363 = vector.load %arg21[%c0_191, %c0_192] : memref<1x8xf32, #tpu.memory_space<vmem>>, vector<1x8xf32>
    %364 = vector.broadcast %363 : vector<1x8xf32> to vector<4x8xf32>
    %365 = arith.addf %362, %364 : vector<4x8xf32>
    %366 = math.absf %365 : vector<4x8xf32>
    %cst_193 = arith.constant 0.000000e+00 : f32
    %367 = vector.broadcast %cst_193 : f32 to vector<4x8xf32>
    %368 = arith.subf %367, %366 : vector<4x8xf32>
    %369 = math.exp %368 : vector<4x8xf32>
    %cst_194 = arith.constant 1.000000e+00 : f32
    %370 = vector.broadcast %cst_194 : f32 to vector<4x8xf32>
    %371 = arith.addf %370, %369 : vector<4x8xf32>
    %372 = math.log %371 : vector<4x8xf32>
    %cst_195 = arith.constant 0.000000e+00 : f32
    %373 = vector.broadcast %cst_195 : f32 to vector<4x8xf32>
    %374 = arith.maximumf %365, %373 : vector<4x8xf32>
    %375 = arith.addf %372, %374 : vector<4x8xf32>
    %cst_196 = arith.constant 1.000000e+03 : f32
    %376 = vector.broadcast %cst_196 : f32 to vector<4x8xf32>
    %377 = arith.cmpf ogt, %365, %376 : vector<4x8xf32>
    %378 = arith.select %377, %365, %375 : vector<4x8xi1>, vector<4x8xf32>
    %c0_197 = arith.constant 0 : index
    %c0_198 = arith.constant 0 : index
    %c0_199 = arith.constant 0 : index
    %379 = vector.load %arg22[%c0_197, %c0_198, %c0_199] : memref<1x4x8xf32, #tpu.memory_space<vmem>>, vector<1x4x8xf32>
    %380 = vector.shape_cast %379 : vector<1x4x8xf32> to vector<4x8xf32>
    %381 = vector.shape_cast %378 : vector<4x8xf32> to vector<1x4x8xf32>
    tpu.vector_store %arg22[%c0_197, %c0_198, %c0_199], %381 {strides = array<i32>} : memref<1x4x8xf32, #tpu.memory_space<vmem>>, vector<1x4x8xf32>,
    return
  }
  func.func @transform_0(%arg0: i32) -> (i32, i32, i32) {
    %c0_i32 = arith.constant 0 : i32
    %c0_i32_0 = arith.constant 0 : i32
    %c0_i32_1 = arith.constant 0 : i32
    return %arg0, %c0_i32, %c0_i32_0 : i32, i32, i32
  }
  func.func @transform_1(%arg0: i32) -> (i32, i32) {
    %c0_i32 = arith.constant 0 : i32
    %c0_i32_0 = arith.constant 0 : i32
    %c0_i32_1 = arith.constant 0 : i32
    return %c0_i32, %c0_i32_0 : i32, i32
  }
  func.func @transform_2(%arg0: i32) -> (i32, i32) {
    %c0_i32 = arith.constant 0 : i32
    %c0_i32_0 = arith.constant 0 : i32
    %c0_i32_1 = arith.constant 0 : i32
    return %c0_i32, %c0_i32_0 : i32, i32
  }
  func.func @transform_3(%arg0: i32) -> (i32, i32) {
    %c0_i32 = arith.constant 0 : i32
    %c0_i32_0 = arith.constant 0 : i32
    %c0_i32_1 = arith.constant 0 : i32
    return %c0_i32, %c0_i32_0 : i32, i32
  }
  func.func @transform_4(%arg0: i32) -> (i32, i32) {
    %c0_i32 = arith.constant 0 : i32
    %c0_i32_0 = arith.constant 0 : i32
    %c0_i32_1 = arith.constant 0 : i32
    return %c0_i32, %c0_i32_0 : i32, i32
  }
  func.func @transform_5(%arg0: i32) -> (i32, i32) {
    %c0_i32 = arith.constant 0 : i32
    %c0_i32_0 = arith.constant 0 : i32
    %c0_i32_1 = arith.constant 0 : i32
    return %c0_i32, %c0_i32_0 : i32, i32
  }
  func.func @transform_6(%arg0: i32) -> (i32, i32) {
    %c0_i32 = arith.constant 0 : i32
    %c0_i32_0 = arith.constant 0 : i32
    %c0_i32_1 = arith.constant 0 : i32
    return %c0_i32, %c0_i32_0 : i32, i32
  }
  func.func @transform_7(%arg0: i32) -> (i32, i32) {
    %c0_i32 = arith.constant 0 : i32
    %c0_i32_0 = arith.constant 0 : i32
    %c0_i32_1 = arith.constant 0 : i32
    return %c0_i32, %c0_i32_0 : i32, i32
  }
  func.func @transform_8(%arg0: i32) -> (i32, i32) {
    %c0_i32 = arith.constant 0 : i32
    %c0_i32_0 = arith.constant 0 : i32
    %c0_i32_1 = arith.constant 0 : i32
    return %c0_i32, %c0_i32_0 : i32, i32
  }
  func.func @transform_9(%arg0: i32) -> (i32, i32) {
    %c0_i32 = arith.constant 0 : i32
    %c0_i32_0 = arith.constant 0 : i32
    %c0_i32_1 = arith.constant 0 : i32
    return %c0_i32, %c0_i32_0 : i32, i32
  }
  func.func @transform_10(%arg0: i32) -> (i32, i32, i32) {
    %c0_i32 = arith.constant 0 : i32
    %c0_i32_0 = arith.constant 0 : i32
    %c0_i32_1 = arith.constant 0 : i32
    %c0_i32_2 = arith.constant 0 : i32
    return %c0_i32, %c0_i32_0, %c0_i32_1 : i32, i32, i32
  }
  func.func @transform_11(%arg0: i32) -> (i32, i32, i32) {
    %c0_i32 = arith.constant 0 : i32
    %c0_i32_0 = arith.constant 0 : i32
    %c0_i32_1 = arith.constant 0 : i32
    %c0_i32_2 = arith.constant 0 : i32
    return %c0_i32, %c0_i32_0, %c0_i32_1 : i32, i32, i32
  }
  func.func @transform_12(%arg0: i32) -> (i32, i32, i32) {
    %c0_i32 = arith.constant 0 : i32
    %c0_i32_0 = arith.constant 0 : i32
    %c0_i32_1 = arith.constant 0 : i32
    %c0_i32_2 = arith.constant 0 : i32
    return %c0_i32, %c0_i32_0, %c0_i32_1 : i32, i32, i32
  }
  func.func @transform_13(%arg0: i32) -> (i32, i32, i32) {
    %c0_i32 = arith.constant 0 : i32
    %c0_i32_0 = arith.constant 0 : i32
    %c0_i32_1 = arith.constant 0 : i32
    %c0_i32_2 = arith.constant 0 : i32
    return %c0_i32, %c0_i32_0, %c0_i32_1 : i32, i32, i32
  }
  func.func @transform_14(%arg0: i32) -> (i32, i32, i32) {
    %c0_i32 = arith.constant 0 : i32
    %c0_i32_0 = arith.constant 0 : i32
    %c0_i32_1 = arith.constant 0 : i32
    %c0_i32_2 = arith.constant 0 : i32
    return %c0_i32, %c0_i32_0, %c0_i32_1 : i32, i32, i32
  }
  func.func @transform_15(%arg0: i32) -> (i32, i32, i32) {
    %c0_i32 = arith.constant 0 : i32
    %c0_i32_0 = arith.constant 0 : i32
    %c0_i32_1 = arith.constant 0 : i32
    %c0_i32_2 = arith.constant 0 : i32
    return %c0_i32, %c0_i32_0, %c0_i32_1 : i32, i32, i32
  }
  func.func @transform_16(%arg0: i32) -> (i32, i32) {
    %c0_i32 = arith.constant 0 : i32
    %c0_i32_0 = arith.constant 0 : i32
    %c0_i32_1 = arith.constant 0 : i32
    return %c0_i32, %c0_i32_0 : i32, i32
  }
  func.func @transform_17(%arg0: i32) -> (i32, i32) {
    %c0_i32 = arith.constant 0 : i32
    %c0_i32_0 = arith.constant 0 : i32
    %c0_i32_1 = arith.constant 0 : i32
    return %c0_i32, %c0_i32_0 : i32, i32
  }
  func.func @transform_18(%arg0: i32) -> (i32, i32) {
    %c0_i32 = arith.constant 0 : i32
    %c0_i32_0 = arith.constant 0 : i32
    %c0_i32_1 = arith.constant 0 : i32
    return %c0_i32, %c0_i32_0 : i32, i32
  }
  func.func @transform_19(%arg0: i32) -> (i32, i32) {
    %c0_i32 = arith.constant 0 : i32
    %c0_i32_0 = arith.constant 0 : i32
    %c0_i32_1 = arith.constant 0 : i32
    return %c0_i32, %c0_i32_0 : i32, i32
  }
  func.func @transform_20(%arg0: i32) -> (i32, i32) {
    %c0_i32 = arith.constant 0 : i32
    %c0_i32_0 = arith.constant 0 : i32
    %c0_i32_1 = arith.constant 0 : i32
    return %c0_i32, %c0_i32_0 : i32, i32
  }
  func.func @transform_21(%arg0: i32) -> (i32, i32, i32) {
    %c0_i32 = arith.constant 0 : i32
    %c0_i32_0 = arith.constant 0 : i32
    %c0_i32_1 = arith.constant 0 : i32
    return %arg0, %c0_i32, %c0_i32_0 : i32, i32, i32
  }
}

</mosaic_0001>

<bundles_post_ra>
// kernel: basenji_forward.1
= control target key start
LH: loop header
LB: loop body
LE: loop exit
PB: predicated region body
PF: predicated region fallthrough
CT: control target
= control target key end

     0   :  { %s8323_s0 = inlined_call_operand.vmem [shape: f32[2,512,60], index: 0, kind: input, shape index: {}]   ;;  %s8324_s1 = inlined_call_operand.vmem [shape: bf16[60,64], index: 1, kind: input, shape index: {}]   ;;  %s8325_s2 = inlined_call_operand.vmem [shape: f32[1,64], index: 2, kind: input, shape index: {}]   ;;  %s8326_s3 = inlined_call_operand.vmem [shape: f32[1,64], index: 3, kind: input, shape index: {}]   ;;  %s8327_s4 = inlined_call_operand.vmem [shape: bf16[320,64], index: 4, kind: input, shape index: {}]   ;;  %s8328_s5 = inlined_call_operand.vmem [shape: f32[1,64], index: 5, kind: input, shape index: {}]   ;;  %s8329_s6 = inlined_call_operand.vmem [shape: f32[1,64], index: 6, kind: input, shape index: {}]   ;;  %s8330_s7 = inlined_call_operand.vmem [shape: bf16[320,72], index: 7, kind: input, shape index: {}]   ;;  %s8331_s8 = inlined_call_operand.vmem [shape: f32[1,72], index: 8, kind: input, shape index: {}]   ;;  %s8332_s9 = inlined_call_operand.vmem [shape: f32[1,72], index: 9, kind: input, shape index: {}]   ;;  %s8333_s10 = inlined_call_operand.vmem [shape: bf16[6,216,32], index: 10, kind: input, shape index: {}]   ;;  %s8334_s11 = inlined_call_operand.vmem [shape: f32[6,1,32], index: 11, kind: input, shape index: {}]   ;;  %s8335_s12 = inlined_call_operand.vmem [shape: f32[6,1,32], index: 12, kind: input, shape index: {}]   ;;  %s8336_s13 = inlined_call_operand.vmem [shape: bf16[6,32,72], index: 13, kind: input, shape index: {}]   ;;  %s8337_s14 = inlined_call_operand.vmem [shape: f32[6,1,72], index: 14, kind: input, shape index: {}]   ;;  %s8338_s15 = inlined_call_operand.vmem [shape: f32[6,1,72], index: 15, kind: input, shape index: {}]   ;;  %s8339_s16 = inlined_call_operand.vmem [shape: bf16[72,64], index: 16, kind: input, shape index: {}]   ;;  %s8340_s17 = inlined_call_operand.vmem [shape: f32[1,64], index: 17, kind: input, shape index: {}]   ;;  %s8341_s18 = inlined_call_operand.vmem [shape: f32[1,64], index: 18, kind: input, shape index: {}]   ;;  %s8342_s19 = inlined_call_operand.vmem [shape: bf16[64,8], index: 19, kind: input, shape index: {}]   ;;  %s8343_s20 = inlined_call_operand.vmem [shape: f32[1,8], index: 20, kind: input, shape index: {}]   ;;  %s8344_s21 = inlined_call_operand.hbm [shape: f32[2,4,8], index: 21, kind: output, shape index: {}]  }
   0x1   :  { %8376 = sst [smem:[#allocation32_spill]] %s8323_s0 }
   0x2   :  { %8377 = sst [smem:[#allocation33_spill]] %s8324_s1 }
   0x3   :  { %8378 = sst [smem:[#allocation34_spill]] %s8325_s2 }
   0x4   :  { %8379 = sst [smem:[#allocation35_spill]] %s8326_s3 }
   0x5   :  { %8380 = sst [smem:[#allocation36_spill]] %s8327_s4 }
   0x6   :  { %8381 = sst [smem:[#allocation37_spill]] %s8328_s5 }
   0x7   :  { %8382 = sst [smem:[#allocation38_spill]] %s8329_s6 }
   0x8   :  { %8383 = sst [smem:[#allocation39_spill]] %s8330_s7 }
   0x9   :  { %26 = vsyncpa [#allocation3], 0 }
   0xa   :  { %28 = vsyncpa [#allocation3 + $0x1], 0  ;;  %s6466_s2 = smov 0   ;;  %s6468_s25 = smov 0  }
   0xb   :  { %s6470_s26 = smov 0   ;;  %s6472_s27 = smov 0  }
   0xc LB: > { %8384 = sst [smem:[#allocation5_spill]] %s6335_s2  ;;  %s6487_s3 = sadd.s32 4294967295, %s6347_s27   ;;  %s6347_s27 = sphi %s6472_s27, %s8449_s27   ;;  %s6343_s26 = sphi %s6470_s26, %s8451_s26   ;;  %s6339_s25 = sphi %s6468_s25, %s8453_s25   ;;  %s6335_s2 = sphi %s6466_s2, %s8452_s2  }
   0xd   : > { %8385 = sst [smem:[#allocation6_spill]] %s6343_s26  ;;  %s4877_s28 = sadd.s32 4294967294, %s6347_s27  }
   0xe   : > { %s6491_s29 = sadd.s32 1, %s6347_s27   ;;  %s487_s0 = sadd.s32 1, %s6343_s26 }
   0xf   : > { %8386 = sst [smem:[#allocation7_spill]] %s6491_s29  ;;  %s484_s4 = ssub.s32 %s6347_s27, %s6491_s29 }
  0x10   : > { %p497_p0 = scmp.ne.s32.totalorder %s6343_s26, %s6339_s25  ;;  %p485_p1 = scmp.eq.s32.totalorder %s484_s4, 0 }
  0x11   : > { %p498_p2 = scmp.eq.s32.totalorder %s6487_s3, 1  ;;  %p503_p3 = scmp.ne.s32.totalorder %s6339_s25, %s6335_s2 }
  0x12   : > { %p504_p4 = scmp.eq.s32.totalorder %s4877_s28, 1  ;;  %p4880_p7 = scmp.ge.s32.totalorder %s6347_s27, 1 }
  0x13   : > { %s6502_s30 = scalar_select %p485_p1, %s6343_s26, %s487_s0  }
  0x14   : > { %p6504_p5 = por %p498_p2, %p497_p0  ;;  %p6508_p6 = por %p504_p4, %p503_p3 }
  0x15   : > { %8387 = sst [smem:[#allocation8_spill]] %s6502_s30  ;;  %p590_p8 = scmp.lt.s32.totalorder %s6347_s27, 3 }
  0x16   : > { %s8389_s22 = scalar_select %p6508_p6, 1, 0 }
  0x17   : > { %p591_p9 = pnand %p4880_p7, %p590_p8 }
  0x18   : > { %8390 = sst [smem:[#allocation9_spill]] %s8389_s22 }
  0x19   : > { %594 = sbr.rel (%p591_p9) target bundleno = 3536 (0xdd0), region = 104 }
  0x1e   : > { %s8391_s24 = sld [smem:[#allocation33_spill]]  ;;  %vm1264_vm0 = vcmask 1045504   ;;  %p650_p10 = scmp.lt.s32.totalorder %s6487_s3, 1  ;;  %vm1167_vm1 = vcmask 490496   ;;  %vm1853_vm2 = vcmask 1042432   ;;  %vm1949_vm3 = vcmask 1044480  }
  0x1f   : > { %s8392_s22 = sld [smem:[#allocation32_spill]]  ;;  %vm1882_vm4 = vcmask 1046528   ;;  %vm2017_vm5 = vcmask 523264   ;;  %vm1991_vm6 = vcmask 1043456   ;;  %vm2360_vm7 = vcmask 519168   ;;  %s6354_s26 = smov 72  }
  0x20   : > { %s651_s23 = scalar_select %p650_p10, %s6487_s3, 1  ;;  %vm2627_vm8 = vcmask 1044484   ;;  %vm2635_vm9 = vcmask 1041409   ;;  %vm2629_vm10 = vcmask 1045509   ;;  %vm2637_vm11 = vcmask 1042434  }
  0x21   : > { %s8438_s30 = sld [smem:[#allocation34_spill]]  ;;  %vm2631_vm12 = vcmask 1046534   ;;  %vm2639_vm13 = vcmask 1043459   ;;  %vm2633_vm14 = vcmask 1047559   ;;  %vm6351_vm15 = vmmov 0  }
  0x22   : > { %s5311_s29 = sshll.u32 %s651_s23, 9  ;;  %s8439_s4 = sld [smem:[#allocation35_spill]] }
  0x23   : > { %s8440_s28 = sld [smem:[#allocation36_spill]]  ;;  %s5308_s23 = sshll.u32 %s6487_s3, 6 }
  0x24   : > { %v5722_v0 = vld [vmem:[%s8391_s24 + $0x18] sm:$0x3f]   ;;  %v5723_v1 = vld [vmem:[%s8391_s24 + $0x10] sm:$0xff]   ;;  %v5724_v3 = vld [vmem:[%s8391_s24 + $0x8] sm:$0xff]   ;;  %s8441_s7 = sld [smem:[#allocation39_spill]]  ;;  %s6355_s3 = smov [#allocation2]  }
  0x25   : > { %5626 = vmatprep.subr.msk.bf16.mxu0 %vm1264_vm0, %v5722_v0  ;;  %v1266_v2 = vsel %vm1264_vm0, %v5722_v0, 0  ;;  %v5725_v4 = vld [vmem:[%s8391_s24] sm:$0xff]   ;;  %s6533_s2 = scalar_lea.vmem %s8392_s22, %s5311_s29  ;;  %s8374_s22 = smov 64  }
  0x26   : > { %5453 = vmatpush3.bf16.msra.mxu0 %v1266_v2  ;;  %v6536_v5 = vld [vmem:[%s6533_s2] sm:$0xff]  ;;  %v6539_v6 = vld [vmem:[%s6533_s2 + $0x8] sm:$0xff]  ;;  %v6542_v7 = vld [vmem:[%s6533_s2 + $0x10] sm:$0xff]  ;;  %s8443_s6 = sld [smem:[#allocation38_spill]]  ;;  %s8288_s29 = scalar_lea.hbm %s8344_s21, %s5308_s23 }
  0x27   : > { %5454 = vmatprep.subr.bf16.mxu0 %v5723_v1  ;;  %v720_v8 = vmul.f32 -1.702, %v6536_v5  ;;  %v721_v9 = vmul.f32 -1.702, %v6539_v6  ;;  %v6547_v10 = vld [vmem:[%s6533_s2 + $0x18] sm:$0xff]  ;;  %v6550_v11 = vld [vmem:[%s6533_s2 + $0x20] sm:$0xff] }
  0x28   : > { %v722_v12 = vmul.f32 -1.702, %v6542_v7  ;;  %v723_v13 = vmul.f32 -1.702, %v6547_v10  ;;  %v6555_v14 = vld [vmem:[%s6533_s2 + $0x28] sm:$0xff]  ;;  %v6558_v15 = vld [vmem:[%s6533_s2 + $0x30] sm:$0xff] }
  0x29   : > { %v784_v16 = vmul.f32 1.442695, %v720_v8  ;;  %v786_v17 = vmul.f32 1.442695, %v721_v9  ;;  %v724_v18 = vmul.f32 -1.702, %v6550_v11 }
  0x2a   : > { %5455 = vmatpush3.bf16.msra.mxu0 %v5723_v1  ;;  %v788_v19 = vmul.f32 1.442695, %v722_v12  ;;  %v790_v20 = vmul.f32 1.442695, %v723_v13  ;;  %v725_v21 = vmul.f32 -1.702, %v6555_v14 }
  0x2b   : > { %5456 = vmatprep.subr.bf16.mxu0 %v5724_v3  ;;  %5871 = vpow2.f32 %v784_v16  ;;  %v792_v22 = vmul.f32 1.442695, %v724_v18  ;;  %v6563_v23 = vld [vmem:[%s6533_s2 + $0x38] sm:$0xff]  ;;  %v726_v24 = vmul.f32 -1.702, %v6558_v15  ;;  %v6567_v25 = vld [vmem:[%s6533_s2 + $0x40] sm:$0xff] }
  0x2c   : > { %5873 = vpow2.f32 %v786_v17  ;;  %v794_v26 = vmul.f32 1.442695, %v725_v21  ;;  %v727_v27 = vmul.f32 -1.702, %v6563_v23  ;;  %v6571_v28 = vld [vmem:[%s6533_s2 + $0x48] sm:$0xff]  ;;  %v6574_v29 = vld [vmem:[%s6533_s2 + $0x50] sm:$0xff] }
  0x2d   : > { %5875 = vpow2.f32 %v788_v19  ;;  %v796_v30 = vmul.f32 1.442695, %v726_v24  ;;  %v728_v31 = vmul.f32 -1.702, %v6567_v25  ;;  %v729_v32 = vmul.f32 -1.702, %v6571_v28 }
  0x2e   : > { %5457 = vmatpush3.bf16.msra.mxu0 %v5724_v3  ;;  %5877 = vpow2.f32 %v790_v20  ;;  %v798_v33 = vmul.f32 1.442695, %v727_v27  ;;  %v6579_v34 = vld [vmem:[%s6533_s2 + $0x58] sm:$0xff]  ;;  %v730_v35 = vmul.f32 -1.702, %v6574_v29  ;;  %v6583_v36 = vld [vmem:[%s6533_s2 + $0x60] sm:$0xff] }
  0x2f   : > { %5458 = vmatprep.subr.bf16.mxu0 %v5725_v4  ;;  %5879 = vpow2.f32 %v792_v22  ;;  %v800_v37 = vmul.f32 1.442695, %v728_v31  ;;  %v802_v38 = vmul.f32 1.442695, %v729_v32  ;;  %v731_v39 = vmul.f32 -1.702, %v6579_v34 }
  0x30   : > { %5881 = vpow2.f32 %v794_v26  ;;  %v804_v40 = vmul.f32 1.442695, %v730_v35  ;;  %v6587_v41 = vld [vmem:[%s6533_s2 + $0x68] sm:$0xff]  ;;  %v732_v42 = vmul.f32 -1.702, %v6583_v36  ;;  %v6591_v43 = vld [vmem:[%s6533_s2 + $0x70] sm:$0xff] }
  0x31   : > { %5883 = vpow2.f32 %v796_v30  ;;  %v806_v44 = vmul.f32 1.442695, %v731_v39  ;;  %v733_v45 = vmul.f32 -1.702, %v6587_v41  ;;  %v6595_v46 = vld [vmem:[%s6533_s2 + $0x78] sm:$0xff]  ;;  %v6598_v47 = vld [vmem:[%s6533_s2 + $0x80] sm:$0xff] }
  0x32   : > { %5459 = vmatpush3.bf16.msra.mxu0 %v5725_v4  ;;  %5885 = vpow2.f32 %v798_v33  ;;  %v808_v48 = vmul.f32 1.442695, %v732_v42  ;;  %v734_v49 = vmul.f32 -1.702, %v6591_v43  ;;  %v735_v50 = vmul.f32 -1.702, %v6595_v46 }
  0x33   : > { %5887 = vpow2.f32 %v800_v37  ;;  %v810_v51 = vmul.f32 1.442695, %v733_v45  ;;  %v6603_v52 = vld [vmem:[%s6533_s2 + $0x88] sm:$0xff]  ;;  %v736_v53 = vmul.f32 -1.702, %v6598_v47  ;;  %v6607_v54 = vld [vmem:[%s6533_s2 + $0x90] sm:$0xff] }
  0x34   : > { %5889 = vpow2.f32 %v802_v38  ;;  %v812_v55 = vmul.f32 1.442695, %v734_v49  ;;  %v814_v56 = vmul.f32 1.442695, %v735_v50  ;;  %v737_v57 = vmul.f32 -1.702, %v6603_v52 }
  0x35   : > { %5891 = vpow2.f32 %v804_v40  ;;  %v6610_v58 = vmul.f32 1.442695, %v736_v53  ;;  %v6613_v59 = vld [vmem:[%s6533_s2 + $0x98] sm:$0xff]  ;;  %v738_v60 = vmul.f32 -1.702, %v6607_v54  ;;  %v6617_v61 = vld [vmem:[%s6533_s2 + $0xa0] sm:$0xff] }
  0x36   : > { %5893 = vpow2.f32 %v806_v44  ;;  %v6619_v62 = vmul.f32 1.442695, %v737_v57  ;;  %v739_v63 = vmul.f32 -1.702, %v6613_v59  ;;  %v6623_v0 = vld [vmem:[%s6533_s2 + $0xa8] sm:$0xff]  ;;  %v6626_v1 = vld [vmem:[%s6533_s2 + $0xb0] sm:$0xff] }
  0x37   : > { %5895 = vpow2.f32 %v808_v48  ;;  %v6628_v2 = vmul.f32 1.442695, %v738_v60  ;;  %v740_v3 = vmul.f32 -1.702, %v6617_v61  ;;  %v741_v4 = vmul.f32 -1.702, %v6623_v0 }
  0x38   : > { %v5872_v8 = vpop.eup %5871  ;;  %5897 = vpow2.f32 %v810_v51  ;;  %v6632_v9 = vmul.f32 1.442695, %v739_v63  ;;  %v6635_v12 = vld [vmem:[%s6533_s2 + $0xb8] sm:$0xff]  ;;  %v742_v13 = vmul.f32 -1.702, %v6626_v1  ;;  %v6639_v16 = vld [vmem:[%s6533_s2 + $0xc0] sm:$0xff] }
  0x39   : > { %v5874_v17 = vpop.eup %5873  ;;  %v912_v18 = vadd.f32 1.0, %v5872_v8  ;;  %5899 = vpow2.f32 %v812_v55  ;;  %v6641_v19 = vmul.f32 1.442695, %v740_v3  ;;  %v6643_v20 = vmul.f32 1.442695, %v741_v4  ;;  %v6646_v21 = vld [vmem:[%s6533_s2 + $0xc8] sm:$0xff] }
  0x3a   : > { %8393 = vst [vmem:[#allocation10_spill] sm:$0xff] %v6646_v21  ;;  %v5876_v22 = vpop.eup %5875  ;;  %v913_v24 = vadd.f32 1.0, %v5874_v17  ;;  %5901 = vpow2.f32 %v814_v56  ;;  %v743_v26 = vmul.f32 -1.702, %v6635_v12  ;;  %v6649_v27 = vmul.f32 1.442695, %v742_v13 }
  0x3b   : > { %v6652_v30 = vld [vmem:[%s6533_s2 + $0xd0] sm:$0xff]  ;;  %v5878_v31 = vpop.eup %5877  ;;  %5903 = vrcp.f32 %v912_v18  ;;  %v914_v32 = vadd.f32 1.0, %v5876_v22  ;;  %v744_v33 = vmul.f32 -1.702, %v6639_v16  ;;  %v745_v35 = vmul.f32 -1.702, %v6646_v21 }
  0x3c   : > { %8394 = vst [vmem:[#allocation11_spill] sm:$0xff] %v6652_v30  ;;  %v6657_v37 = vld [vmem:[%s6533_s2 + $0xd8] sm:$0xff]  ;;  %v5880_v38 = vpop.eup %5879  ;;  %5905 = vrcp.f32 %v913_v24  ;;  %v915_v39 = vadd.f32 1.0, %v5878_v31  ;;  %v6659_v40 = vmul.f32 1.442695, %v743_v26  ;;  %v6663_v44 = vld [vmem:[%s6533_s2 + $0xe0] sm:$0xff] }
  0x3d   : > { %8395 = vst [vmem:[#allocation12_spill] sm:$0xff] %v6657_v37  ;;  %v746_v42 = vmul.f32 -1.702, %v6652_v30  ;;  %8396 = vst [vmem:[#allocation13_spill] sm:$0xff] %v6663_v44  ;;  %v5882_v45 = vpop.eup %5881  ;;  %5907 = vrcp.f32 %v914_v32  ;;  %v916_v48 = vadd.f32 1.0, %v5880_v38  ;;  %v6670_v51 = vld [vmem:[%s6533_s2 + $0xe8] sm:$0xff] }
  0x3e   : > { %v6665_v49 = vmul.f32 1.442695, %v744_v33  ;;  %v6667_v50 = vmul.f32 1.442695, %v745_v35  ;;  %8397 = vst [vmem:[#allocation14_spill] sm:$0xff] %v6670_v51  ;;  %v5884_v53 = vpop.eup %5883  ;;  %5909 = vrcp.f32 %v915_v39  ;;  %v917_v55 = vadd.f32 1.0, %v5882_v45 }
  0x3f   : > { %v747_v56 = vmul.f32 -1.702, %v6657_v37  ;;  %v6673_v57 = vmul.f32 1.442695, %v746_v42  ;;  %v6676_v60 = vld [vmem:[%s6533_s2 + $0xf0] sm:$0xff]  ;;  %v5886_v63 = vpop.eup %5885  ;;  %5911 = vrcp.f32 %v916_v48  ;;  %v918_v3 = vadd.f32 1.0, %v5884_v53 }
  0x40   : > { %8398 = vst [vmem:[#allocation15_spill] sm:$0xff] %v6676_v60  ;;  %v748_v4 = vmul.f32 -1.702, %v6663_v44  ;;  %v749_v8 = vmul.f32 -1.702, %v6670_v51  ;;  %v6681_v13 = vld [vmem:[%s6533_s2 + $0xf8] sm:$0xff]  ;;  %v5888_v17 = vpop.eup %5887  ;;  %5913 = vrcp.f32 %v917_v55 }
  0x41   : > { %8399 = vst [vmem:[#allocation16_spill] sm:$0xff] %v6681_v13  ;;  %v919_v18 = vadd.f32 1.0, %v5886_v63  ;;  %v6683_v22 = vmul.f32 1.442695, %v747_v56  ;;  %v750_v24 = vmul.f32 -1.702, %v6676_v60  ;;  %v5890_v31 = vpop.eup %5889  ;;  %5915 = vrcp.f32 %v918_v3 }
  0x42   : > { %v6687_v26 = vld [vmem:[%s6533_s2 + $0x100] sm:$0xff]  ;;  %v920_v32 = vadd.f32 1.0, %v5888_v17  ;;  %v6689_v33 = vmul.f32 1.442695, %v748_v4  ;;  %v6691_v35 = vmul.f32 1.442695, %v749_v8  ;;  %v5892_v39 = vpop.eup %5891 }
  0x43   : > { %8400 = vst [vmem:[#allocation17_spill] sm:$0xff] %v6687_v26  ;;  %v6694_v38 = vld [vmem:[%s6533_s2 + $0x108] sm:$0xff]  ;;  %5917 = vrcp.f32 %v919_v18  ;;  %v921_v42 = vadd.f32 1.0, %v5890_v31  ;;  %v751_v45 = vmul.f32 -1.702, %v6681_v13  ;;  %v6700_v53 = vld [vmem:[%s6533_s2 + $0x110] sm:$0xff]  ;;  %v5894_v55 = vpop.eup %5893 }
  0x44   : > { %8401 = vst [vmem:[#allocation18_spill] sm:$0xff] %v6694_v38  ;;  %v6697_v48 = vmul.f32 1.442695, %v750_v24  ;;  %8402 = vst [vmem:[#allocation19_spill] sm:$0xff] %v6700_v53  ;;  %5919 = vrcp.f32 %v920_v32  ;;  %v922_v56 = vadd.f32 1.0, %v5892_v39  ;;  %v6705_v4 = vld [vmem:[%s6533_s2 + $0x118] sm:$0xff]  ;;  %v5896_v8 = vpop.eup %5895 }
  0x45   : > { %v752_v63 = vmul.f32 -1.702, %v6687_v26  ;;  %v753_v3 = vmul.f32 -1.702, %v6694_v38  ;;  %8403 = vst [vmem:[#allocation20_spill] sm:$0xff] %v6705_v4  ;;  %5921 = vrcp.f32 %v921_v42  ;;  %v923_v17 = vadd.f32 1.0, %v5894_v55  ;;  %v5898_v13 = vpop.eup %5897 }
  0x46   : > { %v6707_v18 = vmul.f32 1.442695, %v751_v45  ;;  %v754_v24 = vmul.f32 -1.702, %v6700_v53  ;;  %v6711_v31 = vld [vmem:[%s6533_s2 + $0x120] sm:$0xff]  ;;  %5923 = vrcp.f32 %v922_v56  ;;  %v924_v32 = vadd.f32 1.0, %v5896_v8  ;;  %v5900_v60 = vpop.eup %5899 }
  0x47   : > { %8404 = vst [vmem:[#allocation21_spill] sm:$0xff] %v6711_v31  ;;  %v6713_v39 = vmul.f32 1.442695, %v752_v63  ;;  %v6715_v26 = vmul.f32 1.442695, %v753_v3  ;;  %v6718_v38 = vld [vmem:[%s6533_s2 + $0x128] sm:$0xff]  ;;  %5925 = vrcp.f32 %v923_v17  ;;  %v5902_v51 = vpop.eup %5901 }
  0x48   : > { %8405 = vst [vmem:[#allocation22_spill] sm:$0xff] %v6718_v38  ;;  %v925_v42 = vadd.f32 1.0, %v5898_v13  ;;  %v755_v45 = vmul.f32 -1.702, %v6705_v4  ;;  %v6721_v55 = vmul.f32 1.442695, %v754_v24  ;;  %5927 = vrcp.f32 %v924_v32  ;;  %v5904_v44 = vpop.eup %5903 }
  0x49   : > { %v6724_v53 = vld [vmem:[%s6533_s2 + $0x130] sm:$0xff]  ;;  %v926_v56 = vadd.f32 1.0, %v5900_v60  ;;  %v756_v63 = vmul.f32 -1.702, %v6711_v31  ;;  %v757_v3 = vmul.f32 -1.702, %v6718_v38  ;;  %v5906_v37 = vpop.eup %5905  ;;  %v977_v32 = vmul.f32 %v5904_v44, %v6536_v5 }
  0x4a   : > { %8406 = vst [vmem:[#allocation23_spill] sm:$0xff] %v6724_v53  ;;  %v6729_v8 = vld [vmem:[%s6533_s2 + $0x138] sm:$0xff]  ;;  %5929 = vrcp.f32 %v925_v42  ;;  %v927_v17 = vadd.f32 1.0, %v5902_v51  ;;  %v6731_v13 = vmul.f32 1.442695, %v755_v45  ;;  %v6735_v4 = vld [vmem:[%s6533_s2 + $0x140] sm:$0xff]  ;;  %v5908_v30 = vpop.eup %5907  ;;  %v979_v51 = vmul.f32 %v5906_v37, %v6539_v6 }
  0x4b   : > { %v758_v24 = vmul.f32 -1.702, %v6724_v53  ;;  %5931 = vrcp.f32 %v926_v56  ;;  %v6738_v60 = vmul.f32 1.442695, %v756_v63  ;;  %v6740_v31 = vmul.f32 1.442695, %v757_v3  ;;  %v5910_v53 = vpop.eup %5909 }
  0x4c   : > { %v6743_v38 = vld [vmem:[%s6533_s2 + $0x148] sm:$0xff]  ;;  %5933 = vrcp.f32 %v927_v17  ;;  %v759_v42 = vmul.f32 -1.702, %v6729_v8  ;;  %v981_v5 = vmul.f32 %v5908_v30, %v6542_v7  ;;  %v760_v44 = vmul.f32 -1.702, %v6735_v4  ;;  %v6754_v63 = vld [vmem:[%s6533_s2 + $0x150] sm:$0xff]  ;;  %v5912_v3 = vpop.eup %5911 }
  0x4d   : > { %8407 = vst [vmem:[#allocation24_spill] sm:$0xff] %v6743_v38  ;;  %v6747_v45 = vmul.f32 1.442695, %v758_v24  ;;  %5935 = vpow2.f32 %v6610_v58  ;;  %v761_v56 = vmul.f32 -1.702, %v6743_v38  ;;  %v1112_v21 = vpack.c.bf16 %v979_v51, %v977_v32  ;;  %v6761_v17 = vld [vmem:[%s6533_s2 + $0x158] sm:$0xff]  ;;  %v5914_v58 = vpop.eup %5913 }
  0x4e   : > { %v983_v6 = vmul.f32 %v5910_v53, %v6547_v10  ;;  %5937 = vpow2.f32 %v6619_v62  ;;  %v6758_v37 = vmul.f32 1.442695, %v759_v42  ;;  %v6764_v7 = vld [vmem:[%s6533_s2 + $0x160] sm:$0xff]  ;;  %v985_v30 = vmul.f32 %v5912_v3, %v6550_v11  ;;  %v5916_v32 = vpop.eup %5915  ;;  %v6777_v51 = vld [vmem:[%s6533_s2 + $0x168] sm:$0xff] }
  0x4f   : > { %5939 = vpow2.f32 %v6628_v2  ;;  %v6768_v24 = vmul.f32 1.442695, %v760_v44  ;;  %v6770_v38 = vmul.f32 1.442695, %v761_v56  ;;  %5460 = vmatprep.mubr.msk.bf16.mxu0 %vm1167_vm1, %v1112_v21  ;;  %v987_v62 = vmul.f32 %v5914_v58, %v6555_v14  ;;  %8408 = vst [vmem:[#allocation25_spill] sm:$0xff] %v6777_v51  ;;  %v6797_v58 = vld [vmem:[%s6533_s2 + $0x178] sm:$0xff] }
  0x50   : > { %v1113_v10 = vpack.c.bf16 %v983_v6, %v981_v5  ;;  %5941 = vpow2.f32 %v6632_v9  ;;  %v762_v53 = vmul.f32 -1.702, %v6754_v63  ;;  %v5918_v11 = vpop.eup %5917  ;;  %v989_v2 = vmul.f32 %v5916_v32, %v6558_v15  ;;  %v6789_v15 = vld [vmem:[%s6533_s2 + $0x170] sm:$0xff]  ;;  %8410 = vst [vmem:[#allocation27_spill] sm:$0xff] %v6797_v58 }
  0x51   : > { %5943 = vpow2.f32 %v6641_v19  ;;  %v763_v42 = vmul.f32 -1.702, %v6761_v17  ;;  %v764_v21 = vmul.f32 -1.702, %v6764_v7  ;;  %v5920_v5 = vpop.eup %5919  ;;  %v1114_v14 = vpack.c.bf16 %v987_v62, %v985_v30  ;;  %8409 = vst [vmem:[#allocation26_spill] sm:$0xff] %v6789_v15 }
  0x52   : > { %5461 = vmatmul.mubr.msk.bf16.vlgmr.msra.gmra.mxu0 %vm1167_vm1, %v1113_v10  ;;  %v991_v9 = vmul.f32 %v5918_v11, %v6563_v23  ;;  %5945 = vpow2.f32 %v6643_v20  ;;  %v6786_v44 = vmul.f32 1.442695, %v762_v53  ;;  %v5922_v56 = vpop.eup %5921  ;;  %v993_v19 = vmul.f32 %v5920_v5, %v6567_v25  ;;  %v704_v25 = vld [vmem:[%s6533_s2 + $0x180] sm:$0xff]  ;;  %v707_v5 = vld [vmem:[%s6533_s2 + $0x198] sm:$0xff] }
  0x53   : > { %5947 = vpow2.f32 %v6649_v27  ;;  %v6793_v3 = vmul.f32 1.442695, %v763_v42  ;;  %v765_v6 = vmul.f32 -1.702, %v6777_v51  ;;  %v5924_v23 = vpop.eup %5923  ;;  %5464 = vmatprep.mubr.msk.bf16.mxu0 %vm1167_vm1, %v1114_v14  ;;  %v995_v30 = vmul.f32 %v5922_v56, %v6571_v28  ;;  %v705_v27 = vld [vmem:[%s6533_s2 + $0x188] sm:$0xff] }
  0x54   : > { %v1115_v20 = vpack.c.bf16 %v991_v9, %v989_v2  ;;  %5949 = vpow2.f32 %v6659_v40  ;;  %v6802_v32 = vmul.f32 1.442695, %v764_v21  ;;  %v5926_v10 = vpop.eup %5925  ;;  %v6807_v62 = vmul.f32 %v5924_v23, %v6574_v29  ;;  %v706_v2 = vld [vmem:[%s6533_s2 + $0x190] sm:$0xff] }
  0x55   : > { %5951 = vpow2.f32 %v6665_v49  ;;  %v6810_v53 = vmul.f32 1.442695, %v765_v6  ;;  %v766_v11 = vmul.f32 -1.702, %v6789_v15  ;;  %v5928_v28 = vpop.eup %5927  ;;  %v1116_v42 = vpack.c.bf16 %v995_v30, %v993_v19  ;;  %v719_v15 = vld [vmem:[%s6533_s2 + $0x1f8] sm:$0xff] }
  0x56   : > { %v6815_v40 = vmul.f32 %v5926_v10, %v6579_v34  ;;  %5953 = vpow2.f32 %v6667_v50  ;;  %v767_v21 = vmul.f32 -1.702, %v6797_v58  ;;  %v6821_v14 = vmul.f32 %v5928_v28, %v6583_v36  ;;  %v708_v50 = vld [vmem:[%s6533_s2 + $0x1a0] sm:$0xff]  ;;  %v6851_v10 = vld [vmem:[%s6533_s2 + $0x1a8] sm:$0xff]  ;;  %v6860_v28 = vld [vmem:[%s6533_s2 + $0x1b8] sm:$0xff] }
  0x57   : > { %v5930_v29 = vpop.eup %5929  ;;  %5955 = vpow2.f32 %v6673_v57  ;;  %v6824_v49 = vmul.f32 1.442695, %v766_v11  ;;  %v768_v9 = vmul.f32 -1.702, %v704_v25  ;;  %v769_v36 = vmul.f32 -1.702, %v705_v27 }
  0x58   : > { %v5932_v56 = vpop.eup %5931  ;;  %v6827_v19 = vmul.f32 %v5930_v29, %v6587_v41  ;;  %5957 = vpow2.f32 %v6683_v22  ;;  %v6830_v34 = vmul.f32 1.442695, %v767_v21  ;;  %v1117_v41 = vpack.c.bf16 %v6815_v40, %v6807_v62  ;;  %8411 = vst [vmem:[#allocation28_spill] sm:$0xff] %v6851_v10  ;;  %v710_v62 = vld [vmem:[%s6533_s2 + $0x1b0] sm:$0xff]  ;;  %8412 = vst [vmem:[#allocation29_spill] sm:$0xff] %v6860_v28 }
  0x59   : > { %v5934_v6 = vpop.eup %5933  ;;  %v6834_v23 = vmul.f32 %v5932_v56, %v6591_v43  ;;  %5959 = vpow2.f32 %v6689_v33  ;;  %v6837_v57 = vmul.f32 1.442695, %v768_v9  ;;  %v770_v43 = vmul.f32 -1.702, %v706_v2  ;;  %v6869_v56 = vld [vmem:[%s6533_s2 + $0x1c8] sm:$0xff] }
  0x5a   : > { %v5936_v30 = vpop.eup %5935  ;;  %5465 = vmatmul.mubr.msk.bf16.gmra.mxu0 %vm1167_vm1, %v1115_v20  ;;  %v6843_v22 = vmul.f32 %v5934_v6, %v6595_v46  ;;  %5961 = vpow2.f32 %v6691_v35  ;;  %v1118_v33 = vpack.c.bf16 %v6827_v19, %v6821_v14  ;;  %v771_v20 = vmul.f32 -1.702, %v707_v5  ;;  %v6865_v5 = vld [vmem:[%s6533_s2 + $0x1c0] sm:$0xff]  ;;  %8414 = vst [vmem:[#allocation31_spill] sm:$0xff] %v6869_v56 }
  0x5b   : > { %v5938_v25 = vpop.eup %5937  ;;  %5468 = vmatprep.mubr.msk.bf16.mxu0 %vm1167_vm1, %v1116_v42  ;;  %v928_v27 = vadd.f32 1.0, %v5936_v30  ;;  %5963 = vpow2.f32 %v6697_v48  ;;  %v6857_v2 = vmul.f32 1.442695, %v769_v36  ;;  %v6862_v40 = vmul.f32 1.442695, %v770_v43  ;;  %8413 = vst [vmem:[#allocation30_spill] sm:$0xff] %v6865_v5 }
  0x5c   : > { %v5940_v46 = vpop.eup %5939  ;;  %v929_v35 = vadd.f32 1.0, %v5938_v25  ;;  %5965 = vpow2.f32 %v6707_v18  ;;  %v772_v21 = vmul.f32 -1.702, %v708_v50  ;;  %v773_v9 = vmul.f32 -1.702, %v6851_v10  ;;  %v714_v50 = vld [vmem:[%s6533_s2 + $0x1d0] sm:$0xff] }
  0x5d   : > { %v5942_v42 = vpop.eup %5941  ;;  %5967 = vrcp.f32 %v928_v27  ;;  %v930_v48 = vadd.f32 1.0, %v5940_v46  ;;  %v774_v18 = vmul.f32 -1.702, %v710_v62  ;;  %v6871_v36 = vmul.f32 1.442695, %v771_v20  ;;  %v715_v62 = vld [vmem:[%s6533_s2 + $0x1d8] sm:$0xff] }
  0x5e   : > { %v5944_v29 = vpop.eup %5943  ;;  %5969 = vrcp.f32 %v929_v35  ;;  %v931_v14 = vadd.f32 1.0, %v5942_v42  ;;  %v775_v30 = vmul.f32 -1.702, %v6860_v28  ;;  %v6875_v27 = vmul.f32 1.442695, %v772_v21 }
  0x5f   : > { %v5946_v19 = vpop.eup %5945  ;;  %5971 = vrcp.f32 %v930_v48  ;;  %v932_v6 = vadd.f32 1.0, %v5944_v29  ;;  %v6877_v46 = vmul.f32 1.442695, %v773_v9  ;;  %v6880_v48 = vmul.f32 1.442695, %v774_v18  ;;  %v716_v29 = vld [vmem:[%s6533_s2 + $0x1e0] sm:$0xff] }
  0x60   : > { %v5948_v43 = vpop.eup %5947  ;;  %5973 = vrcp.f32 %v931_v14  ;;  %v933_v25 = vadd.f32 1.0, %v5946_v19  ;;  %v776_v20 = vmul.f32 -1.702, %v6865_v5  ;;  %v777_v21 = vmul.f32 -1.702, %v6869_v56  ;;  %v717_v9 = vld [vmem:[%s6533_s2 + $0x1e8] sm:$0xff] }
  0x61   : > { %v5950_v35 = vpop.eup %5949  ;;  %5975 = vrcp.f32 %v932_v6  ;;  %v934_v42 = vadd.f32 1.0, %v5948_v43  ;;  %v778_v19 = vmul.f32 -1.702, %v714_v50  ;;  %v6888_v6 = vmul.f32 1.442695, %v775_v30  ;;  %v718_v5 = vld [vmem:[%s6533_s2 + $0x1f0] sm:$0xff] }
  0x62   : > { %v5952_v11 = vpop.eup %5951  ;;  %5469 = vmatmul.mubr.msk.bf16.gmra.mxu0 %vm1167_vm1, %v1117_v41  ;;  %5977 = vrcp.f32 %v933_v25  ;;  %v935_v14 = vadd.f32 1.0, %v5950_v35  ;;  %v779_v43 = vmul.f32 -1.702, %v715_v62  ;;  %v6891_v41 = vmul.f32 1.442695, %v776_v20 }
  0x63   : > { %v5954_v28 = vpop.eup %5953  ;;  %5472 = vmatprep.mubr.msk.bf16.mxu0 %vm1167_vm1, %v1118_v33  ;;  %5979 = vrcp.f32 %v934_v42  ;;  %v936_v18 = vadd.f32 1.0, %v5952_v11  ;;  %v6893_v25 = vmul.f32 1.442695, %v777_v21  ;;  %v6895_v56 = vmul.f32 1.442695, %v778_v19 }
  0x64   : > { %v5956_v10 = vpop.eup %5955  ;;  %5981 = vrcp.f32 %v935_v14  ;;  %v937_v58 = vadd.f32 1.0, %v5954_v28  ;;  %v780_v33 = vmul.f32 -1.702, %v716_v29  ;;  %v781_v30 = vmul.f32 -1.702, %v717_v9 }
  0x65   : > { %v5958_v35 = vpop.eup %5957  ;;  %5983 = vrcp.f32 %v936_v18  ;;  %v938_v50 = vadd.f32 1.0, %v5956_v10  ;;  %v782_v62 = vmul.f32 -1.702, %v718_v5  ;;  %v6898_v28 = vmul.f32 1.442695, %v779_v43 }
  0x66   : > { %v5960_v42 = vpop.eup %5959  ;;  %5985 = vrcp.f32 %v937_v58  ;;  %v939_v11 = vadd.f32 1.0, %v5958_v35  ;;  %v6900_v20 = vmul.f32 1.442695, %v780_v33  ;;  %v6902_v10 = vmul.f32 1.442695, %v781_v30 }
  0x67   : > { %v5962_v51 = vpop.eup %5961  ;;  %5987 = vrcp.f32 %v938_v50  ;;  %v940_v14 = vadd.f32 1.0, %v5960_v42  ;;  %v6904_v19 = vmul.f32 -1.702, %v719_v15  ;;  %v6906_v35 = vmul.f32 1.442695, %v782_v62 }
  0x68   : > { %v5964_v21 = vpop.eup %5963  ;;  %5989 = vrcp.f32 %v939_v11  ;;  %v941_v18 = vadd.f32 1.0, %v5962_v51  ;;  %v8415_v9 = vpack.c.bf16 %v6843_v22, %v6834_v23 }
  0x69   : > { %v5966_v29 = vpop.eup %5965  ;;  %5991 = vrcp.f32 %v940_v14  ;;  %v942_v58 = vadd.f32 1.0, %v5964_v21 }
  0x6a   : > { %v5968_v5 = vpop.eup %5967  ;;  %5473 = vmatmul.mubr.msk.bf16.gmra.mxu0 %vm1167_vm1, %v8415_v9  ;;  %5993 = vrcp.f32 %v941_v18  ;;  %v943_v43 = vadd.f32 1.0, %v5966_v29 }
  0x6b   : > { %v5970_v50 = vpop.eup %5969  ;;  %v1009_v51 = vmul.f32 %v5968_v5, %v6598_v47  ;;  %5995 = vrcp.f32 %v942_v58 }
  0x6c   : > { %v5972_v33 = vpop.eup %5971  ;;  %v1011_v15 = vmul.f32 %v5970_v50, %v6603_v52  ;;  %5997 = vrcp.f32 %v943_v43  ;;  %v8419_v50 = vld [vmem:[#allocation13_spill] sm:$0xff] }
  0x6d   : > { %v5974_v42 = vpop.eup %5973  ;;  %v1013_v11 = vmul.f32 %v5972_v33, %v6607_v54  ;;  %5999 = vpow2.f32 %v6713_v39 }
  0x6e   : > { %v5976_v30 = vpop.eup %5975  ;;  %v1120_v62 = vpack.c.bf16 %v1011_v15, %v1009_v51  ;;  %v1015_v23 = vmul.f32 %v5974_v42, %v6613_v59  ;;  %6001 = vpow2.f32 %v6715_v26  ;;  %v8420_v51 = vld [vmem:[#allocation14_spill] sm:$0xff] }
  0x6f   : > { %v5978_v22 = vpop.eup %5977  ;;  %v1017_v14 = vmul.f32 %v5976_v30, %v6617_v61  ;;  %6003 = vpow2.f32 %v6721_v55 }
  0x70   : > { %v5980_v47 = vpop.eup %5979  ;;  %5476 = vmatprep.mubr.msk.bf16.mxu0 %vm1167_vm1, %v1120_v62  ;;  %v1121_v52 = vpack.c.bf16 %v1015_v23, %v1013_v11  ;;  %v1019_v21 = vmul.f32 %v5978_v22, %v6623_v0  ;;  %6005 = vpow2.f32 %v6731_v13  ;;  %v8416_v13 = vld [vmem:[#allocation10_spill] sm:$0xff] }
  0x71   : > { %v5982_v54 = vpop.eup %5981  ;;  %6007 = vpow2.f32 %v6738_v60  ;;  %v1021_v26 = vmul.f32 %v5980_v47, %v6626_v1 }
  0x72   : > { %v5984_v39 = vpop.eup %5983  ;;  %5477 = vmatmul.mubr.msk.bf16.gmra.mxu0 %vm1167_vm1, %v1121_v52  ;;  %v1122_v59 = vpack.c.bf16 %v1019_v21, %v1017_v14  ;;  %v1023_v61 = vmul.f32 %v5982_v54, %v6635_v12  ;;  %6009 = vpow2.f32 %v6740_v31 }
  0x73   : > { %v5986_v55 = vpop.eup %5985  ;;  %v1025_v18 = vmul.f32 %v5984_v39, %v6639_v16  ;;  %6011 = vpow2.f32 %v6747_v45 }
  0x74   : > { %v5988_v0 = vpop.eup %5987  ;;  %5480 = vmatprep.mubr.msk.bf16.mxu0 %vm1167_vm1, %v1122_v59  ;;  %v1027_v60 = vmul.f32 %v5986_v55, %v8416_v13  ;;  %6013 = vpow2.f32 %v6758_v37  ;;  %v1123_v58 = vpack.c.bf16 %v1023_v61, %v1021_v26  ;;  %v8417_v37 = vld [vmem:[#allocation11_spill] sm:$0xff]  ;;  %v8422_v59 = vld [vmem:[#allocation16_spill] sm:$0xff] }
  0x75   : > { %v5990_v29 = vpop.eup %5989  ;;  %6015 = vpow2.f32 %v6768_v24  ;;  %v1029_v9 = vmul.f32 %v5988_v0, %v8417_v37  ;;  %v8418_v24 = vld [vmem:[#allocation12_spill] sm:$0xff] }
  0x76   : > { %v5992_v1 = vpop.eup %5991  ;;  %6017 = vpow2.f32 %v6770_v38  ;;  %v1124_v31 = vpack.c.bf16 %v1027_v60, %v1025_v18  ;;  %v1031_v43 = vmul.f32 %v5990_v29, %v8418_v24 }
  0x77   : > { %v5994_v12 = vpop.eup %5993  ;;  %6019 = vpow2.f32 %v6786_v44  ;;  %v1033_v44 = vmul.f32 %v5992_v1, %v8419_v50  ;;  %v8423_v50 = vld [vmem:[#allocation17_spill] sm:$0xff] }
  0x78   : > { %v5996_v16 = vpop.eup %5995  ;;  %6021 = vpow2.f32 %v6793_v3  ;;  %v1035_v33 = vmul.f32 %v5994_v12, %v8420_v51  ;;  %v1125_v62 = vpack.c.bf16 %v1031_v43, %v1029_v9 }
  0x79   : > { %v5998_v45 = vpop.eup %5997  ;;  %6023 = vpow2.f32 %v6802_v32 }
  0x7a   : > { %v6000_v5 = vpop.eup %5999  ;;  %5481 = vmatmul.mubr.msk.bf16.gmra.mxu0 %vm1167_vm1, %v1123_v58  ;;  %6025 = vpow2.f32 %v6810_v53  ;;  %v1126_v22 = vpack.c.bf16 %v1035_v33, %v1033_v44  ;;  %v1039_v26 = vmul.f32 %v5998_v45, %v8422_v59  ;;  %v8424_v33 = vld [vmem:[#allocation18_spill] sm:$0xff] }
  0x7b   : > { %v6002_v38 = vpop.eup %6001  ;;  %5484 = vmatprep.mubr.msk.bf16.mxu0 %vm1167_vm1, %v1124_v31  ;;  %v944_v3 = vadd.f32 1.0, %v6000_v5  ;;  %6027 = vpow2.f32 %v6824_v49 }
  0x7c   : > { %v6004_v32 = vpop.eup %6003  ;;  %v945_v15 = vadd.f32 1.0, %v6002_v38  ;;  %6029 = vpow2.f32 %v6830_v34  ;;  %v8421_v34 = vld [vmem:[#allocation15_spill] sm:$0xff] }
  0x7d   : > { %v6006_v42 = vpop.eup %6005  ;;  %6031 = vrcp.f32 %v944_v3  ;;  %v946_v11 = vadd.f32 1.0, %v6004_v32  ;;  %v1037_v39 = vmul.f32 %v5996_v16, %v8421_v34  ;;  %v8429_v34 = vld [vmem:[#allocation23_spill] sm:$0xff] }
  0x7e   : > { %v6008_v30 = vpop.eup %6007  ;;  %6033 = vrcp.f32 %v945_v15  ;;  %v947_v53 = vadd.f32 1.0, %v6006_v42  ;;  %v8425_v15 = vld [vmem:[#allocation19_spill] sm:$0xff] }
  0x7f   : > { %v6010_v23 = vpop.eup %6009  ;;  %6035 = vrcp.f32 %v946_v11  ;;  %v948_v14 = vadd.f32 1.0, %v6008_v30  ;;  %v1127_v58 = vpack.c.bf16 %v1039_v26, %v1037_v39 }
  0x80   : > { %v6012_v47 = vpop.eup %6011  ;;  %6037 = vrcp.f32 %v947_v53  ;;  %v949_v52 = vadd.f32 1.0, %v6010_v23 }
  0x81   : > { %v6014_v21 = vpop.eup %6013  ;;  %6039 = vrcp.f32 %v948_v14  ;;  %v950_v49 = vadd.f32 1.0, %v6012_v47 }
  0x82   : > { %v6016_v54 = vpop.eup %6015  ;;  %5485 = vmatmul.mubr.msk.bf16.gmra.mxu0 %vm1167_vm1, %v1125_v62  ;;  %6041 = vrcp.f32 %v949_v52  ;;  %v951_v61 = vadd.f32 1.0, %v6014_v21  ;;  %v8426_v62 = vld [vmem:[#allocation20_spill] sm:$0xff]  ;;  %v8428_v21 = vld [vmem:[#allocation22_spill] sm:$0xff] }
  0x83   : > { %v6018_v55 = vpop.eup %6017  ;;  %5488 = vmatprep.mubr.msk.bf16.mxu0 %vm1167_vm1, %v1126_v22  ;;  %6043 = vrcp.f32 %v950_v49  ;;  %v952_v18 = vadd.f32 1.0, %v6016_v54  ;;  %v8427_v22 = vld [vmem:[#allocation21_spill] sm:$0xff] }
  0x84   : > { %v6020_v0 = vpop.eup %6019  ;;  %6045 = vrcp.f32 %v951_v61  ;;  %v953_v13 = vadd.f32 1.0, %v6018_v55 }
  0x85   : > { %v6022_v60 = vpop.eup %6021  ;;  %6047 = vrcp.f32 %v952_v18  ;;  %v954_v29 = vadd.f32 1.0, %v6020_v0 }
  0x86   : > { %v6024_v1 = vpop.eup %6023  ;;  %6049 = vrcp.f32 %v953_v13  ;;  %v955_v12 = vadd.f32 1.0, %v6022_v60  ;;  %v8431_v60 = vld [vmem:[#allocation25_spill] sm:$0xff] }
  0x87   : > { %v6026_v31 = vpop.eup %6025  ;;  %6051 = vrcp.f32 %v954_v29  ;;  %v956_v16 = vadd.f32 1.0, %v6024_v1 }
  0x88   : > { %v6028_v45 = vpop.eup %6027  ;;  %6053 = vrcp.f32 %v955_v12  ;;  %v957_v5 = vadd.f32 1.0, %v6026_v31 }
  0x89   : > { %v6030_v37 = vpop.eup %6029  ;;  %6055 = vrcp.f32 %v956_v16  ;;  %v958_v9 = vadd.f32 1.0, %v6028_v45 }
  0x8a   : > { %v6032_v24 = vpop.eup %6031  ;;  %5489 = vmatmul.mubr.msk.bf16.gmra.mxu0 %vm1167_vm1, %v1127_v58  ;;  %6057 = vrcp.f32 %v957_v5  ;;  %v959_v43 = vadd.f32 1.0, %v6030_v37 }
  0x8b   : > { %v6034_v38 = vpop.eup %6033  ;;  %v1041_v44 = vmul.f32 %v6032_v24, %v8423_v50  ;;  %6059 = vrcp.f32 %v958_v9  ;;  %v8432_v24 = vld [vmem:[#allocation26_spill] sm:$0xff] }
  0x8c   : > { %v6036_v51 = vpop.eup %6035  ;;  %v1043_v3 = vmul.f32 %v6034_v38, %v8424_v33  ;;  %6061 = vrcp.f32 %v959_v43  ;;  %v8433_v38 = vld [vmem:[#allocation27_spill] sm:$0xff] }
  0x8d   : > { %v6038_v32 = vpop.eup %6037  ;;  %v1045_v42 = vmul.f32 %v6036_v51, %v8425_v15  ;;  %6063 = vpow2.f32 %v6837_v57 }
  0x8e   : > { %v6040_v11 = vpop.eup %6039  ;;  %v1128_v30 = vpack.c.bf16 %v1043_v3, %v1041_v44  ;;  %v1047_v53 = vmul.f32 %v6038_v32, %v8426_v62  ;;  %6065 = vpow2.f32 %v6857_v2 }
  0x8f   : > { %v6042_v23 = vpop.eup %6041  ;;  %v1049_v14 = vmul.f32 %v6040_v11, %v8427_v22  ;;  %6067 = vpow2.f32 %v6862_v40 }
  0x90   : > { %v6044_v47 = vpop.eup %6043  ;;  %5492 = vmatprep.mubr.msk.bf16.mxu0 %vm1167_vm1, %v1128_v30  ;;  %v1129_v52 = vpack.c.bf16 %v1047_v53, %v1045_v42  ;;  %v1051_v49 = vmul.f32 %v6042_v23, %v8428_v21  ;;  %6069 = vpow2.f32 %v6871_v36  ;;  %v910_v36 = vmul.f32 1.442695, %v6904_v19 }
  0x91   : > { %v6046_v57 = vpop.eup %6045  ;;  %6071 = vpow2.f32 %v6875_v27  ;;  %v1053_v39 = vmul.f32 %v6044_v47, %v8429_v34  ;;  %v8430_v27 = vld [vmem:[#allocation24_spill] sm:$0xff] }
  0x92   : > { %v6048_v54 = vpop.eup %6047  ;;  %5493 = vmatmul.mubr.msk.bf16.gmra.mxu0 %vm1167_vm1, %v1129_v52  ;;  %v1130_v2 = vpack.c.bf16 %v1051_v49, %v1049_v14  ;;  %v1055_v59 = vmul.f32 %v6046_v57, %v6729_v8  ;;  %6073 = vpow2.f32 %v6877_v46 }
  0x93   : > { %v6050_v40 = vpop.eup %6049  ;;  %v1057_v26 = vmul.f32 %v6048_v54, %v6735_v4  ;;  %6075 = vpow2.f32 %v6880_v48  ;;  %v6275_v54 = vld [vmem:[%s6533_s2 + $0x180] sm:$0xff] }
  0x94   : > { %v6052_v61 = vpop.eup %6051  ;;  %5496 = vmatprep.mubr.msk.bf16.mxu0 %vm1167_vm1, %v1130_v2  ;;  %v1059_v55 = vmul.f32 %v6050_v40, %v8430_v27  ;;  %6077 = vpow2.f32 %v6888_v6  ;;  %v1131_v0 = vpack.c.bf16 %v1055_v59, %v1053_v39  ;;  %v6276_v39 = vld [vmem:[%s6533_s2 + $0x188] sm:$0xff] }
  0x95   : > { %v6054_v18 = vpop.eup %6053  ;;  %6079 = vpow2.f32 %v6891_v41  ;;  %v1061_v6 = vmul.f32 %v6052_v61, %v6754_v63 }
  0x96   : > { %v6056_v8 = vpop.eup %6055  ;;  %6081 = vpow2.f32 %v6893_v25  ;;  %v1132_v4 = vpack.c.bf16 %v1059_v55, %v1057_v26  ;;  %v1063_v41 = vmul.f32 %v6054_v18, %v6761_v17  ;;  %v6277_v26 = vld [vmem:[%s6533_s2 + $0x190] sm:$0xff]  ;;  %v6278_v55 = vld [vmem:[%s6533_s2 + $0x198] sm:$0xff] }
  0x97   : > { %v6058_v46 = vpop.eup %6057  ;;  %6083 = vpow2.f32 %v6895_v56  ;;  %v1065_v56 = vmul.f32 %v6056_v8, %v6764_v7 }
  0x98   : > { %v6060_v48 = vpop.eup %6059  ;;  %6085 = vpow2.f32 %v6898_v28  ;;  %v1067_v29 = vmul.f32 %v6058_v46, %v8431_v60  ;;  %v1133_v17 = vpack.c.bf16 %v1063_v41, %v1061_v6 }
  0x99   : > { %v6062_v19 = vpop.eup %6061  ;;  %6087 = vpow2.f32 %v6900_v20  ;;  %v1069_v43 = vmul.f32 %v6060_v48, %v8432_v24  ;;  %v6283_v24 = vld [vmem:[%s6533_s2 + $0x1e0] sm:$0xff] }
  0x9a   : > { %v6064_v13 = vpop.eup %6063  ;;  %5497 = vmatmul.mubr.msk.bf16.gmra.mxu0 %vm1167_vm1, %v1131_v0  ;;  %6089 = vpow2.f32 %v6902_v10  ;;  %v1134_v16 = vpack.c.bf16 %v1067_v29, %v1065_v56  ;;  %v1071_v50 = vmul.f32 %v6062_v19, %v8433_v38  ;;  %v6279_v0 = vld [vmem:[%s6533_s2 + $0x1a0] sm:$0xff]  ;;  %v8434_v19 = vld [vmem:[#allocation28_spill] sm:$0xff]  ;;  %v6280_v56 = vld [vmem:[%s6533_s2 + $0x1b0] sm:$0xff] }
  0x9b   : > { %v6066_v25 = vpop.eup %6065  ;;  %5500 = vmatprep.mubr.msk.bf16.mxu0 %vm1167_vm1, %v1132_v4  ;;  %v960_v28 = vadd.f32 1.0, %v6064_v13  ;;  %6091 = vpow2.f32 %v6906_v35  ;;  %v8435_v29 = vld [vmem:[#allocation29_spill] sm:$0xff]  ;;  %v6284_v38 = vld [vmem:[%s6533_s2 + $0x1e8] sm:$0xff] }
  0x9c   : > { %v6068_v20 = vpop.eup %6067  ;;  %v961_v1 = vadd.f32 1.0, %v6066_v25  ;;  %6093 = vpow2.f32 %v910_v36  ;;  %v1135_v30 = vpack.c.bf16 %v1071_v50, %v1069_v43 }
  0x9d   : > { %v6070_v58 = vpop.eup %6069  ;;  %6095 = vrcp.f32 %v960_v28  ;;  %v962_v63 = vadd.f32 1.0, %v6068_v20 }
  0x9e   : > { %v6072_v12 = vpop.eup %6071  ;;  %6097 = vrcp.f32 %v961_v1  ;;  %v963_v10 = vadd.f32 1.0, %v6070_v58  ;;  %v8436_v1 = vld [vmem:[#allocation30_spill] sm:$0xff] }
  0x9f   : > { %v6074_v31 = vpop.eup %6073  ;;  %6099 = vrcp.f32 %v962_v63  ;;  %v964_v45 = vadd.f32 1.0, %v6072_v12  ;;  %v8437_v63 = vld [vmem:[#allocation31_spill] sm:$0xff] }
  0xa0   : > { %v6076_v7 = vpop.eup %6075  ;;  %6101 = vrcp.f32 %v963_v10  ;;  %v965_v5 = vadd.f32 1.0, %v6074_v31 }
  0xa1   : > { %v6078_v37 = vpop.eup %6077  ;;  %6103 = vrcp.f32 %v964_v45  ;;  %v966_v35 = vadd.f32 1.0, %v6076_v7 }
  0xa2   : > { %v6080_v9 = vpop.eup %6079  ;;  %5501 = vmatmul.mubr.msk.bf16.gmra.mxu0 %vm1167_vm1, %v1133_v17  ;;  %6105 = vrcp.f32 %v965_v5  ;;  %v967_v44 = vadd.f32 1.0, %v6078_v37  ;;  %v6281_v5 = vld [vmem:[%s6533_s2 + $0x1d0] sm:$0xff] }
  0xa3   : > { %v6082_v51 = vpop.eup %6081  ;;  %5504 = vmatprep.mubr.msk.bf16.mxu0 %vm1167_vm1, %v1134_v16  ;;  %6107 = vrcp.f32 %v966_v35  ;;  %v968_v33 = vadd.f32 1.0, %v6080_v9  ;;  %v6282_v35 = vld [vmem:[%s6533_s2 + $0x1d8] sm:$0xff] }
  0xa4   : > { %v6084_v3 = vpop.eup %6083  ;;  %6109 = vrcp.f32 %v967_v44  ;;  %v969_v32 = vadd.f32 1.0, %v6082_v51 }
  0xa5   : > { %v6086_v15 = vpop.eup %6085  ;;  %6111 = vrcp.f32 %v968_v33  ;;  %v970_v42 = vadd.f32 1.0, %v6084_v3 }
  0xa6   : > { %v6088_v11 = vpop.eup %6087  ;;  %6113 = vrcp.f32 %v969_v32  ;;  %v971_v62 = vadd.f32 1.0, %v6086_v15  ;;  %v6285_v32 = vld [vmem:[%s6533_s2 + $0x1f0] sm:$0xff] }
  0xa7   : > { %v6090_v53 = vpop.eup %6089  ;;  %v972_v23 = vadd.f32 1.0, %v6088_v11  ;;  %6115 = vrcp.f32 %v970_v42  ;;  %v6286_v42 = vld [vmem:[%s6533_s2 + $0x1f8] sm:$0xff]  ;;  %s8442_s2 = sld [smem:[#allocation37_spill]] }
  0xa8   : > { %v6092_v22 = vpop.eup %6091  ;;  %v973_v14 = vadd.f32 1.0, %v6090_v53  ;;  %6117 = vrcp.f32 %v971_v62 }
  0xa9   : > { %v6094_v47 = vpop.eup %6093  ;;  %6119 = vrcp.f32 %v972_v23  ;;  %v974_v21 = vadd.f32 1.0, %v6092_v22 }
  0xaa   : > { %v6096_v52 = vpop.eup %6095  ;;  %5505 = vmatmul.mubr.msk.bf16.gmra.mxu0 %vm1167_vm1, %v1135_v30  ;;  %v975_v49 = vadd.f32 1.0, %v6094_v47  ;;  %6121 = vrcp.f32 %v973_v14 }
  0xab   : > { %v6098_v57 = vpop.eup %6097  ;;  %v1073_v2 = vmul.f32 %v6275_v54, %v6096_v52  ;;  %6123 = vrcp.f32 %v974_v21  ;;  %v7019_v52 = vld [vmem:[%s8438_s30] ss:$0 sm:$0xff] }
  0xac   : > { %v6100_v34 = vpop.eup %6099  ;;  %v1075_v59 = vmul.f32 %v6276_v39, %v6098_v57  ;;  %6125 = vrcp.f32 %v975_v49  ;;  %v7025_v54 = vld [vmem:[%s8439_s4] ss:$0 sm:$0xff] }
  0xad   : > { %v6102_v40 = vpop.eup %6101  ;;  %v1077_v36 = vmul.f32 %v6277_v26, %v6100_v34 }
  0xae   : > { %v6104_v61 = vpop.eup %6103  ;;  %v1136_v27 = vpack.c.bf16 %v1075_v59, %v1073_v2  ;;  %v1079_v18 = vmul.f32 %v6278_v55, %v6102_v40 }
  0xaf   : > { %v6106_v8 = vpop.eup %6105  ;;  %v1081_v46 = vmul.f32 %v6279_v0, %v6104_v61 }
  0xb0   : > { %v6108_v4 = vpop.eup %6107  ;;  %5508 = vmatprep.mubr.msk.bf16.mxu0 %vm1167_vm1, %v1136_v27  ;;  %v1137_v48 = vpack.c.bf16 %v1079_v18, %v1077_v36  ;;  %v1083_v13 = vmul.f32 %v6106_v8, %v8434_v19 }
  0xb1   : > { %v6110_v6 = vpop.eup %6109  ;;  %v1085_v60 = vmul.f32 %v6280_v56, %v6108_v4 }
  0xb2   : > { %v6112_v41 = vpop.eup %6111  ;;  %5509 = vmatmul.mubr.msk.bf16.gmra.mxu0 %vm1167_vm1, %v1137_v48  ;;  %v1138_v25 = vpack.c.bf16 %v1083_v13, %v1081_v46  ;;  %v1087_v28 = vmul.f32 %v6110_v6, %v8435_v29 }
  0xb3   : > { %v6114_v20 = vpop.eup %6113  ;;  %v1089_v58 = vmul.f32 %v6112_v41, %v8436_v1 }
  0xb4   : > { %5512 = vmatprep.mubr.msk.bf16.mxu0 %vm1167_vm1, %v1138_v25  ;;  %v1091_v12 = vmul.f32 %v6114_v20, %v8437_v63  ;;  %v6116_v17 = vpop.eup %6115  ;;  %v1139_v31 = vpack.c.bf16 %v1087_v28, %v1085_v60 }
  0xb5   : > { %v6118_v10 = vpop.eup %6117  ;;  %v1093_v37 = vmul.f32 %v6281_v5, %v6116_v17 }
  0xb6   : > { %v6120_v16 = vpop.eup %6119  ;;  %v1140_v45 = vpack.c.bf16 %v1091_v12, %v1089_v58  ;;  %v1095_v9 = vmul.f32 %v6282_v35, %v6118_v10 }
  0xb7   : > { %v6122_v7 = vpop.eup %6121  ;;  %v1097_v43 = vmul.f32 %v6283_v24, %v6120_v16 }
  0xb8   : > { %v1099_v50 = vmul.f32 %v6284_v38, %v6122_v7  ;;  %v6124_v44 = vpop.eup %6123  ;;  %v1141_v51 = vpack.c.bf16 %v1095_v9, %v1093_v37 }
  0xb9   : > { %v6126_v33 = vpop.eup %6125  ;;  %v1101_v15 = vmul.f32 %v6285_v32, %v6124_v44 }
  0xba   : > { %5513 = vmatmul.mubr.msk.bf16.gmra.mxu0 %vm1167_vm1, %v1139_v31  ;;  %v1142_v3 = vpack.c.bf16 %v1099_v50, %v1097_v43  ;;  %v1103_v11 = vmul.f32 %v6286_v42, %v6126_v33 }
  0xbb   : > { %5516 = vmatprep.mubr.msk.bf16.mxu0 %vm1167_vm1, %v1140_v45 }
  0xbc   : > { %v1143_v30 = vpack.c.bf16 %v1103_v11, %v1101_v15 }
  0xc2   : > { %5517 = vmatmul.mubr.msk.bf16.gmra.mxu0 %vm1167_vm1, %v1141_v51 }
  0xc3   : > { %5520 = vmatprep.mubr.msk.bf16.mxu0 %vm1167_vm1, %v1142_v3 }
  0xca   : > { %5521 = vmatmul.mubr.msk.bf16.gmra.mxu0 %vm1167_vm1, %v1143_v30  ;;  %vm2924_vm1 = vcmask 584704  }
 0x112   : > { %v5462_v62 = vpop.f32.mrf.mxu0 }
 0x113   : > { %v1566_v57 = vmul.f32 %v5462_v62, %v7019_v52 }
 0x114   : > { %v1302_v53 = vpop.f32.mrf.mxu0 }
 0x115   : > { %v1564_v2 = vmul.f32 %v7019_v52, %v1302_v53  ;;  %v1637_v40 = vadd.f32 %v7025_v54, %v1566_v57 }
 0x116   : > { %v5463_v23 = vpop.f32.mrf.mxu0 }
 0x117   : > { %v1567_v26 = vmul.f32 %v5463_v23, %v7019_v52  ;;  %v1635_v27 = vadd.f32 %v7025_v54, %v1564_v2 }
 0x118   : > { %v1305_v22 = vpop.f32.mrf.mxu0 }
 0x119   : > { %v1565_v18 = vmul.f32 %v7019_v52, %v1305_v22  ;;  %v1638_v19 = vadd.f32 %v7025_v54, %v1567_v26 }
 0x11a   : > { %v5466_v14 = vpop.f32.mrf.mxu0 }
 0x11b   : > { %v1570_v4 = vmul.f32 %v5466_v14, %v7019_v52  ;;  %v1636_v60 = vadd.f32 %v7025_v54, %v1565_v18 }
 0x11c   : > { %v1318_v47 = vpop.f32.mrf.mxu0 }
 0x11d   : > { %v1568_v25 = vmul.f32 %v7019_v52, %v1318_v47  ;;  %v1641_v1 = vadd.f32 %v7025_v54, %v1570_v4 }
 0x11e   : > { %v5467_v21 = vpop.f32.mrf.mxu0 }
 0x11f   : > { %v1571_v63 = vmul.f32 %v5467_v21, %v7019_v52  ;;  %v1639_v31 = vadd.f32 %v7025_v54, %v1568_v25 }
 0x120   : > { %v1321_v49 = vpop.f32.mrf.mxu0 }
 0x121   : > { %v1569_v45 = vmul.f32 %v7019_v52, %v1321_v49  ;;  %v1642_v9 = vadd.f32 %v7025_v54, %v1571_v63  ;;  %v5728_v63 = vld [vmem:[%s8440_s28 + $0x70] sm:$0xff]  }
 0x122   : > { %v5470_v34 = vpop.f32.mrf.mxu0 }
 0x123   : > { %v1574_v39 = vmul.f32 %v5470_v34, %v7019_v52  ;;  %v1640_v44 = vadd.f32 %v7025_v54, %v1569_v45 }
 0x124   : > { %v1334_v59 = vpop.f32.mrf.mxu0 }
 0x125   : > { %v1645_v36 = vadd.f32 %v7025_v54, %v1574_v39  ;;  %v1572_v61 = vmul.f32 %v7019_v52, %v1334_v59 }
 0x126   : > { %v5471_v55 = vpop.f32.mrf.mxu0 }
 0x127   : > { %v1701_v8 = vmax.f32 %v1637_v40, %v1645_v36  ;;  %v1643_v0 = vadd.f32 %v7025_v54, %v1572_v61  ;;  %v1575_v46 = vmul.f32 %v5471_v55, %v7019_v52 }
 0x128   : > { %v1337_v48 = vpop.f32.mrf.mxu0 }
 0x129   : > { %v1699_v13 = vmax.f32 %v1635_v27, %v1643_v0  ;;  %v1646_v6 = vadd.f32 %v7025_v54, %v1575_v46  ;;  %v1573_v41 = vmul.f32 %v7019_v52, %v1337_v48 }
 0x12a   : > { %v5474_v56 = vpop.f32.mrf.mxu0 }
 0x12b   : > { %v1702_v29 = vmax.f32 %v1638_v19, %v1646_v6  ;;  %v1644_v28 = vadd.f32 %v7025_v54, %v1573_v41  ;;  %v1578_v20 = vmul.f32 %v5474_v56, %v7019_v52 }
 0x12c   : > { %v1350_v58 = vpop.f32.mrf.mxu0 }
 0x12d   : > { %v1700_v12 = vmax.f32 %v1636_v60, %v1644_v28  ;;  %v1649_v17 = vadd.f32 %v7025_v54, %v1578_v20  ;;  %v1576_v10 = vmul.f32 %v7019_v52, %v1350_v58  ;;  %v5727_v58 = vld [vmem:[%s8440_s28 + $0x38] sm:$0xff]  }
 0x12e   : > { %v5475_v16 = vpop.f32.mrf.mxu0 }
 0x12f   : > { %v1705_v7 = vmax.f32 %v1641_v1, %v1649_v17  ;;  %v1647_v5 = vadd.f32 %v7025_v54, %v1576_v10  ;;  %v1579_v37 = vmul.f32 %v5475_v16, %v7019_v52  ;;  %v5726_v1 = vld [vmem:[%s8440_s28 + $0x78] sm:$0xff]   ;;  %v5729_v10 = vld [vmem:[%s8440_s28 + $0x30] sm:$0xff]  }
 0x130   : > { %v1353_v35 = vpop.f32.mrf.mxu0  ;;  %5348 = vmatprep.subr.bf16.mxu1 %v5726_v1 }
 0x131   : > { %v1703_v24 = vmax.f32 %v1639_v31, %v1647_v5  ;;  %v1650_v43 = vadd.f32 %v7025_v54, %v1579_v37  ;;  %v1577_v38 = vmul.f32 %v7019_v52, %v1353_v35  ;;  %5349 = vmatpush3.bf16.msra.mxu1 %v5727_v58  ;;  %v5730_v31 = vld [vmem:[%s8440_s28 + $0x68] sm:$0xff]   ;;  %v5732_v5 = vld [vmem:[%s8440_s28 + $0x60] sm:$0xff]  }
 0x132   : > { %v5478_v50 = vpop.f32.mrf.mxu0  ;;  %5350 = vmatprep.subr.bf16.mxu1 %v5728_v63 }
 0x133   : > { %v1706_v51 = vmax.f32 %v1642_v9, %v1650_v43  ;;  %v1648_v33 = vadd.f32 %v7025_v54, %v1577_v38  ;;  %v1582_v3 = vmul.f32 %v5478_v50, %v7019_v52  ;;  %v5733_v9 = vld [vmem:[%s8440_s28 + $0x20] sm:$0xff]   ;;  %v5735_v50 = vld [vmem:[%s8440_s28 + $0x18] sm:$0xff]  }
 0x134   : > { %v1366_v32 = vpop.f32.mrf.mxu0 }
 0x135   : > { %v1704_v15 = vmax.f32 %v1640_v44, %v1648_v33  ;;  %v1653_v42 = vadd.f32 %v7025_v54, %v1582_v3  ;;  %v1580_v11 = vmul.f32 %v7019_v52, %v1366_v32  ;;  %5351 = vmatpush3.bf16.msra.mxu1 %v5729_v10  ;;  %v5736_v44 = vld [vmem:[%s8440_s28 + $0x50] sm:$0xff]  }
 0x136   : > { %v5479_v30 = vpop.f32.mrf.mxu0  ;;  %5352 = vmatprep.subr.bf16.mxu1 %v5730_v31  ;;  %v5737_v3 = vld [vmem:[%s8440_s28 + $0x10] sm:$0xff]  }
 0x137   : > { %v7061_v62 = vmax.f32 %v1701_v8, %v1653_v42  ;;  %v1651_v53 = vadd.f32 %v7025_v54, %v1580_v11  ;;  %v1583_v23 = vmul.f32 %v5479_v30, %v7019_v52 }
 0x138   : > { %v1369_v22 = vpop.f32.mrf.mxu0 }
 0x139   : > { %v7065_v14 = vmax.f32 %v1699_v13, %v1651_v53  ;;  %v1654_v47 = vadd.f32 %v7025_v54, %v1583_v23  ;;  %v1581_v21 = vmul.f32 %v7019_v52, %v1369_v22 }
 0x13a   : > { %v5482_v49 = vpop.f32.mrf.mxu0 }
 0x13b   : > { %v7069_v57 = vmax.f32 %v1702_v29, %v1654_v47  ;;  %v1652_v2 = vadd.f32 %v7025_v54, %v1581_v21  ;;  %v1586_v34 = vmul.f32 %v5482_v49, %v7019_v52 }
 0x13c   : > { %v1382_v39 = vpop.f32.mrf.mxu0 }
 0x13d   : > { %v7073_v59 = vmax.f32 %v1700_v12, %v1652_v2  ;;  %v1657_v40 = vadd.f32 %v7025_v54, %v1586_v34  ;;  %v1584_v26 = vmul.f32 %v7019_v52, %v1382_v39 }
 0x13e   : > { %v5483_v36 = vpop.f32.mrf.mxu0 }
 0x13f   : > { %v7077_v61 = vmax.f32 %v1705_v7, %v1657_v40  ;;  %v1655_v27 = vadd.f32 %v7025_v54, %v1584_v26  ;;  %v1587_v55 = vmul.f32 %v5483_v36, %v7019_v52  ;;  %v5731_v7 = vld [vmem:[%s8440_s28 + $0x28] sm:$0xff]  }
 0x140   : > { %v1385_v18 = vpop.f32.mrf.mxu0  ;;  %5353 = vmatpush3.bf16.msra.mxu1 %v5731_v7 }
 0x141   : > { %v7081_v8 = vmax.f32 %v1703_v24, %v1655_v27  ;;  %v1658_v0 = vadd.f32 %v7025_v54, %v1587_v55  ;;  %v1585_v46 = vmul.f32 %v7019_v52, %v1385_v18  ;;  %5354 = vmatprep.subr.bf16.mxu1 %v5732_v5  ;;  %v5734_v24 = vld [vmem:[%s8440_s28 + $0x58] sm:$0xff]  }
 0x142   : > { %v5486_v4 = vpop.f32.mrf.mxu0 }
 0x143   : > { %v7085_v48 = vmax.f32 %v1706_v51, %v1658_v0  ;;  %v1656_v19 = vadd.f32 %v7025_v54, %v1585_v46  ;;  %v1590_v22 = vmul.f32 %v5486_v4, %v7019_v52 }
 0x144   : > { %v1398_v13 = vpop.f32.mrf.mxu0  ;;  %5355 = vmatpush3.bf16.msra.mxu1 %v5733_v9 }
 0x145   : > { %v7088_v6 = vmax.f32 %v1704_v15, %v1656_v19  ;;  %5356 = vmatprep.subr.bf16.mxu1 %v5734_v24  ;;  %v1588_v47 = vmul.f32 %v7019_v52, %v1398_v13  ;;  %v1661_v26 = vadd.f32 %v7025_v54, %v1590_v22 }
 0x146   : > { %v5487_v41 = vpop.f32.mrf.mxu0 }
 0x147   : > { %v1591_v25 = vmul.f32 %v5487_v41, %v7019_v52  ;;  %v1659_v27 = vadd.f32 %v7025_v54, %v1588_v47 }
 0x148   : > { %v1401_v56 = vpop.f32.mrf.mxu0  ;;  %5357 = vmatpush3.bf16.msra.mxu1 %v5735_v50 }
 0x149   : > { %v7092_v60 = vadd.f32 %v7025_v54, %v1591_v25  ;;  %5358 = vmatprep.subr.bf16.mxu1 %v5736_v44  ;;  %v1589_v21 = vmul.f32 %v7019_v52, %v1401_v56  ;;  %v1717_v56 = vmax.f32 %v7061_v62, %v1661_v26  ;;  %v1715_v1 = vmax.f32 %v7065_v14, %v1659_v27 }
 0x14a   : > { %v5490_v29 = vpop.f32.mrf.mxu0 }
 0x14b   : > { %v1718_v28 = vmax.f32 %v7069_v57, %v7092_v60  ;;  %v1594_v2 = vmul.f32 %v5490_v29, %v7019_v52  ;;  %v1660_v55 = vadd.f32 %v7025_v54, %v1589_v21 }
 0x14c   : > { %v1414_v20 = vpop.f32.mrf.mxu0  ;;  %5359 = vmatpush3.bf16.msra.mxu1 %v5737_v3 }
 0x14d   : > { %v1592_v34 = vmul.f32 %v7019_v52, %v1414_v20  ;;  %v1665_v46 = vadd.f32 %v7025_v54, %v1594_v2  ;;  %v1716_v58 = vmax.f32 %v7073_v59, %v1660_v55 }
 0x14e   : > { %v5491_v12 = vpop.f32.mrf.mxu0 }
 0x14f   : > { %v1595_v39 = vmul.f32 %v5491_v12, %v7019_v52  ;;  %v1663_v4 = vadd.f32 %v7025_v54, %v1592_v34  ;;  %v1721_v10 = vmax.f32 %v7077_v61, %v1665_v46 }
 0x150   : > { %v1417_v17 = vpop.f32.mrf.mxu0 }
 0x151   : > { %v1593_v36 = vmul.f32 %v7019_v52, %v1417_v17  ;;  %v1666_v19 = vadd.f32 %v7025_v54, %v1595_v39  ;;  %v1719_v31 = vmax.f32 %v7081_v8, %v1663_v4 }
 0x152   : > { %v5494_v16 = vpop.f32.mrf.mxu0 }
 0x153   : > { %v1598_v18 = vmul.f32 %v5494_v16, %v7019_v52  ;;  %v1664_v29 = vadd.f32 %v7025_v54, %v1593_v36 }
 0x154   : > { %v1430_v45 = vpop.f32.mrf.mxu0 }
 0x155   : > { %v1596_v13 = vmul.f32 %v7019_v52, %v1430_v45  ;;  %v1669_v63 = vadd.f32 %v7025_v54, %v1598_v18  ;;  %v1722_v45 = vmax.f32 %v7085_v48, %v1666_v19 }
 0x156   : > { %v5495_v37 = vpop.f32.mrf.mxu0 }
 0x157   : > { %v1599_v41 = vmul.f32 %v5495_v37, %v7019_v52  ;;  %v1667_v7 = vadd.f32 %v7025_v54, %v1596_v13  ;;  %v1720_v37 = vmax.f32 %v7088_v6, %v1664_v29  ;;  %v1725_v9 = vmax.f32 %v1717_v56, %v1669_v63 }
 0x158   : > { %v1433_v35 = vpop.f32.mrf.mxu0 }
 0x159   : > { %v1597_v20 = vmul.f32 %v7019_v52, %v1433_v35  ;;  %v1670_v14 = vadd.f32 %v7025_v54, %v1599_v41 }
 0x15a   : > { %v5498_v43 = vpop.f32.mrf.mxu0 }
 0x15b   : > { %v1602_v12 = vmul.f32 %v5498_v43, %v7019_v52  ;;  %v1668_v35 = vadd.f32 %v7025_v54, %v1597_v20  ;;  %v1726_v3 = vmax.f32 %v1718_v28, %v1670_v14 }
 0x15c   : > { %v1446_v38 = vpop.f32.mrf.mxu0 }
 0x15d   : > { %v1600_v16 = vmul.f32 %v7019_v52, %v1446_v38  ;;  %v1673_v24 = vadd.f32 %v7025_v54, %v1602_v12 }
 0x15e   : > { %v5499_v51 = vpop.f32.mrf.mxu0 }
 0x15f   : > { %v1603_v62 = vmul.f32 %v5499_v51, %v7019_v52  ;;  %v1671_v50 = vadd.f32 %v7025_v54, %v1600_v16 }
 0x160   : > { %v1449_v33 = vpop.f32.mrf.mxu0 }
 0x161   : > { %v1601_v59 = vmul.f32 %v7019_v52, %v1449_v33  ;;  %v1674_v44 = vadd.f32 %v7025_v54, %v1603_v62  ;;  %v1723_v33 = vmax.f32 %v1715_v1, %v1667_v7  ;;  %v7191_v28 = vmax.f32 %v1719_v31, %v1671_v50 }
 0x162   : > { %v5502_v32 = vpop.f32.mrf.mxu0 }
 0x163   : > { %v1606_v61 = vmul.f32 %v5502_v32, %v7019_v52  ;;  %v1672_v32 = vadd.f32 %v7025_v54, %v1601_v59 }
 0x164   : > { %v1462_v15 = vpop.f32.mrf.mxu0 }
 0x165   : > { %v1604_v8 = vmul.f32 %v7019_v52, %v1462_v15  ;;  %v1677_v22 = vadd.f32 %v7025_v54, %v1606_v61  ;;  %v7197_v26 = vmax.f32 %v1720_v37, %v1672_v32 }
 0x166   : > { %v5503_v42 = vpop.f32.mrf.mxu0 }
 0x167   : > { %v1607_v48 = vmul.f32 %v5503_v42, %v7019_v52  ;;  %v1675_v47 = vadd.f32 %v7025_v54, %v1604_v8 }
 0x168   : > { %v1465_v11 = vpop.f32.mrf.mxu0 }
 0x169   : > { %v1605_v43 = vmul.f32 %v7019_v52, %v1465_v11  ;;  %v1724_v11 = vmax.f32 %v1716_v58, %v1668_v35  ;;  %v1678_v2 = vadd.f32 %v7025_v54, %v1607_v48  ;;  %v1731_v46 = vmax.f32 %v1723_v33, %v1675_v47 }
 0x16a   : > { %v5506_v30 = vpop.f32.mrf.mxu0 }
 0x16b   : > { %v1610_v6 = vmul.f32 %v5506_v30, %v7019_v52  ;;  %v7186_v30 = vmax.f32 %v1721_v10, %v1673_v24  ;;  %v1676_v34 = vadd.f32 %v7025_v54, %v1605_v43  ;;  %v1734_v13 = vmax.f32 %v1726_v3, %v1678_v2 }
 0x16c   : > { %v1478_v53 = vpop.f32.mrf.mxu0 }
 0x16d   : > { %v1608_v15 = vmul.f32 %v7019_v52, %v1478_v53  ;;  %v7193_v53 = vmax.f32 %v1722_v45, %v1674_v44  ;;  %v1681_v39 = vadd.f32 %v7025_v54, %v1610_v6  ;;  %v1732_v41 = vmax.f32 %v1724_v11, %v1676_v34 }
 0x16e   : > { %v7132_v23 = vpop.f32.mrf.mxu0 }
 0x16f   : > { %v7200_v36 = vadd.f32 %v7025_v54, %v1608_v15  ;;  %v1611_v27 = vmul.f32 %v7132_v23, %v7019_v52  ;;  %v1737_v20 = vmax.f32 %v7186_v30, %v1681_v39 }
 0x170   : > { %v7137_v49 = vpop.f32.mrf.mxu0 }
 0x171   : > { %v1735_v63 = vmax.f32 %v7191_v28, %v7200_v36  ;;  %v1682_v12 = vadd.f32 %v7025_v54, %v1611_v27 }
 0x172   : > { %v5510_v40 = vpop.f32.mrf.mxu0 }
 0x173   : > { %v1614_v51 = vmul.f32 %v5510_v40, %v7019_v52  ;;  %v1738_v24 = vmax.f32 %v7193_v53, %v1682_v12 }
 0x174   : > { %v1494_v0 = vpop.f32.mrf.mxu0 }
 0x175   : > { %v1612_v21 = vmul.f32 %v7019_v52, %v1494_v0  ;;  %v1685_v40 = vadd.f32 %v7025_v54, %v1614_v51  ;;  %v1733_v0 = vmax.f32 %v1725_v9, %v1677_v22 }
 0x176   : > { %v5511_v25 = vpop.f32.mrf.mxu0 }
 0x177   : > { %v1615_v57 = vmul.f32 %v5511_v25, %v7019_v52  ;;  %v1683_v4 = vadd.f32 %v7025_v54, %v1612_v21  ;;  %v1609_v25 = vmul.f32 %v7019_v52, %v7137_v49  ;;  %v1741_v23 = vmax.f32 %v1733_v0, %v1685_v40 }
 0x178   : > { %v1497_v17 = vpop.f32.mrf.mxu0 }
 0x179   : > { %v1613_v55 = vmul.f32 %v7019_v52, %v1497_v17  ;;  %v1686_v56 = vadd.f32 %v7025_v54, %v1615_v57  ;;  %v1739_v31 = vmax.f32 %v1731_v46, %v1683_v4  ;;  %v1680_v7 = vadd.f32 %v7025_v54, %v1609_v25 }
 0x17a   : > { %v5514_v5 = vpop.f32.mrf.mxu0 }
 0x17b   : > { %v1684_v17 = vadd.f32 %v7025_v54, %v1613_v55  ;;  %v1618_v10 = vmul.f32 %v5514_v5, %v7019_v52  ;;  %v1742_v14 = vmax.f32 %v1734_v13, %v1686_v56  ;;  %v1736_v3 = vmax.f32 %v7197_v26, %v1680_v7 }
 0x17c   : > { %v1510_v38 = vpop.f32.mrf.mxu0 }
 0x17d   : > { %v1616_v59 = vmul.f32 %v7019_v52, %v1510_v38  ;;  %v1740_v48 = vmax.f32 %v1732_v41, %v1684_v17  ;;  %v1689_v43 = vadd.f32 %v7025_v54, %v1618_v10 }
 0x17e   : > { %v5515_v42 = vpop.f32.mrf.mxu0 }
 0x17f   : > { %v1619_v37 = vmul.f32 %v5515_v42, %v7019_v52  ;;  %v1687_v32 = vadd.f32 %v7025_v54, %v1616_v59  ;;  %v1745_v30 = vmax.f32 %v1737_v20, %v1689_v43 }
 0x180   : > { %v1513_v60 = vpop.f32.mrf.mxu0 }
 0x181   : > { %v1617_v50 = vmul.f32 %v7019_v52, %v1513_v60  ;;  %v1690_v15 = vadd.f32 %v7025_v54, %v1619_v37  ;;  %v1743_v40 = vmax.f32 %v1735_v63, %v1687_v32 }
 0x182   : > { %v5518_v18 = vpop.f32.mrf.mxu0 }
 0x183   : > { %v1622_v19 = vmul.f32 %v5518_v18, %v7019_v52  ;;  %v1688_v2 = vadd.f32 %v7025_v54, %v1617_v50  ;;  %v1746_v26 = vmax.f32 %v1738_v24, %v1690_v15 }
 0x184   : > { %v1526_v29 = vpop.f32.mrf.mxu0 }
 0x185   : > { %v1693_v1 = vadd.f32 %v7025_v54, %v1622_v19  ;;  %v1620_v58 = vmul.f32 %v7019_v52, %v1526_v29  ;;  %v1744_v13 = vmax.f32 %v1736_v3, %v1688_v2 }
 0x186   : > { %v5519_v49 = vpop.f32.mrf.mxu0 }
 0x187   : > { %v7218_v16 = vmax.f32 %v1741_v23, %v1693_v1  ;;  %v1691_v62 = vadd.f32 %v7025_v54, %v1620_v58  ;;  %v1623_v45 = vmul.f32 %v5519_v49, %v7019_v52 }
 0x188   : > { %v1529_v35 = vpop.f32.mrf.mxu0 }
 0x189   : > { %v1799_v61 = vmul.f32 -1.702, %v7218_v16  ;;  %v7226_v8 = vmax.f32 %v1739_v31, %v1691_v62  ;;  %v1694_v5 = vadd.f32 %v7025_v54, %v1623_v45  ;;  %v1621_v9 = vmul.f32 %v7019_v52, %v1529_v35 }
 0x18a   : > { %v5522_v44 = vpop.f32.mrf.mxu0 }
 0x18b   : > { %v1809_v38 = vmul.f32 1.442695, %v1799_v61  ;;  %v1797_v6 = vmul.f32 -1.702, %v7226_v8  ;;  %v7234_v51 = vmax.f32 %v1742_v14, %v1694_v5  ;;  %v1692_v33 = vadd.f32 %v7025_v54, %v1621_v9 }
 0x18c   : > { %v1626_v42 = vmul.f32 %v5522_v44, %v7019_v52  ;;  %v1542_v11 = vpop.f32.mrf.mxu0 }
 0x18d   : > { %6127 = vpow2.f32 %v1809_v38  ;;  %v1805_v22 = vmul.f32 1.442695, %v1797_v6  ;;  %v1800_v47 = vmul.f32 -1.702, %v7234_v51  ;;  %v7242_v21 = vmax.f32 %v1740_v48, %v1692_v33  ;;  %v5738_v38 = vld [vmem:[%s8440_s28 + $0x48] sm:$0xff]  }
 0x18e   : > { %v1697_v34 = vadd.f32 %v7025_v54, %v1626_v42  ;;  %v1624_v57 = vmul.f32 %v7019_v52, %v1542_v11  ;;  %v5523_v60 = vpop.f32.mrf.mxu0  ;;  %v5739_v6 = vld [vmem:[%s8440_s28 + $0x8] sm:$0xff]   ;;  %5360 = vmatprep.subr.bf16.mxu1 %v5738_v38 }
 0x18f   : > { %6129 = vpow2.f32 %v1805_v22  ;;  %v1811_v28 = vmul.f32 1.442695, %v1800_v47  ;;  %v1798_v53 = vmul.f32 -1.702, %v7242_v21  ;;  %v1627_v39 = vmul.f32 %v5523_v60, %v7019_v52  ;;  %5361 = vmatpush3.bf16.msra.mxu1 %v5739_v6 }
 0x190   : > { %v7249_v36 = vmax.f32 %v1745_v30, %v1697_v34  ;;  %v1695_v27 = vadd.f32 %v7025_v54, %v1624_v57  ;;  %v1545_v55 = vpop.f32.mrf.mxu0  ;;  %v5741_v30 = vld [vmem:[%s8440_s28] sm:$0xff]  }
 0x191   : > { %6131 = vpow2.f32 %v1811_v28  ;;  %v1807_v18 = vmul.f32 1.442695, %v1798_v53  ;;  %v1698_v0 = vadd.f32 %v7025_v54, %v1627_v39  ;;  %v1625_v46 = vmul.f32 %v7019_v52, %v1545_v55 }
 0x192   : > { %v1803_v4 = vmul.f32 -1.702, %v7249_v36  ;;  %v7255_v19 = vmax.f32 %v1743_v40, %v1695_v27 }
 0x193   : > { %6133 = vpow2.f32 %v1807_v18  ;;  %v7257_v41 = vmax.f32 %v1746_v26, %v1698_v0  ;;  %v1696_v25 = vadd.f32 %v7025_v54, %v1625_v46 }
 0x194   : > { %v1817_v56 = vmul.f32 1.442695, %v1803_v4  ;;  %v1801_v29 = vmul.f32 -1.702, %v7255_v19 }
 0x195   : > { %v1804_v20 = vmul.f32 -1.702, %v7257_v41  ;;  %v7262_v23 = vmax.f32 %v1744_v13, %v1696_v25 }
 0x196   : > { %6135 = vpow2.f32 %v1817_v56  ;;  %v1813_v1 = vmul.f32 1.442695, %v1801_v29 }
 0x197   : > { %v1819_v52 = vmul.f32 1.442695, %v1804_v20  ;;  %v1802_v58 = vmul.f32 -1.702, %v7262_v23 }
 0x198   : > { %6137 = vpow2.f32 %v1813_v1 }
 0x199   : > { %6139 = vpow2.f32 %v1819_v52  ;;  %v1815_v63 = vmul.f32 1.442695, %v1802_v58 }
 0x19a   : > { %v6128_v12 = vpop.eup %6127 }
 0x19b   : > { %v1823_v17 = vadd.f32 1.0, %v6128_v12  ;;  %6141 = vpow2.f32 %v1815_v63 }
 0x19c   : > { %v6130_v10 = vpop.eup %6129 }
 0x19d   : > { %6143 = vrcp.f32 %v1823_v17  ;;  %v1821_v54 = vadd.f32 1.0, %v6130_v10 }
 0x19e   : > { %v6132_v49 = vpop.eup %6131 }
 0x19f   : > { %6145 = vrcp.f32 %v1821_v54  ;;  %v1824_v31 = vadd.f32 1.0, %v6132_v49 }
 0x1a0   : > { %v6134_v62 = vpop.eup %6133 }
 0x1a1   : > { %6147 = vrcp.f32 %v1824_v31  ;;  %v1822_v45 = vadd.f32 1.0, %v6134_v62 }
 0x1a3   : > { %v6136_v7 = vpop.eup %6135  ;;  %6149 = vrcp.f32 %v1822_v45 }
 0x1a4   : > { %v1827_v14 = vadd.f32 1.0, %v6136_v7 }
 0x1a5   : > { %v6138_v59 = vpop.eup %6137 }
 0x1a6   : > { %v6140_v37 = vpop.eup %6139  ;;  %6151 = vrcp.f32 %v1827_v14  ;;  %v1825_v35 = vadd.f32 1.0, %v6138_v59 }
 0x1a7   : > { %v1828_v61 = vadd.f32 1.0, %v6140_v37 }
 0x1a8   : > { %v6142_v5 = vpop.eup %6141  ;;  %6153 = vrcp.f32 %v1825_v35 }
 0x1a9   : > { %6155 = vrcp.f32 %v1828_v61  ;;  %v1826_v9 = vadd.f32 1.0, %v6142_v5 }
 0x1aa   : > { %v6144_v24 = vpop.eup %6143 }
 0x1ab   : > { %6157 = vrcp.f32 %v1826_v9  ;;  %v1834_v43 = vmul.f32 %v6144_v24, %v7218_v16 }
 0x1ac   : > { %v6146_v48 = vpop.eup %6145 }
 0x1ad   : > { %v1830_v50 = vmul.f32 %v6146_v48, %v7226_v8  ;;  %v1857_v15 = vrot.slane %v1834_v43, 5 }
 0x1ae   : > { %v6148_v44 = vpop.eup %6147 }
 0x1af   : > { %v1854_v33 = vrot.slane %v1830_v50, 5  ;;  %v1836_v3 = vmul.f32 %v6148_v44, %v7234_v51  ;;  %v5740_v51 = vld [vmem:[%s8440_s28 + $0x40] sm:$0xff]  }
 0x1b0   : > { %v6150_v32 = vpop.eup %6149  ;;  %5362 = vmatprep.subr.bf16.mxu1 %v5740_v51 }
 0x1b1   : > { %v1859_v42 = vrot.slane %v1836_v3, 5  ;;  %v1832_v16 = vmul.f32 %v6150_v32, %v7242_v21  ;;  %v7276_v11 = vsel %vm1853_vm2, 0.0, %v1854_v33  ;;  %5363 = vmatpush3.bf16.msra.mxu1 %v5741_v30 }
 0x1b2   : > { %v1950_v53 = vrot.slane %v7276_v11, 3  ;;  %v1883_v4 = vrot.slane %v7276_v11, 1 }
 0x1b3   : > { %v6152_v8 = vpop.eup %6151  ;;  %v7279_v22 = vsel %vm1853_vm2, %v1857_v15, %v1859_v42  ;;  %v1855_v47 = vrot.slane %v1832_v16, 5 }
 0x1b4   : > { %v1842_v57 = vmul.f32 %v6152_v8, %v7249_v36  ;;  %v1888_v31 = vrot.slane %v7279_v22, 1 }
 0x1b5   : > { %v6154_v2 = vpop.eup %6153  ;;  %v7288_v21 = vsel %vm1853_vm2, %v1854_v33, %v1855_v47  ;;  %v7291_v34 = vsel %vm1853_vm2, %v1855_v47, %v1857_v15 }
 0x1b6   : > { %v6156_v60 = vpop.eup %6155  ;;  %v1838_v28 = vmul.f32 %v6154_v2, %v7255_v19  ;;  %v1951_v39 = vrot.slane %v7288_v21, 3  ;;  %v1953_v40 = vrot.slane %v7291_v34, 3  ;;  %v1884_v27 = vrot.slane %v7288_v21, 1  ;;  %v7307_v19 = vld [vmem:[%s8440_s28 + $0x98] sm:$0xff]  }
 0x1b7   : > { %v1844_v26 = vmul.f32 %v6156_v60, %v7257_v41  ;;  %v1886_v55 = vrot.slane %v7291_v34, 1  ;;  %v1865_v13 = vrot.slane %v1842_v57, 5  ;;  %5524 = vmatprep.subr.bf16.mxu1 %v7307_v19  ;;  %v1925_v30 = vrot.slane %v7288_v21, 2 }
 0x1b8   : > { %v6158_v36 = vpop.eup %6157  ;;  %v1861_v18 = vrot.slane %v1838_v28, 5  ;;  %v1952_v0 = vsel %vm1949_vm3, %v1950_v53, %v1951_v39  ;;  %v1954_v46 = vsel %vm1949_vm3, %v1951_v39, %v1953_v40  ;;  %v1885_v20 = vsel %vm1882_vm4, %v1883_v4, %v1884_v27 }
 0x1b9   : > { %v1867_v41 = vrot.slane %v1844_v26, 5  ;;  %v1840_v25 = vmul.f32 %v6158_v36, %v7262_v23  ;;  %v5672_v56 = vpack.i.bf16 %v1954_v46, %v1952_v0  ;;  %v1887_v1 = vsel %vm1882_vm4, %v1884_v27, %v1886_v55 }
 0x1ba   : > { %v7311_v29 = vsel %vm1853_vm2, %v1859_v42, %v1861_v18  ;;  %v1955_v23 = vrot.slane %v7279_v22, 3  ;;  %v5677_v49 = vpack.i.bf16 %v1887_v1, %v1885_v20  ;;  %v1889_v50 = vsel %vm1882_vm4, %v1886_v55, %v1888_v31 }
 0x1bb   : > { %v7317_v52 = vsel %vm1853_vm2, %v1865_v13, %v1867_v41  ;;  %v1863_v58 = vrot.slane %v1840_v25, 5  ;;  %5673 = vrot.lane.b32.xlu0 %v5672_v56, %s8374_s22  ;;  %v7321_v63 = vsel %vm1853_vm2, %v1867_v41, 0.0  ;;  %v1957_v12 = vrot.slane %v7311_v29, 3 }
 0x1bc   : > { %v1890_v17 = vrot.slane %v7311_v29, 1  ;;  %v1956_v62 = vsel %vm1949_vm3, %v1953_v40, %v1955_v23  ;;  %v1963_v35 = vrot.slane %v7317_v52, 3  ;;  %v1965_v61 = vrot.slane %v7321_v63, 3 }
 0x1bd   : > { %v7327_v10 = vsel %vm1853_vm2, %v1861_v18, %v1863_v58  ;;  %v7330_v54 = vsel %vm1853_vm2, %v1863_v58, %v1865_v13  ;;  %v1958_v45 = vsel %vm1949_vm3, %v1955_v23, %v1957_v12  ;;  %v1896_v15 = vrot.slane %v7317_v52, 1 }
 0x1be   : > { %v1959_v7 = vrot.slane %v7327_v10, 3  ;;  %v1961_v14 = vrot.slane %v7330_v54, 3  ;;  %v5682_v59 = vpack.i.bf16 %v1958_v45, %v1956_v62  ;;  %v1891_v37 = vsel %vm1882_vm4, %v1888_v31, %v1890_v17 }
 0x1bf   : > { %5678 = vrot.lane.b32.xlu0 %v5677_v49, %s8374_s22  ;;  %v1892_v24 = vrot.slane %v7327_v10, 1  ;;  %v1894_v48 = vrot.slane %v7330_v54, 1  ;;  %v5687_v38 = vpack.i.bf16 %v1891_v37, %v1889_v50  ;;  %v1966_v6 = vsel %vm1949_vm3, %v1963_v35, %v1965_v61 }
 0x1c0   : > { %v1960_v5 = vsel %vm1949_vm3, %v1957_v12, %v1959_v7  ;;  %v1962_v9 = vsel %vm1949_vm3, %v1959_v7, %v1961_v14  ;;  %5683 = vrot.lane.b32.xlu1 %v5682_v59, %s8374_s22  ;;  %v1964_v44 = vsel %vm1949_vm3, %v1961_v14, %v1963_v35  ;;  %v1898_v42 = vrot.slane %v7321_v63, 1 }
 0x1c1   : > { %v5692_v43 = vpack.i.bf16 %v1962_v9, %v1960_v5  ;;  %v1893_v33 = vsel %vm1882_vm4, %v1890_v17, %v1892_v24  ;;  %v1895_v3 = vsel %vm1882_vm4, %v1892_v24, %v1894_v48  ;;  %v5702_v32 = vpack.i.bf16 %v1966_v6, %v1964_v44  ;;  %v5743_v17 = vld [vmem:[%s8440_s28 + $0x90] sm:$0xff]   ;;  %v5744_v5 = vld [vmem:[%s8440_s28 + $0x88] sm:$0xff]  }
 0x1c2   : > { %v5697_v16 = vpack.i.bf16 %v1895_v3, %v1893_v33  ;;  %v1897_v8 = vsel %vm1882_vm4, %v1894_v48, %v1896_v15  ;;  %v1899_v47 = vsel %vm1882_vm4, %v1896_v15, %v1898_v42  ;;  %v1927_v2 = vrot.slane %v7291_v34, 2  ;;  %v5745_v3 = vld [vmem:[%s8440_s28 + $0x80] sm:$0xff]  }
 0x1c3   : > { %5693 = vrot.lane.b32.xlu0 %v5692_v43, %s8374_s22  ;;  %v5707_v51 = vpack.i.bf16 %v1899_v47, %v1897_v8  ;;  %v1924_v60 = vrot.slane %v7276_v11, 2  ;;  %v1931_v18 = vrot.slane %v7311_v29, 2  ;;  %v1929_v13 = vrot.slane %v7279_v22, 2 }
 0x1c4   : > { %5688 = vrot.lane.b32.xlu1 %v5687_v38, %s8374_s22  ;;  %v1928_v40 = vsel %vm1264_vm0, %v1925_v30, %v1927_v2  ;;  %v1933_v62 = vrot.slane %v7327_v10, 2  ;;  %v1935_v45 = vrot.slane %v7330_v54, 2  ;;  %v1937_v33 = vrot.slane %v7317_v52, 2 }
 0x1c5   : > { %v1926_v39 = vsel %vm1264_vm0, %v1924_v60, %v1925_v30  ;;  %v1930_v23 = vsel %vm1264_vm0, %v1927_v2, %v1929_v13  ;;  %v1932_v12 = vsel %vm1264_vm0, %v1929_v13, %v1931_v18 }
 0x1c6   : > { %v1934_v48 = vsel %vm1264_vm0, %v1931_v18, %v1933_v62  ;;  %v1936_v43 = vsel %vm1264_vm0, %v1933_v62, %v1935_v45  ;;  %v1938_v2 = vsel %vm1264_vm0, %v1935_v45, %v1937_v33  ;;  %v1992_v18 = vrot.slane %v7276_v11, 4 }
 0x1c7   : > { %5703 = vrot.lane.b32.xlu0 %v5702_v32, %s8374_s22 }
 0x1c8   : > { %5698 = vrot.lane.b32.xlu1 %v5697_v16, %s8374_s22  ;;  %v1939_v16 = vrot.slane %v7321_v63, 2 }
 0x1cc   : > { %5708 = vrot.lane.b32.xlu1 %v5707_v51, %s8374_s22  ;;  %s6353_s22 = smov 16  }
 0x22d   : > { %v5674_v57 = vpop.permute.xlu0 %5673 }
 0x22e   : > { %v5676_v28 = vunpack.i.h.bf16 %v5674_v57  ;;  %v5675_v53 = vunpack.i.l.bf16 %v5674_v57  ;;  %v1940_v57 = vsel %vm1264_vm0, %v1937_v33, %v1939_v16  ;;  %v5757_v16 = vld [vmem:[%s8441_s7 + $0x10] sm:$0xff]  }
 0x230   : > { %v2026_v26 = vsel %vm2017_vm5, %v1926_v39, %v5675_v53  ;;  %v2027_v27 = vsel %vm2017_vm5, %v1928_v40, %v5676_v28 }
 0x231   : > { %v5679_v55 = vpop.permute.xlu0 %5678  ;;  %v2035_v36 = vpack.c.bf16 %v2027_v27, %v2026_v26 }
 0x232   : > { %v5681_v0 = vunpack.i.h.bf16 %v5679_v55  ;;  %v5680_v46 = vunpack.i.l.bf16 %v5679_v55  ;;  %v5684_v4 = vpop.permute.xlu1 %5683  ;;  %v1993_v55 = vrot.slane %v7288_v21, 4 }
 0x233   : > { %2210 = vmatprep.mubr.bf16.mxu1 %v2035_v36  ;;  %v5686_v41 = vunpack.i.h.bf16 %v5684_v4  ;;  %v5685_v25 = vunpack.i.l.bf16 %v5684_v4  ;;  %v1995_v36 = vrot.slane %v7291_v34, 4 }
 0x234   : > { %v2018_v56 = vsel %vm2017_vm5, %v7276_v11, %v5680_v46  ;;  %v2019_v20 = vsel %vm2017_vm5, %v7288_v21, %v5681_v0  ;;  %v1994_v4 = vsel %vm1991_vm6, %v1992_v18, %v1993_v55  ;;  %v1997_v11 = vrot.slane %v7279_v22, 4 }
 0x235   : > { %v5694_v1 = vpop.permute.xlu0 %5693  ;;  %v2034_v58 = vpack.c.bf16 %v2019_v20, %v2018_v56  ;;  %v2028_v49 = vsel %vm2017_vm5, %v1930_v23, %v5685_v25  ;;  %v2029_v31 = vsel %vm2017_vm5, %v1932_v12, %v5686_v41  ;;  %v1996_v13 = vsel %vm1991_vm6, %v1993_v55, %v1995_v36 }
 0x236   : > { %v5689_v7 = vpop.permute.xlu1 %5688  ;;  %v5696_v14 = vunpack.i.h.bf16 %v5694_v1  ;;  %v5695_v59 = vunpack.i.l.bf16 %v5694_v1  ;;  %v2038_v37 = vpack.c.bf16 %v2029_v31, %v2028_v49  ;;  %v1999_v25 = vrot.slane %v7311_v29, 4 }
 0x237   : > { %2211 = vmatmul.mubr.bf16.vlgmr.msra.gmra.mxu1 %v2034_v58  ;;  %v5691_v35 = vunpack.i.h.bf16 %v5689_v7  ;;  %v5690_v61 = vunpack.i.l.bf16 %v5689_v7  ;;  %v2036_v21 = vpack.c.bf16 %v1996_v13, %v1994_v4  ;;  %v2003_v56 = vrot.slane %v7330_v54, 4 }
 0x238   : > { %5525 = vmatpush3.bf16.msra.mxu1 %v7307_v19  ;;  %2218 = vmatprep.mubr.bf16.mxu1 %v2038_v37  ;;  %v2030_v44 = vsel %vm2017_vm5, %v1934_v48, %v5695_v59  ;;  %v2031_v19 = vsel %vm2017_vm5, %v1936_v43, %v5696_v14  ;;  %v2000_v20 = vsel %vm1991_vm6, %v1997_v11, %v1999_v25  ;;  %v5746_v37 = vld [vmem:[%s8441_s7 + $0x78] sm:$0xff]   ;;  %v5751_v48 = vld [vmem:[%s8441_s7 + $0x28] sm:$0xff]  }
 0x239   : > { %5526 = vmatprep.subr.bf16.mxu1 %v5743_v17  ;;  %v2020_v9 = vsel %vm2017_vm5, %v7291_v34, %v5690_v61  ;;  %v2021_v24 = vsel %vm2017_vm5, %v7279_v22, %v5691_v35  ;;  %v5704_v38 = vpop.permute.xlu0 %5703  ;;  %v2041_v42 = vpack.c.bf16 %v2031_v19, %v2030_v44  ;;  %v2001_v34 = vrot.slane %v7327_v10, 4  ;;  %v5749_v61 = vld [vmem:[%s8441_s7 + $0x30] sm:$0xff]   ;;  %v5753_v19 = vld [vmem:[%s8441_s7 + $0x20] sm:$0xff]  }
 0x23a   : > { %v5699_v50 = vpop.permute.xlu1 %5698  ;;  %v2037_v6 = vpack.c.bf16 %v2021_v24, %v2020_v9  ;;  %v5706_v8 = vunpack.i.h.bf16 %v5704_v38  ;;  %v5705_v47 = vunpack.i.l.bf16 %v5704_v38  ;;  %v1998_v23 = vsel %vm1991_vm6, %v1995_v36, %v1997_v11  ;;  %v5750_v9 = vld [vmem:[%s8441_s7 + $0x68] sm:$0xff]  }
 0x23b   : > { %v5701_v32 = vunpack.i.h.bf16 %v5699_v50  ;;  %v5700_v15 = vunpack.i.l.bf16 %v5699_v50  ;;  %v2002_v1 = vsel %vm1991_vm6, %v1999_v25, %v2001_v34  ;;  %v2004_v58 = vsel %vm1991_vm6, %v2001_v34, %v2003_v56  ;;  %v5752_v50 = vld [vmem:[%s8441_s7 + $0x60] sm:$0xff]  }
 0x23c   : > { %5527 = vmatpush3.bf16.msra.mxu1 %v5743_v17  ;;  %v2032_v28 = vsel %vm2017_vm5, %v1938_v2, %v5705_v47  ;;  %v2033_v53 = vsel %vm2017_vm5, %v1940_v57, %v5706_v8  ;;  %v2039_v12 = vpack.c.bf16 %v2000_v20, %v1998_v23  ;;  %v2007_v22 = vrot.slane %v7321_v63, 4  ;;  %v5748_v63 = vld [vmem:[%s8441_s7 + $0x70] sm:$0xff]   ;;  %v5758_v47 = vld [vmem:[%s8441_s7 + $0x48] sm:$0xff]  }
 0x23d   : > { %5528 = vmatprep.subr.bf16.mxu1 %v5744_v5  ;;  %v2022_v51 = vsel %vm2017_vm5, %v7311_v29, %v5700_v15  ;;  %v2023_v30 = vsel %vm2017_vm5, %v7327_v10, %v5701_v32  ;;  %v2044_v27 = vpack.c.bf16 %v2033_v53, %v2032_v28  ;;  %v2042_v29 = vpack.c.bf16 %v2004_v58, %v2002_v1  ;;  %v5756_v15 = vld [vmem:[%s8441_s7 + $0x50] sm:$0xff]   ;;  %v5759_v28 = vld [vmem:[%s8441_s7 + $0x8] sm:$0xff]   ;;  %v7496_v53 = vld [vmem:[%s8443_s6] ss:$0 sm:$0xff] }
 0x23e   : > { %v5709_v60 = vpop.permute.xlu1 %5708  ;;  %v2040_v39 = vpack.c.bf16 %v2023_v30, %v2022_v51  ;;  %v2005_v10 = vrot.slane %v7317_v52, 4  ;;  %v7488_v30 = vld [vmem:[%s8442_s2] ss:$0 sm:$0xff]  ;;  %s8444_s2 = smov 64  }
 0x23f   : > { %2219 = vmatmul.mubr.bf16.gmra.mxu1 %v2037_v6  ;;  %v5711_v40 = vunpack.i.h.bf16 %v5709_v60  ;;  %v5710_v26 = vunpack.i.l.bf16 %v5709_v60  ;;  %v5754_v6 = vld [vmem:[%s8441_s7 + $0x58] sm:$0xff]  }
 0x240   : > { %2226 = vmatprep.mubr.bf16.mxu1 %v2041_v42  ;;  %5529 = vmatpush3.bf16.msra.mxu1 %v5744_v5  ;;  %v2008_v17 = vsel %vm1991_vm6, %v2005_v10, %v2007_v22 }
 0x241   : > { %5530 = vmatprep.subr.bf16.mxu1 %v5745_v3  ;;  %v2024_v0 = vsel %vm2017_vm5, %v7330_v54, %v5710_v26  ;;  %v2025_v46 = vsel %vm2017_vm5, %v7317_v52, %v5711_v40  ;;  %v2006_v54 = vsel %vm1991_vm6, %v2003_v56, %v2005_v10  ;;  %v5747_v52 = vld [vmem:[%s8441_s7 + $0x38] sm:$0xff]  }
 0x242   : > { %v2043_v41 = vpack.c.bf16 %v2025_v46, %v2024_v0  ;;  %v2045_v49 = vpack.c.bf16 %v2008_v17, %v2006_v54 }
 0x244   : > { %5531 = vmatpush3.bf16.msra.mxu1 %v5745_v3  ;;  %v5755_v3 = vld [vmem:[%s8441_s7 + $0x18] sm:$0xff]  }
 0x245   : > { %5396 = vmatprep.subr.bf16.mxu1 %v5746_v37 }
 0x247   : > { %2227 = vmatmul.mubr.bf16.gmra.mxu1 %v2040_v39 }
 0x248   : > { %2234 = vmatprep.mubr.bf16.mxu1 %v2044_v27 }
 0x24f   : > { %2235 = vmatmul.mubr.bf16.gmra.mxu1 %v2043_v41 }
 0x250   : > { %5532 = vmatprep.mubr.msk.bf16.mxu1 %vm2017_vm5, %v2036_v21 }
 0x257   : > { %5533 = vmatmul.mubr.msk.bf16.vlgmr.msra.gmra.mxu1 %vm2017_vm5, %v2039_v12 }
 0x258   : > { %5536 = vmatprep.mubr.msk.bf16.mxu1 %vm2017_vm5, %v2042_v29  ;;  %5397 = vmatpush3.bf16.msra.mxu1 %v5747_v52 }
 0x259   : > { %5398 = vmatprep.subr.bf16.mxu1 %v5748_v63 }
 0x25c   : > { %5399 = vmatpush3.bf16.msra.mxu1 %v5749_v61 }
 0x25d   : > { %5400 = vmatprep.subr.bf16.mxu1 %v5750_v9 }
 0x25f   : > { %5537 = vmatmul.mubr.msk.bf16.gmra.mxu1 %vm2017_vm5, %v2045_v49 }
 0x260   : > { %5401 = vmatpush3.bf16.msra.mxu1 %v5751_v48 }
 0x261   : > { %5402 = vmatprep.subr.bf16.mxu1 %v5752_v50 }
 0x264   : > { %5403 = vmatpush3.bf16.msra.mxu1 %v5753_v19 }
 0x265   : > { %5404 = vmatprep.subr.bf16.mxu1 %v5754_v6 }
 0x268   : > { %5405 = vmatpush3.bf16.msra.mxu1 %v5755_v3 }
 0x269   : > { %5406 = vmatprep.subr.bf16.mxu1 %v5756_v15 }
 0x26c   : > { %5407 = vmatpush3.bf16.msra.mxu1 %v5757_v16 }
 0x26d   : > { %5408 = vmatprep.subr.bf16.mxu1 %v5758_v47 }
 0x270   : > { %5409 = vmatpush3.bf16.msra.mxu1 %v5759_v28 }
 0x2f7   : > { %v5364_v31 = vpop.f32.mrf.mxu1 }
 0x2f9   : > { %v5365_v62 = vpop.f32.mrf.mxu1 }
 0x2fa   : > { %v5366_v57 = vadd.f32 %v5365_v62, %v5364_v31 }
 0x2fb   : > { %v5367_v45 = vpop.f32.mrf.mxu1 }
 0x2fd   : > { %v5368_v7 = vpop.f32.mrf.mxu1 }
 0x2fe   : > { %v5369_v46 = vadd.f32 %v5368_v7, %v5367_v45 }
 0x2ff   : > { %v5370_v14 = vpop.f32.mrf.mxu1 }
 0x301   : > { %v5371_v59 = vpop.f32.mrf.mxu1 }
 0x302   : > { %v5372_v51 = vadd.f32 %v5371_v59, %v5370_v14 }
 0x303   : > { %v5373_v35 = vpop.f32.mrf.mxu1 }
 0x305   : > { %v5374_v5 = vpop.f32.mrf.mxu1 }
 0x306   : > { %v5375_v40 = vadd.f32 %v5374_v5, %v5373_v35 }
 0x307   : > { %v7447_v24 = vpop.f32.mrf.mxu1 }
 0x309   : > { %v7452_v43 = vpop.f32.mrf.mxu1 }
 0x30b   : > { %v7457_v44 = vpop.f32.mrf.mxu1 }
 0x30d   : > { %v7462_v38 = vpop.f32.mrf.mxu1 }
 0x30f   : > { %v7467_v33 = vpop.f32.mrf.mxu1 }
 0x311   : > { %v5383_v32 = vpop.f32.mrf.mxu1 }
 0x312   : > { %v5384_v9 = vadd.f32 %v5383_v32, %v7467_v33 }
 0x313   : > { %v7475_v42 = vpop.f32.mrf.mxu1 }
 0x315   : > { %v7480_v8 = vpop.f32.mrf.mxu1 }
 0x317   : > { %v5534_v2 = vpop.f32.mrf.mxu1 }
 0x318   : > { %v2286_v60 = vadd.f32 %v5534_v2, %v5372_v51 }
 0x319   : > { %v2277_v39 = vpop.f32.mrf.mxu1 }
 0x31a   : > { %v2316_v26 = vmul.f32 %v7488_v30, %v2286_v60  ;;  %v2278_v27 = vadd.f32 %v5366_v57, %v2277_v39 }
 0x31b   : > { %v5535_v55 = vpop.f32.mrf.mxu1 }
 0x31c   : > { %v2330_v36 = vadd.f32 %v7496_v53, %v2316_v26  ;;  %v2314_v18 = vmul.f32 %v7488_v30, %v2278_v27  ;;  %v2289_v0 = vadd.f32 %v5535_v55, %v5375_v40 }
 0x31d   : > { %v2280_v4 = vpop.f32.mrf.mxu1 }
 0x31e   : > { %v2346_v13 = vcombine.high %v2330_v36, %v2330_v36  ;;  %v2328_v41 = vadd.f32 %v7496_v53, %v2314_v18  ;;  %v2317_v25 = vmul.f32 %v7488_v30, %v2289_v0  ;;  %v2281_v21 = vadd.f32 %v5369_v46, %v2280_v4 }
 0x31f   : > { %v2389_v12 = vsel %vm2360_vm7, %v2330_v36, -inf  ;;  %v5538_v5 = vpop.f32.mrf.mxu1  ;;  %v5378_v0 = vadd.f32 %v7452_v43, %v7447_v24 }
 0x320   : > { %v2396_v34 = vsel %vm2360_vm7, %v2346_v13, -inf  ;;  %v2344_v56 = vcombine.high %v2328_v41, %v2328_v41  ;;  %v2361_v11 = vsel %vm2360_vm7, %v2328_v41, -inf  ;;  %v2331_v20 = vadd.f32 %v7496_v53, %v2317_v25 }
 0x321   : > { %v2397_v1 = vrot.slane %v2396_v34, 4  ;;  %v2362_v58 = vrot.slane %v2361_v11, 4  ;;  %v2315_v23 = vmul.f32 %v7488_v30, %v2281_v21  ;;  %v2390_v7 = vrot.slane %v2389_v12, 4  ;;  %v2293_v18 = vpop.f32.mrf.mxu1 }
 0x322   : > { %v2368_v29 = vsel %vm2360_vm7, %v2344_v56, -inf  ;;  %v2347_v10 = vcombine.high %v2331_v20, %v2331_v20  ;;  %v2403_v22 = vsel %vm2360_vm7, %v2331_v20, -inf  ;;  %v2302_v47 = vadd.f32 %v5538_v5, %v5384_v9 }
 0x323   : > { %v2398_v54 = vmax.f32 %v2396_v34, %v2397_v1  ;;  %v2363_v17 = vmax.f32 %v2361_v11, %v2362_v58  ;;  %v2369_v49 = vrot.slane %v2368_v29, 4  ;;  %v2404_v31 = vrot.slane %v2403_v22, 4  ;;  %v5539_v24 = vpop.f32.mrf.mxu1 }
 0x324   : > { %v2410_v62 = vsel %vm2360_vm7, %v2347_v10, -inf  ;;  %v2329_v45 = vadd.f32 %v7496_v53, %v2315_v23  ;;  %v2391_v16 = vmax.f32 %v2389_v12, %v2390_v7  ;;  %v2320_v33 = vmul.f32 %v7488_v30, %v2302_v47 }
 0x325   : > { %v2399_v14 = vrot.slane %v2398_v54, 2  ;;  %v2364_v59 = vrot.slane %v2363_v17, 2  ;;  %v2370_v37 = vmax.f32 %v2368_v29, %v2369_v49  ;;  %v2405_v52 = vmax.f32 %v2403_v22, %v2404_v31 }
 0x326   : > { %v2411_v63 = vrot.slane %v2410_v62, 4  ;;  %v2345_v35 = vcombine.high %v2329_v45, %v2329_v45  ;;  %v2375_v61 = vsel %vm2360_vm7, %v2329_v45, -inf  ;;  %v2392_v55 = vrot.slane %v2391_v16, 2 }
 0x327   : > { %v2400_v48 = vmax.f32 %v2398_v54, %v2399_v14  ;;  %v2365_v50 = vmax.f32 %v2363_v17, %v2364_v59  ;;  %v2371_v19 = vrot.slane %v2370_v37, 2  ;;  %v2376_v3 = vrot.slane %v2375_v61, 4 }
 0x328   : > { %v2412_v6 = vmax.f32 %v2410_v62, %v2411_v63  ;;  %v2382_v15 = vsel %vm2360_vm7, %v2345_v35, -inf  ;;  %v2406_v2 = vrot.slane %v2405_v52, 2  ;;  %v2393_v21 = vmax.f32 %v2391_v16, %v2392_v55 }
 0x329   : > { %v2401_v51 = vrot.slane %v2400_v48, 1  ;;  %v2377_v57 = vmax.f32 %v2375_v61, %v2376_v3  ;;  %v2383_v60 = vrot.slane %v2382_v15, 4  ;;  %v2366_v28 = vrot.slane %v2365_v50, 1 }
 0x32a   : > { %v2372_v39 = vmax.f32 %v2370_v37, %v2371_v19  ;;  %v2413_v40 = vrot.slane %v2412_v6, 2  ;;  %v2407_v36 = vmax.f32 %v2405_v52, %v2406_v2  ;;  %v2334_v34 = vadd.f32 %v7496_v53, %v2320_v33  ;;  %v2296_v52 = vpop.f32.mrf.mxu1 }
 0x32b   : > { %v2378_v26 = vrot.slane %v2377_v57, 2  ;;  %v2384_v27 = vmax.f32 %v2382_v15, %v2383_v60  ;;  %v7516_v32 = vmax.f32 %v2400_v48, %v2401_v51  ;;  %v7520_v46 = vmax.f32 %v2365_v50, %v2366_v28 }
 0x32c   : > { %v2373_v4 = vrot.slane %v2372_v39, 1  ;;  %v2414_v13 = vmax.f32 %v2412_v6, %v2413_v40  ;;  %v2294_v56 = vadd.f32 %v5378_v0, %v2293_v18  ;;  %v5381_v11 = vadd.f32 %v7462_v38, %v7457_v44 }
 0x32d   : > { %v2379_v41 = vmax.f32 %v2377_v57, %v2378_v26  ;;  %v2385_v25 = vrot.slane %v2384_v27, 2  ;;  %v5387_v20 = vadd.f32 %v7480_v8, %v7475_v42  ;;  %v2520_v1 = vmul.f32 -1.702, %v7516_v32 }
 0x32e   : > { %v2408_v58 = vrot.slane %v2407_v36, 1  ;;  %v7528_v43 = vmax.f32 %v2372_v39, %v2373_v4  ;;  %v2515_v23 = vmul.f32 -1.702, %v7520_v46  ;;  %v2350_v12 = vcombine.high %v2334_v34, %v2334_v34 }
 0x32f   : > { %v2445_v29 = vsel %vm2360_vm7, %v2334_v34, -inf  ;;  %v2415_v10 = vrot.slane %v2414_v13, 1  ;;  %v2380_v22 = vrot.slane %v2379_v41, 1  ;;  %v2386_v54 = vmax.f32 %v2384_v27, %v2385_v25 }
 0x330   : > { %v2446_v17 = vrot.slane %v2445_v29, 4  ;;  %v2394_v49 = vrot.slane %v2393_v21, 1  ;;  %v2452_v44 = vsel %vm2360_vm7, %v2350_v12, -inf  ;;  %v2318_v38 = vmul.f32 %v7488_v30, %v2294_v56 }
 0x331   : > { %v2305_v42 = vadd.f32 %v5539_v24, %v5387_v20  ;;  %v2541_v8 = vmul.f32 1.442695, %v2520_v1  ;;  %v7534_v31 = vmax.f32 %v2407_v36, %v2408_v58  ;;  %v2453_v45 = vrot.slane %v2452_v44, 4 }
 0x332   : > { %v2447_v62 = vmax.f32 %v2445_v29, %v2446_v17  ;;  %v2516_v7 = vmul.f32 -1.702, %v7528_v43  ;;  %v2531_v14 = vmul.f32 1.442695, %v2515_v23  ;;  %v2332_v59 = vadd.f32 %v7496_v53, %v2318_v38 }
 0x333   : > { %v2321_v37 = vmul.f32 %v7488_v30, %v2305_v42  ;;  %v7539_v63 = vmax.f32 %v2414_v13, %v2415_v10  ;;  %v7541_v35 = vmax.f32 %v2379_v41, %v2380_v22  ;;  %v2387_v61 = vrot.slane %v2386_v54, 1 }
 0x334   : > { %v2454_v5 = vmax.f32 %v2452_v44, %v2453_v45  ;;  %v2448_v9 = vrot.slane %v2447_v62, 2  ;;  %v2348_v48 = vcombine.high %v2332_v59, %v2332_v59  ;;  %v2417_v50 = vsel %vm2360_vm7, %v2332_v59, -inf }
 0x335   : > { %v2335_v19 = vadd.f32 %v7496_v53, %v2321_v37  ;;  %v2521_v6 = vmul.f32 -1.702, %v7534_v31  ;;  %v2418_v15 = vrot.slane %v2417_v50, 4  ;;  %v2297_v16 = vadd.f32 %v5381_v11, %v2296_v52 }
 0x336   : > { %v2455_v3 = vrot.slane %v2454_v5, 2  ;;  %v2533_v47 = vmul.f32 1.442695, %v2516_v7  ;;  %v2424_v51 = vsel %vm2360_vm7, %v2348_v48, -inf  ;;  %v2517_v60 = vmul.f32 -1.702, %v7541_v35 }
 0x337   : > { %v2351_v2 = vcombine.high %v2335_v19, %v2335_v19  ;;  %v2459_v57 = vsel %vm2360_vm7, %v2335_v19, -inf  ;;  %v2419_v39 = vmax.f32 %v2417_v50, %v2418_v15  ;;  %v2425_v40 = vrot.slane %v2424_v51, 4 }
 0x338   : > { %v2456_v28 = vmax.f32 %v2454_v5, %v2455_v3  ;;  %v7549_v26 = vmax.f32 %v2386_v54, %v2387_v61  ;;  %v2449_v27 = vmax.f32 %v2447_v62, %v2448_v9  ;;  %v2460_v55 = vrot.slane %v2459_v57, 4 }
 0x339   : > { %v2466_v33 = vsel %vm2360_vm7, %v2351_v2, -inf  ;;  %v2420_v18 = vrot.slane %v2419_v39, 2  ;;  %v2426_v0 = vmax.f32 %v2424_v51, %v2425_v40  ;;  %v2319_v4 = vmul.f32 %v7488_v30, %v2297_v16 }
 0x33a   : > { %v2457_v36 = vrot.slane %v2456_v28, 1  ;;  %v7553_v13 = vmax.f32 %v2393_v21, %v2394_v49  ;;  %6159 = vpow2.f32 %v2541_v8  ;;  %v2522_v41 = vmul.f32 -1.702, %v7539_v63 }
 0x33b   : > { %v2461_v25 = vmax.f32 %v2459_v57, %v2460_v55  ;;  %v2543_v34 = vmul.f32 1.442695, %v2521_v6  ;;  %v2421_v11 = vmax.f32 %v2419_v39, %v2420_v18  ;;  %v2467_v20 = vrot.slane %v2466_v33, 4 }
 0x33c   : > { %v7556_v56 = vmax.f32 %v2456_v28, %v2457_v36  ;;  %6161 = vpow2.f32 %v2531_v14  ;;  %v2518_v1 = vmul.f32 -1.702, %v7549_v26  ;;  %v2427_v58 = vrot.slane %v2426_v0, 2 }
 0x33d   : > { %v2462_v24 = vrot.slane %v2461_v25, 2  ;;  %6163 = vpow2.f32 %v2533_v47  ;;  %v2535_v23 = vmul.f32 1.442695, %v2517_v60  ;;  %v2450_v12 = vrot.slane %v2449_v27, 1 }
 0x33e   : > { %v2333_v30 = vadd.f32 %v7496_v53, %v2319_v4  ;;  %v2528_v21 = vmul.f32 -1.702, %v7556_v56  ;;  %v2422_v29 = vrot.slane %v2421_v11, 1  ;;  %v2428_v10 = vmax.f32 %v2426_v0, %v2427_v58 }
 0x33f   : > { %v2463_v22 = vmax.f32 %v2461_v25, %v2462_v24  ;;  %v2519_v54 = vmul.f32 -1.702, %v7553_v13  ;;  %6165 = vpow2.f32 %v2543_v34  ;;  %v2545_v17 = vmul.f32 1.442695, %v2522_v41 }
 0x340   : > { %v2468_v49 = vmax.f32 %v2466_v33, %v2467_v20  ;;  %v2537_v44 = vmul.f32 1.442695, %v2518_v1  ;;  %v7562_v38 = vmax.f32 %v2421_v11, %v2422_v29  ;;  %v2429_v42 = vrot.slane %v2428_v10, 1 }
 0x341   : > { %v2464_v8 = vrot.slane %v2463_v22, 1  ;;  %6167 = vpow2.f32 %v2535_v23  ;;  %v7564_v62 = vmax.f32 %v2449_v27, %v2450_v12  ;;  %v2349_v53 = vcombine.high %v2333_v30, %v2333_v30 }
 0x342   : > { %v2469_v45 = vrot.slane %v2468_v49, 2  ;;  %v2557_v7 = vmul.f32 1.442695, %v2528_v21  ;;  %v7566_v14 = vmax.f32 %v2428_v10, %v2429_v42  ;;  %v2523_v59 = vmul.f32 -1.702, %v7562_v38 }
 0x343   : > { %v7569_v37 = vmax.f32 %v2463_v22, %v2464_v8  ;;  %6169 = vpow2.f32 %v2545_v17  ;;  %v2431_v61 = vsel %vm2360_vm7, %v2333_v30, -inf  ;;  %v2438_v5 = vsel %vm2360_vm7, %v2349_v53, -inf }
 0x344   : > { %v2470_v52 = vmax.f32 %v2468_v49, %v2469_v45  ;;  %6171 = vpow2.f32 %v2537_v44  ;;  %v2524_v9 = vmul.f32 -1.702, %v7566_v14  ;;  %v2547_v48 = vmul.f32 1.442695, %v2523_v59 }
 0x345   : > { %v2432_v50 = vrot.slane %v2431_v61, 4  ;;  %v2539_v19 = vmul.f32 1.442695, %v2519_v54  ;;  %v2529_v3 = vmul.f32 -1.702, %v7569_v37  ;;  %v2439_v15 = vrot.slane %v2438_v5, 4 }
 0x346   : > { %v2471_v6 = vrot.slane %v2470_v52, 1  ;;  %v2527_v16 = vmul.f32 -1.702, %v7564_v62  ;;  %6173 = vpow2.f32 %v2557_v7  ;;  %v2549_v47 = vmul.f32 1.442695, %v2524_v9 }
 0x347   : > { %v2433_v51 = vmax.f32 %v2431_v61, %v2432_v50  ;;  %v6160_v2 = vpop.eup %6159  ;;  %6175 = vpow2.f32 %v2547_v48  ;;  %v2559_v60 = vmul.f32 1.442695, %v2529_v3  ;;  %v2440_v28 = vmax.f32 %v2438_v5, %v2439_v15 }
 0x348   : > { %v7576_v57 = vmax.f32 %v2470_v52, %v2471_v6  ;;  %6177 = vpow2.f32 %v2549_v47  ;;  %v2555_v18 = vmul.f32 1.442695, %v2527_v16  ;;  %v2568_v25 = vadd.f32 1.0, %v6160_v2 }
 0x349   : > { %v2434_v39 = vrot.slane %v2433_v51, 2  ;;  %v6162_v40 = vpop.eup %6161  ;;  %6179 = vpow2.f32 %v2559_v60  ;;  %v2441_v55 = vrot.slane %v2440_v28, 2  ;;  %vm3113_vm7 = vcmask 719872  }
 0x34a   : > { %v2530_v27 = vmul.f32 -1.702, %v7576_v57  ;;  %v6164_v33 = vpop.eup %6163  ;;  %6181 = vpow2.f32 %v2539_v19  ;;  %v2563_v11 = vadd.f32 1.0, %v6162_v40 }
 0x34b   : > { %v2435_v36 = vmax.f32 %v2433_v51, %v2434_v39  ;;  %v2442_v4 = vmax.f32 %v2440_v28, %v2441_v55  ;;  %v2564_v58 = vadd.f32 1.0, %v6164_v33 }
 0x34c   : > { %v2561_v0 = vmul.f32 1.442695, %v2530_v27  ;;  %v6166_v41 = vpop.eup %6165 }
 0x34d   : > { %v2436_v34 = vrot.slane %v2435_v36, 1  ;;  %v2443_v20 = vrot.slane %v2442_v4, 1  ;;  %v2569_v23 = vadd.f32 1.0, %v6166_v41 }
 0x34e   : > { %6183 = vpow2.f32 %v2561_v0  ;;  %v6168_v1 = vpop.eup %6167 }
 0x34f   : > { %v7579_v24 = vmax.f32 %v2435_v36, %v2436_v34  ;;  %6185 = vpow2.f32 %v2555_v18  ;;  %v7581_v12 = vmax.f32 %v2442_v4, %v2443_v20  ;;  %v2565_v22 = vadd.f32 1.0, %v6168_v1 }
 0x350   : > { %v6170_v30 = vpop.eup %6169  ;;  %6187 = vrcp.f32 %v2568_v25 }
 0x351   : > { %v2525_v21 = vmul.f32 -1.702, %v7579_v24  ;;  %v6172_v29 = vpop.eup %6171  ;;  %6189 = vrcp.f32 %v2563_v11  ;;  %v2526_v10 = vmul.f32 -1.702, %v7581_v12  ;;  %v2570_v49 = vadd.f32 1.0, %v6170_v30 }
 0x352   : > { %6191 = vrcp.f32 %v2564_v58  ;;  %v2566_v8 = vadd.f32 1.0, %v6172_v29 }
 0x353   : > { %v2551_v54 = vmul.f32 1.442695, %v2525_v21  ;;  %v6174_v17 = vpop.eup %6173  ;;  %6193 = vrcp.f32 %v2569_v23  ;;  %v2553_v44 = vmul.f32 1.442695, %v2526_v10 }
 0x354   : > { %v6176_v42 = vpop.eup %6175  ;;  %v2576_v52 = vadd.f32 1.0, %v6174_v17 }
 0x355   : > { %6195 = vpow2.f32 %v2551_v54  ;;  %v6178_v45 = vpop.eup %6177  ;;  %v2571_v53 = vadd.f32 1.0, %v6176_v42 }
 0x356   : > { %6197 = vpow2.f32 %v2553_v44  ;;  %v6180_v7 = vpop.eup %6179  ;;  %v2572_v5 = vadd.f32 1.0, %v6178_v45 }
 0x357   : > { %6199 = vrcp.f32 %v2565_v22  ;;  %v6182_v59 = vpop.eup %6181  ;;  %v2577_v61 = vadd.f32 1.0, %v6180_v7 }
 0x358   : > { %6201 = vrcp.f32 %v2570_v49  ;;  %v2567_v48 = vadd.f32 1.0, %v6182_v59  ;;  %v6350_v59 = vmov 0.0  }
 0x359   : > { %6203 = vrcp.f32 %v2566_v8 }
 0x35a   : > { %6205 = vrcp.f32 %v2571_v53 }
 0x35b   : > { %v6184_v9 = vpop.eup %6183  ;;  %6207 = vrcp.f32 %v2577_v61 }
 0x35c   : > { %6209 = vrcp.f32 %v2576_v52  ;;  %v2578_v50 = vadd.f32 1.0, %v6184_v9  ;;  %v6186_v19 = vpop.eup %6185 }
 0x35d   : > { %6211 = vrcp.f32 %v2572_v5  ;;  %v6188_v6 = vpop.eup %6187  ;;  %v2575_v16 = vadd.f32 1.0, %v6186_v19 }
 0x35e   : > { %6213 = vrcp.f32 %v2578_v50  ;;  %v6190_v3 = vpop.eup %6189  ;;  %v2590_v25 = vmul.f32 %v6188_v6, %v7516_v32 }
 0x35f   : > { %6215 = vrcp.f32 %v2567_v48  ;;  %v6192_v15 = vpop.eup %6191  ;;  %v2580_v33 = vmul.f32 %v6190_v3, %v7520_v46 }
 0x360   : > { %v6194_v47 = vpop.eup %6193  ;;  %v2582_v39 = vmul.f32 %v6192_v15, %v7528_v43  ;;  %6217 = vrcp.f32 %v2575_v16 }
 0x361   : > { %v2592_v18 = vmul.f32 %v6194_v47, %v7534_v31 }
 0x362   : > { %v6196_v51 = vpop.eup %6195  ;;  %v2628_v41 = vsel %vm2627_vm8, %v2582_v39, %v2580_v33 }
 0x363   : > { %v6198_v2 = vpop.eup %6197  ;;  %v2573_v60 = vadd.f32 1.0, %v6196_v51  ;;  %v2636_v31 = vsel %vm2635_vm9, %v2592_v18, %v2590_v25  ;;  %v5762_v25 = vld [vmem:[%s8441_s7 + $0x98] sm:$0xff]  }
 0x364   : > { %v6200_v28 = vpop.eup %6199  ;;  %v2574_v40 = vadd.f32 1.0, %v6198_v2 }
 0x365   : > { %v6202_v27 = vpop.eup %6201  ;;  %6219 = vrcp.f32 %v2573_v60  ;;  %v2584_v0 = vmul.f32 %v6200_v28, %v7541_v35 }
 0x366   : > { %v6204_v55 = vpop.eup %6203  ;;  %6221 = vrcp.f32 %v2574_v40  ;;  %v2594_v11 = vmul.f32 %v6202_v27, %v7539_v63 }
 0x367   : > { %v6206_v36 = vpop.eup %6205  ;;  %v2586_v20 = vmul.f32 %v6204_v55, %v7549_v26  ;;  %v2630_v35 = vsel %vm2629_vm10, %v2584_v0, %v2628_v41 }
 0x368   : > { %v6208_v4 = vpop.eup %6207  ;;  %v2596_v1 = vmul.f32 %v6206_v36, %v7562_v38  ;;  %v2638_v26 = vsel %vm2637_vm11, %v2594_v11, %v2636_v31  ;;  %v5764_v11 = vld [vmem:[%s8441_s7 + $0x88] sm:$0xff]  }
 0x369   : > { %v6210_v43 = vpop.eup %6209  ;;  %v2608_v58 = vmul.f32 %v6208_v4, %v7569_v37  ;;  %v2632_v21 = vsel %vm2631_vm12, %v2586_v20, %v2630_v35  ;;  %v5760_v37 = vld [vmem:[%s8441_s7 + $0x40] sm:$0xff]  }
 0x36a   : > { %v6212_v34 = vpop.eup %6211  ;;  %v2606_v32 = vmul.f32 %v6210_v43, %v7556_v56  ;;  %v2640_v10 = vsel %vm2639_vm13, %v2596_v1, %v2638_v26  ;;  %5410 = vmatprep.subr.bf16.mxu1 %v5760_v37  ;;  %v5767_v26 = vld [vmem:[%s8333_s10 + $0x30] sm:$0xff]   ;;  %v5773_v37 = vld [vmem:[%s8333_s10] sm:$0xff]  }
 0x36b   : > { %v6214_v46 = vpop.eup %6213  ;;  %v2598_v63 = vmul.f32 %v6212_v34, %v7566_v14  ;;  %v5761_v14 = vld [vmem:[%s8441_s7] sm:$0xff]   ;;  %v5763_v34 = vld [vmem:[%s8441_s7 + $0x90] sm:$0xff]  }
 0x36c   : > { %v6216_v23 = vpop.eup %6215  ;;  %v2610_v30 = vmul.f32 %v6214_v46, %v7576_v57  ;;  %v2645_v38 = vsel %vm2635_vm9, %v2608_v58, %v2606_v32  ;;  %5411 = vmatpush3.bf16.msra.mxu1 %v5761_v14  ;;  %v5765_v46 = vld [vmem:[%s8441_s7 + $0x80] sm:$0xff]   ;;  %v5766_v32 = vld [vmem:[%s8333_s10 + $0x38] sm:$0xff]  }
 0x36d   : > { %v2588_v29 = vmul.f32 %v6216_v23, %v7553_v13  ;;  %v6218_v56 = vpop.eup %6217  ;;  %v2641_v54 = vsel %vm2627_vm8, %v2598_v63, %v2640_v10  ;;  %5540 = vmatprep.subr.bf16.mxu1 %v6350_v59  ;;  %v6352_v63 = vmov 0   ;;  %v5771_v10 = vld [vmem:[%s8333_s10 + $0x10] sm:$0xff]   ;;  %v5775_v14 = vld [vmem:[%s8333_s10 + $0x60] sm:$0xff]  }
 0x36e   : > { %v2646_v13 = vsel %vm2637_vm11, %v2610_v30, %v2645_v38  ;;  %v2604_v8 = vmul.f32 %v6218_v56, %v7564_v62  ;;  %3120 = vmatprep.subr.bf16.mxu0 %v6352_v63  ;;  %v5768_v30 = vld [vmem:[%s8333_s10 + $0x28] sm:$0xff]  }
 0x36f   : > { %v2634_v22 = vsel %vm2633_vm14, %v2588_v29, %v2632_v21  ;;  %v2651_v53 = vsel %vm1853_vm2, %v2646_v13, 0.0  ;;  %3121 = vmatpush1.bf16.msra.mxu0 %v5766_v32  ;;  %v5769_v21 = vld [vmem:[%s8333_s10 + $0x20] sm:$0xff]   ;;  %v5770_v29 = vld [vmem:[%s8333_s10 + $0x18] sm:$0xff]   ;;  %v5772_v38 = vld [vmem:[%s8333_s10 + $0x8] sm:$0xff]  }
 0x370   : > { %v2650_v42 = vsel %vm1853_vm2, 0.0, %v2634_v22  ;;  %v2675_v9 = vrot.slane %v2651_v53, 3  ;;  %v2657_v48 = vrot.slane %v2651_v53, 1  ;;  %v2668_v60 = vrot.slane %v2651_v53, 2  ;;  %3122 = vmatprep.subr.bf16.mxu0 %v6352_v63  ;;  %v5774_v56 = vld [vmem:[%s8333_s10 + $0x68] ss:$0 sps:$4 sm:$0xff]  }
 0x371   : > { %v2672_v61 = vrot.slane %v2650_v42, 3  ;;  %v2665_v2 = vrot.slane %v2650_v42, 2  ;;  %v2683_v31 = vrot.slane %v2650_v42, 4  ;;  %v2686_v35 = vrot.slane %v2651_v53, 4  ;;  %v5778_v13 = vld [vmem:[%s8333_s10 + $0x48] sm:$0xff]  }
 0x372   : > { %v6220_v57 = vpop.eup %6219  ;;  %v3118_v22 = vsel %vm1991_vm6, %v5774_v56, 0  ;;  %v4969_v53 = vld [vmem:[%s8331_s8] ss:$0 sm:$0xff]  ;;  %vm3014_vm2 = vcmask 1040384  }
 0x373   : > { %v6222_v17 = vpop.eup %6221  ;;  %v2600_v49 = vmul.f32 %v6220_v57, %v7579_v24  ;;  %v2654_v24 = vrot.slane %v2650_v42, 1  ;;  %3123 = vmatpush1.bf16.msra.mxu0 %v5767_v26  ;;  %v5776_v57 = vld [vmem:[%s8333_s10 + $0x58] sm:$0xff]  }
 0x374   : > { %v2602_v44 = vmul.f32 %v6222_v17, %v7581_v12  ;;  %3124 = vmatprep.subr.bf16.mxu0 %v6352_v63 }
 0x375   : > { %v2642_v45 = vsel %vm2629_vm10, %v2600_v49, %v2641_v54  ;;  %v5777_v54 = vld [vmem:[%s8333_s10 + $0x50] sm:$0xff]   ;;  %v5779_v49 = vld [vmem:[%s8333_s10 + $0x40] sm:$0xff]  }
 0x376   : > { %v2643_v7 = vsel %vm2631_vm12, %v2602_v44, %v2642_v45 }
 0x377   : > { %v2644_v52 = vsel %vm2633_vm14, %v2604_v8, %v2643_v7  ;;  %3125 = vmatpush1.bf16.msra.mxu0 %v5768_v30 }
 0x378   : > { %v2673_v5 = vrot.slane %v2644_v52, 3  ;;  %v2655_v12 = vrot.slane %v2644_v52, 1  ;;  %v2666_v16 = vrot.slane %v2644_v52, 2  ;;  %v2684_v20 = vrot.slane %v2644_v52, 4  ;;  %3126 = vmatprep.subr.bf16.mxu0 %v6352_v63 }
 0x37a   : > { %v2674_v50 = vsel %vm1949_vm3, %v2672_v61, %v2673_v5  ;;  %v2676_v62 = vsel %vm1949_vm3, %v2673_v5, %v2675_v9  ;;  %v2656_v19 = vsel %vm1882_vm4, %v2654_v24, %v2655_v12  ;;  %v2658_v6 = vsel %vm1882_vm4, %v2655_v12, %v2657_v48  ;;  %v4970_v61 = vld [vmem:[%s8332_s9] ss:$0 sm:$0xff] }
 0x37b   : > { %v5712_v3 = vpack.i.bf16 %v2676_v62, %v2674_v50  ;;  %v5717_v15 = vpack.i.bf16 %v2658_v6, %v2656_v19  ;;  %v2667_v55 = vsel %vm1264_vm0, %v2665_v2, %v2666_v16  ;;  %v2669_v33 = vsel %vm1264_vm0, %v2666_v16, %v2668_v60  ;;  %3127 = vmatpush1.bf16.msra.mxu0 %v5769_v21 }
 0x37c   : > { %v2685_v1 = vsel %vm1991_vm6, %v2683_v31, %v2684_v20  ;;  %v2687_v58 = vsel %vm1991_vm6, %v2684_v20, %v2686_v35  ;;  %3128 = vmatprep.subr.bf16.mxu0 %v6352_v63  ;;  %vm3293_vm4 = vcmask 1041408  }
 0x37d   : > { %5713 = vrot.lane.b32.xlu0 %v5712_v3, %s8444_s2  ;;  %5718 = vrot.lane.b32.xlu1 %v5717_v15, %s8444_s2  ;;  %v2696_v23 = vpack.c.bf16 %v2687_v58, %v2685_v1  ;;  %s647_s2 = sand.u32 1, %s6339_s25  }
 0x37e   : > { %s4881_s4 = sshll.u32 %s647_s2, 2  ;;  %s4805_s30 = scalar_lea.sflag [#allocation3], %s647_s2 }
 0x37f   : > { %3129 = vmatpush1.bf16.msra.mxu0 %v5770_v29  ;;  %s649_s1 = scalar_lea.vmem [#allocation2], %s4881_s4  ;;  %s6291_s4 = sshll.u32 %s6355_s3, 4  ;;  %s6292_s4 = int_to_ptr.vmem [resolvable:$false] %s6291_s4 }
 0x380   : > { %3130 = vmatprep.subr.bf16.mxu0 %v6352_v63  ;;  %s4818_s0 = sshll.u32 %s649_s1, 4  ;;  %s6293_s7 = scalar_lea.vmem %s6292_s4, 128  ;;  %s4819_s0 = int_to_ptr.vmem [resolvable:$true] %s4818_s0 }
 0x381   : > { %s6287_s6 = scalar_lea.vmem %s4819_s0, 64  ;;  %p6294_p0 = scmp.lt.s32.totalorder %s4819_s0, %s6292_s4 }
 0x382   : > { %p6288_p11 = scmp.ne.s32.totalorder %s4819_s0, %s6287_s6  ;;  %p6295_p1 = scmp.lt.s32.totalorder %s6293_s7, %s6287_s6 }
 0x383   : > { %3131 = vmatpush1.bf16.msra.mxu0 %v5771_v10 }
 0x384   : > { %3132 = vmatprep.subr.bf16.mxu0 %v6352_v63  ;;  %p6289_p12 = pnand %p6288_p11, %p6504_p5  ;;  %p6296_p2 = por %p6295_p1, %p6294_p0 }
 0x386   : > { %p6290_p13 = pneg %p6289_p12 }
 0x387   : > { %3133 = vmatpush1.bf16.msra.mxu0 %v5772_v38 }
 0x388   : > { %3134 = vmatprep.subr.bf16.mxu0 %v6352_v63  ;;  %p6297_p3 = pnand %p6296_p2, %p6290_p13 }
 0x38b   : > { %3135 = vmatpush1.bf16.msra.mxu0 %v5773_v37 }
 0x38c   : > { %3140 = vmatprep.subr.bf16.mxu0 %v6352_v63 }
 0x38f   : > { %3141 = vmatpush2.bf16.msra.mxu0 %v3118_v22 }
 0x390   : > { %3142 = vmatprep.subr.bf16.mxu0 %v6352_v63 }
 0x393   : > { %3143 = vmatpush2.bf16.msra.mxu0 %v5775_v14 }
 0x394   : > { %3144 = vmatprep.subr.bf16.mxu0 %v6352_v63 }
 0x397   : > { %3145 = vmatpush2.bf16.msra.mxu0 %v5776_v57 }
 0x398   : > { %3146 = vmatprep.subr.bf16.mxu0 %v6352_v63 }
 0x39b   : > { %3147 = vmatpush2.bf16.msra.mxu0 %v5777_v54 }
 0x39c   : > { %3148 = vmatprep.subr.bf16.mxu0 %v6352_v63 }
 0x39f   : > { %3149 = vmatpush2.bf16.msra.mxu0 %v5778_v13 }
 0x3a0   : > { %3150 = vmatprep.subr.bf16.mxu0 %v6352_v63 }
 0x3a3   : > { %3151 = vmatpush2.bf16.msra.mxu0 %v5779_v49 }
 0x3a4   : > { %3673 = vmatprep.subr.bf16.mxu0 %v6352_v63 }
 0x3ef   : > { %v5714_v47 = vpop.permute.xlu0 %5713  ;;  %v5719_v51 = vpop.permute.xlu1 %5718 }
 0x3f0   : > { %v5716_v28 = vunpack.i.h.bf16 %v5714_v47  ;;  %v5715_v39 = vunpack.i.l.bf16 %v5714_v47  ;;  %v5721_v40 = vunpack.i.h.bf16 %v5719_v51  ;;  %v5720_v27 = vunpack.i.l.bf16 %v5719_v51 }
 0x3f2   : > { %v2691_v36 = vsel %vm2017_vm5, %v2644_v52, %v5721_v40  ;;  %v2690_v18 = vsel %vm2017_vm5, %v2650_v42, %v5720_v27  ;;  %v2692_v0 = vsel %vm2017_vm5, %v2667_v55, %v5715_v39  ;;  %v2693_v4 = vsel %vm2017_vm5, %v2669_v33, %v5716_v28 }
 0x3f3   : > { %v2694_v41 = vpack.c.bf16 %v2691_v36, %v2690_v18  ;;  %v2695_v43 = vpack.c.bf16 %v2693_v4, %v2692_v0 }
 0x3f5   : > { %2852 = vmatprep.mubr.bf16.mxu1 %v2695_v43 }
 0x3f6   : > { %2853 = vmatmul.mubr.bf16.vlgmr.msra.gmra.mxu1 %v2694_v41 }
 0x3f7   : > { %5541 = vmatpush3.bf16.msra.mxu1 %v5762_v25  ;;  %5548 = vmatprep.mubr.msk.bf16.mxu1 %vm6351_vm15, %v6350_v59 }
 0x3f8   : > { %5542 = vmatprep.subr.bf16.mxu1 %v6350_v59 }
 0x3fb   : > { %5543 = vmatpush3.bf16.msra.mxu1 %v5763_v34 }
 0x3fc   : > { %5544 = vmatprep.subr.bf16.mxu1 %v6350_v59 }
 0x3ff   : > { %5545 = vmatpush3.bf16.msra.mxu1 %v5764_v11 }
 0x400   : > { %5546 = vmatprep.subr.bf16.mxu1 %v6350_v59 }
 0x403   : > { %5547 = vmatpush3.bf16.msra.mxu1 %v5765_v46 }
 0x404   : > { %5552 = vmatprep.subr.bf16.mxu1 %v6350_v59 }
 0x406   : > { %5549 = vmatmul.mubr.msk.bf16.vlgmr.msra.gmra.mxu1 %vm2017_vm5, %v2696_v23 }
 0x407   : > { %5556 = vmatprep.mubr.msk.bf16.mxu1 %vm6351_vm15, %v6350_v59 }
 0x4b6   : > { %v5412_v17 = vpop.f32.mrf.mxu1 }
 0x4b8   : > { %v5413_v44 = vpop.f32.mrf.mxu1 }
 0x4b9   : > { %v5414_v45 = vadd.f32 %v5413_v44, %v5412_v17 }
 0x4ba   : > { %v5415_v42 = vpop.f32.mrf.mxu1 }
 0x4bc   : > { %v5416_v8 = vpop.f32.mrf.mxu1 }
 0x4bd   : > { %v5417_v5 = vadd.f32 %v5416_v8, %v5415_v42 }
 0x4c6   : > { %v2895_v7 = vpop.f32.mrf.mxu1 }
 0x4c7   : > { %v2896_v52 = vadd.f32 %v5414_v45, %v2895_v7 }
 0x4c8   : > { %v5550_v24 = vpop.f32.mrf.mxu1 }
 0x4c9   : > { %v2908_v9 = vmul.f32 %v4969_v53, %v2896_v52 }
 0x4ca   : > { %v2898_v12 = vpop.f32.mrf.mxu1 }
 0x4cb   : > { %v2916_v48 = vadd.f32 %v4970_v61, %v2908_v9  ;;  %v2899_v50 = vadd.f32 %v5417_v5, %v2898_v12 }
 0x4cc   : > { %v5551_v62 = vpop.f32.mrf.mxu1 }
 0x4cd   : > { %v2920_v19 = vcombine.high %v2916_v48, %v2916_v48  ;;  %v2925_v6 = vsel %vm2924_vm1, %v2916_v48, -inf  ;;  %v2909_v3 = vmul.f32 %v4969_v53, %v2899_v50 }
 0x4ce   : > { %v2926_v15 = vrot.slane %v2925_v6, 4 }
 0x4cf   : > { %v2932_v16 = vsel %vm2924_vm1, %v2920_v19, -inf  ;;  %v2917_v47 = vadd.f32 %v4970_v61, %v2909_v3 }
 0x4d0   : > { %v2927_v51 = vmax.f32 %v2925_v6, %v2926_v15  ;;  %v2933_v2 = vrot.slane %v2932_v16, 4 }
 0x4d1   : > { %v2921_v60 = vcombine.high %v2917_v47, %v2917_v47  ;;  %v2939_v28 = vsel %vm2924_vm1, %v2917_v47, -inf }
 0x4d2   : > { %v2928_v39 = vrot.slane %v2927_v51, 2  ;;  %v2934_v40 = vmax.f32 %v2932_v16, %v2933_v2  ;;  %v2940_v27 = vrot.slane %v2939_v28, 4 }
 0x4d3   : > { %v2946_v55 = vsel %vm2924_vm1, %v2921_v60, -inf }
 0x4d4   : > { %v2929_v33 = vmax.f32 %v2927_v51, %v2928_v39  ;;  %v2935_v36 = vrot.slane %v2934_v40, 2  ;;  %v2941_v18 = vmax.f32 %v2939_v28, %v2940_v27  ;;  %v2947_v0 = vrot.slane %v2946_v55, 4 }
 0x4d6   : > { %v2930_v4 = vrot.slane %v2929_v33, 1  ;;  %v2936_v41 = vmax.f32 %v2934_v40, %v2935_v36  ;;  %v2942_v43 = vrot.slane %v2941_v18, 2  ;;  %v2948_v25 = vmax.f32 %v2946_v55, %v2947_v0 }
 0x4d8   : > { %v2931_v34 = vmax.f32 %v2929_v33, %v2930_v4  ;;  %v2937_v11 = vrot.slane %v2936_v41, 1  ;;  %v2943_v20 = vmax.f32 %v2941_v18, %v2942_v43  ;;  %v2949_v46 = vrot.slane %v2948_v25, 2 }
 0x4da   : > { %v2938_v31 = vmax.f32 %v2936_v41, %v2937_v11  ;;  %v2982_v35 = vmul.f32 -1.702, %v2931_v34  ;;  %v2944_v1 = vrot.slane %v2943_v20, 1  ;;  %v2950_v58 = vmax.f32 %v2948_v25, %v2949_v46  ;;  %v5780_v11 = vld [vmem:[%s8333_s10 + $0x110] sm:$0xff]  }
 0x4dc   : > { %v2983_v23 = vmul.f32 -1.702, %v2938_v31  ;;  %v2986_v32 = vmul.f32 1.442695, %v2982_v35  ;;  %v2945_v26 = vmax.f32 %v2943_v20, %v2944_v1  ;;  %v2951_v30 = vrot.slane %v2950_v58, 1  ;;  %v5781_v35 = vld [vmem:[%s8333_s10 + $0x108] sm:$0xff]  }
 0x4de   : > { %6223 = vpow2.f32 %v2986_v32  ;;  %v2988_v21 = vmul.f32 1.442695, %v2983_v23  ;;  %v2952_v29 = vmax.f32 %v2950_v58, %v2951_v30  ;;  %v2984_v10 = vmul.f32 -1.702, %v2945_v26 }
 0x4e0   : > { %6225 = vpow2.f32 %v2988_v21  ;;  %v2985_v38 = vmul.f32 -1.702, %v2952_v29  ;;  %v2990_v37 = vmul.f32 1.442695, %v2984_v10  ;;  %v5784_v10 = vld [vmem:[%s8333_s10 + $0xf0] sm:$0xff]  }
 0x4e2   : > { %6227 = vpow2.f32 %v2990_v37  ;;  %v2992_v56 = vmul.f32 1.442695, %v2985_v38  ;;  %v5785_v38 = vld [vmem:[%s8333_s10 + $0xe8] sm:$0xff]   ;;  %v5786_v37 = vld [vmem:[%s8333_s10 + $0xe0] sm:$0xff]  }
 0x4e4   : > { %6229 = vpow2.f32 %v2992_v56  ;;  %v5787_v56 = vld [vmem:[%s8333_s10 + $0xd8] sm:$0xff]  }
 0x4eb   : > { %v6224_v22 = vpop.eup %6223 }
 0x4ec   : > { %v2994_v14 = vadd.f32 1.0, %v6224_v22  ;;  %v5788_v22 = vld [vmem:[%s8333_s10 + $0x140] ss:$0 sps:$4 sm:$0xff]  }
 0x4ed   : > { %v6226_v57 = vpop.eup %6225 }
 0x4ee   : > { %v2995_v54 = vadd.f32 1.0, %v6226_v57  ;;  %6231 = vrcp.f32 %v2994_v14  ;;  %v3671_v14 = vsel %vm1991_vm6, %v5788_v22, 0  ;;  %v5789_v57 = vld [vmem:[%s8333_s10 + $0x138] sm:$0xff]   ;;  %v5038_v22 = vld [vmem:[%s8335_s12 + $0x1] ss:$0 sm:$0xff] }
 0x4ef   : > { %v6228_v13 = vpop.eup %6227 }
 0x4f0   : > { %6233 = vrcp.f32 %v2995_v54  ;;  %v2996_v17 = vadd.f32 1.0, %v6228_v13  ;;  %v5790_v54 = vld [vmem:[%s8333_s10 + $0x130] sm:$0xff]   ;;  %v5791_v13 = vld [vmem:[%s8333_s10 + $0x128] sm:$0xff]  }
 0x4f1   : > { %v6230_v49 = vpop.eup %6229 }
 0x4f2   : > { %v2997_v44 = vadd.f32 1.0, %v6230_v49  ;;  %6235 = vrcp.f32 %v2996_v17  ;;  %v5792_v17 = vld [vmem:[%s8333_s10 + $0x120] sm:$0xff]   ;;  %v5793_v49 = vld [vmem:[%s8333_s10 + $0x118] sm:$0xff]  }
 0x4f4   : > { %6237 = vrcp.f32 %v2997_v44 }
 0x4fb   : > { %v6232_v42 = vpop.eup %6231 }
 0x4fc   : > { %v2999_v45 = vmul.f32 %v6232_v42, %v2931_v34 }
 0x4fd   : > { %v6234_v8 = vpop.eup %6233 }
 0x4fe   : > { %v3001_v53 = vmul.f32 %v6234_v8, %v2938_v31  ;;  %v5794_v8 = vld [vmem:[%s8336_s13 + $0x8] sm:$0xff]  }
 0x4ff   : > { %v6236_v7 = vpop.eup %6235  ;;  %5553 = vmatpush3.bf16.msra.mxu1 %v5794_v8 }
 0x500   : > { %v3003_v52 = vmul.f32 %v6236_v7, %v2945_v26  ;;  %v3010_v61 = vsel %vm2637_vm11, %v3001_v53, %v2999_v45  ;;  %v3289_v24 = vsel %vm2639_vm13, %v3001_v53, %v2999_v45  ;;  %v3568_v50 = vsel %vm2629_vm10, %v3001_v53, %v2999_v45  ;;  %v5782_v26 = vld [vmem:[%s8333_s10 + $0x100] sm:$0xff]   ;;  %5554 = vmatprep.subr.bf16.mxu1 %v6350_v59 }
 0x501   : > { %v6238_v5 = vpop.eup %6237  ;;  %v3845_v40 = vsel %vm2635_vm9, %v3001_v53, %v2999_v45  ;;  %v5795_v45 = vld [vmem:[%s8336_s13] sm:$0xff]  }
 0x502   : > { %v3005_v9 = vmul.f32 %v6238_v5, %v2952_v29  ;;  %v3011_v12 = vsel %vm2639_vm13, %v3003_v52, %v3010_v61  ;;  %v3290_v48 = vsel %vm2627_vm8, %v3003_v52, %v3289_v24  ;;  %v3569_v16 = vsel %vm2631_vm12, %v3003_v52, %v3568_v50  ;;  %v5783_v29 = vld [vmem:[%s8333_s10 + $0xf8] sm:$0xff]   ;;  %v4986_v53 = vld [vmem:[%s8334_s11] ss:$0 sm:$0xff] }
 0x503   : > { %v3846_v55 = vsel %vm2637_vm11, %v3003_v52, %v3845_v40  ;;  %5555 = vmatpush3.bf16.msra.mxu1 %v5795_v45  ;;  %v4987_v7 = vld [vmem:[%s8335_s12] ss:$0 sm:$0xff]  ;;  %v5800_v40 = vld [vmem:[%s8333_s10 + $0x84] sm:$0xff]  }
 0x504   : > { %v3012_v62 = vsel %vm2627_vm8, %v3005_v9, %v3011_v12  ;;  %v3291_v19 = vsel %vm2629_vm10, %v3005_v9, %v3290_v48  ;;  %v3570_v60 = vsel %vm2633_vm14, %v3005_v9, %v3569_v16  ;;  %v3847_v36 = vsel %vm2639_vm13, %v3005_v9, %v3846_v55  ;;  %3396 = vmatprep.subr.bf16.mxu1 %v6352_v63 }
 0x505   : > { %v3015_v6 = vsel %vm3014_vm2, 0.0, %v3012_v62  ;;  %v3294_v3 = vsel %vm3293_vm4, 0.0, %v3291_v19  ;;  %v7743_v27 = vsel %vm1991_vm6, 0.0, %v3570_v60  ;;  %v3849_v18 = vsel %vm1991_vm6, %v3847_v36, 0.0  ;;  %v5798_v60 = vld [vmem:[%s8333_s10 + $0x94] sm:$0xff]  }
 0x506   : > { %v3016_v15 = vsel %vm1949_vm3, %v3015_v6, 0.0  ;;  %v7736_v2 = vsel %vm1264_vm0, %v3294_v3, 0.0  ;;  %v3574_v33 = vrot.slane %v7743_v27, 4  ;;  %vm3026_vm0 = vcmask 588800  }
 0x507   : > { %v3022_v47 = vrot.slane %v3016_v15, 2  ;;  %v3018_v51 = vrot.slane %v3016_v15, 1  ;;  %v3301_v28 = vrot.slane %v7736_v2, 4  ;;  %v3297_v39 = vrot.slane %v7736_v2, 2  ;;  %vm5151_vm9 = vmneg %vm3026_vm0 }
 0x508   : > { %vm3028_vm3 = vcmask 130048   ;;  %vm3199_vm8 = vcmask 261120   ;;  %vm8005_vm10 = vmpackc.low %vm5151_vm9, %vm5151_vm9 }
 0x509   : > { %3023 = vrot.lane.b32.xlu1 %v3022_v47, %s6353_s22  ;;  %3019 = vrot.lane.b32.xlu0 %v3018_v51, %s6354_s26  ;;  %v5797_v51 = vld [vmem:[%s8333_s10 + $0x9c] sm:$0xff]  }
 0x50d   : > { %3302 = vrot.lane.b32.xlu1 %v3301_v28, %s6353_s22  ;;  %3298 = vrot.lane.b32.xlu0 %v3297_v39, %s6354_s26  ;;  %v5799_v28 = vld [vmem:[%s8333_s10 + $0x8c] sm:$0xff]  }
 0x511   : > { %3579 = vrot.lane.b32.xlu1 %v6350_v59, %s6353_s22  ;;  %3575 = vrot.lane.b32.xlu0 %v3574_v33, %s6354_s26  ;;  %v5801_v33 = vld [vmem:[%s8333_s10 + $0x7c] sm:$0xff]  }
 0x515   : > { %3851 = vrot.lane.b32.xlu0 %v3849_v18, %s6354_s26  ;;  %v5802_v18 = vld [vmem:[%s8333_s10 + $0x74] sm:$0xff]  }
 0x57b   : > { %v3024_v0 = vpop.permute.xlu1 %3023  ;;  %v3020_v4 = vpop.permute.xlu0 %3019 }
 0x57c   : > { %v3027_v41 = vsel %vm3026_vm0, %v3016_v15, %v3020_v4  ;;  %v3029_v43 = vsel %vm3028_vm3, %v3020_v4, %v3024_v0  ;;  %v5796_v15 = vld [vmem:[%s8333_s10 + $0xa4] sm:$0xff]   ;;  %v5803_v0 = vld [vmem:[%s8333_s10 + $0x6c] sm:$0xff]   ;;  %v5804_v4 = vld [vmem:[%s8333_s10 + $0xd4] ss:$0 sps:$4 sm:$0xff]  }
 0x57d   : > { %v3030_v25 = vpack.c.bf16 %v3027_v41, %v3027_v41  ;;  %v3031_v34 = vpack.c.bf16 %v3029_v43, %v3029_v43  ;;  %v3394_v41 = vsel %vm1991_vm6, %v5804_v4, 0  ;;  %v5805_v43 = vld [vmem:[%s8333_s10 + $0xcc] sm:$0xff]   ;;  %v5828_v4 = vld [vmem:[%s8336_s13 + $0x38] sm:$0xff]  }
 0x57f   : > { %v3303_v20 = vpop.permute.xlu1 %3302  ;;  %4985 = vmatprep.mubr.msk.bf16.mxu0 %vm3113_vm7, %v3031_v34  ;;  %v7756_v46 = vpop.permute.xlu0 %3298  ;;  %v5807_v34 = vld [vmem:[%s8333_s10 + $0xbc] sm:$0xff]  }
 0x580   : > { %v7760_v31 = vsel %vm3028_vm3, %v7756_v46, %v3303_v20  ;;  %3153 = vmatmul.mubr.bf16.vlgmr.msra.gmra.mxu0 %v3030_v25  ;;  %v5806_v25 = vld [vmem:[%s8333_s10 + $0xc4] sm:$0xff]   ;;  %v5809_v20 = vld [vmem:[%s8333_s10 + $0xac] sm:$0xff]  }
 0x581   : > { %3674 = vmatpush1.bf16.msra.mxu0 %v5780_v11  ;;  %v3308_v47 = vpack.c.bf16 %v7760_v31, %v7760_v31  ;;  %v5808_v11 = vld [vmem:[%s8333_s10 + $0xb4] sm:$0xff]   ;;  %v3305_v31 = vsel %vm3026_vm0, %v7736_v2, %v7756_v46 }
 0x582   : > { %3675 = vmatprep.subr.bf16.mxu0 %v6352_v63 }
 0x583   : > { %v3580_v1 = vpop.permute.xlu1 %3579  ;;  %v3576_v58 = vpop.permute.xlu0 %3575 }
 0x584   : > { %v3583_v23 = vsel %vm3028_vm3, %v3576_v58, %v3580_v1  ;;  %v3582_v44 = vsel %vm3026_vm0, %v7743_v27, %v3576_v58  ;;  %v5811_v58 = vld [vmem:[%s8336_s13 + $0x10] sm:$0xff]  }
 0x585   : > { %v3585_v32 = vpack.c.bf16 %v3583_v23, %v3583_v23  ;;  %3676 = vmatpush1.bf16.msra.mxu0 %v5781_v35  ;;  %v3584_v42 = vpack.c.bf16 %v3582_v44, %v3582_v44  ;;  %v3307_v35 = vpack.c.bf16 %v3305_v31, %v3305_v31 }
 0x586   : > { %3677 = vmatprep.subr.bf16.mxu0 %v6352_v63 }
 0x587   : > { %5093 = vmatprep.mubr.msk.bf16.mxu0 %vm3113_vm7, %v3585_v32  ;;  %v7772_v30 = vpop.permute.xlu0 %3851 }
 0x588   : > { %v7776_v21 = vsel %vm3028_vm3, %v7772_v30, %v3580_v1  ;;  %v5810_v1 = vld [vmem:[%s8336_s13 + $0x18] sm:$0xff]  }
 0x589   : > { %3678 = vmatpush1.bf16.msra.mxu0 %v5782_v26  ;;  %v5094_v26 = vld [vmem:[%s8334_s11 + $0x2] ss:$0 sm:$0xff] }
 0x58a   : > { %3679 = vmatprep.subr.bf16.mxu0 %v6352_v63 }
 0x58d   : > { %3680 = vmatpush1.bf16.msra.mxu0 %v5783_v29 }
 0x58e   : > { %3681 = vmatprep.subr.bf16.mxu0 %v6352_v63 }
 0x591   : > { %3682 = vmatpush1.bf16.msra.mxu0 %v5784_v10  ;;  %v5095_v10 = vld [vmem:[%s8335_s12 + $0x2] ss:$0 sm:$0xff] }
 0x592   : > { %3683 = vmatprep.subr.bf16.mxu0 %v6352_v63 }
 0x595   : > { %3684 = vmatpush1.bf16.msra.mxu0 %v5785_v38 }
 0x596   : > { %3685 = vmatprep.subr.bf16.mxu0 %v6352_v63 }
 0x599   : > { %3686 = vmatpush1.bf16.msra.mxu0 %v5786_v37  ;;  %v5037_v37 = vld [vmem:[%s8334_s11 + $0x1] ss:$0 sm:$0xff] }
 0x59a   : > { %3687 = vmatprep.subr.bf16.mxu0 %v6352_v63 }
 0x59d   : > { %3688 = vmatpush1.bf16.msra.mxu0 %v5787_v56 }
 0x59e   : > { %3693 = vmatprep.subr.bf16.mxu0 %v6352_v63 }
 0x5a1   : > { %3694 = vmatpush2.bf16.msra.mxu0 %v3671_v14 }
 0x5a2   : > { %3695 = vmatprep.subr.bf16.mxu0 %v6352_v63 }
 0x5a5   : > { %3696 = vmatpush2.bf16.msra.mxu0 %v5789_v57 }
 0x5a6   : > { %3697 = vmatprep.subr.bf16.mxu0 %v6352_v63 }
 0x5a9   : > { %3698 = vmatpush2.bf16.msra.mxu0 %v5790_v54 }
 0x5aa   : > { %3699 = vmatprep.subr.bf16.mxu0 %v6352_v63 }
 0x5ad   : > { %3700 = vmatpush2.bf16.msra.mxu0 %v5791_v13 }
 0x5ae   : > { %3701 = vmatprep.subr.bf16.mxu0 %v6352_v63 }
 0x5b1   : > { %3702 = vmatpush2.bf16.msra.mxu0 %v5792_v17 }
 0x5b2   : > { %3703 = vmatprep.subr.bf16.mxu0 %v6352_v63 }
 0x5b5   : > { %3704 = vmatpush2.bf16.msra.mxu0 %v5793_v49 }
 0x5b6   : > { %5576 = vmatprep.subr.bf16.mxu0 %v6350_v59 }
 0x5b8   : > { %3706 = vmatmul.mubr.bf16.vlgmr.msra.gmra.mxu0 %v3584_v42 }
 0x5b9   : > { %5580 = vmatprep.mubr.msk.bf16.mxu0 %vm6351_vm15, %v6350_v59  ;;  %5577 = vmatpush3.bf16.msra.mxu0 %v5828_v4 }
 0x5ba   : > { %5578 = vmatprep.subr.bf16.mxu0 %v6350_v59 }
 0x640   : > { %v3154_v52 = vpop.f32.mrf.mxu0 }
 0x641   : > { %v3166_v61 = vmul.f32 %v4986_v53, %v3154_v52 }
 0x642   : > { %v3156_v24 = vpop.f32.mrf.mxu0 }
 0x643   : > { %v3173_v5 = vadd.f32 %v4987_v7, %v3166_v61 }
 0x644   : > { %v3157_v9 = vpop.f32.mrf.mxu0 }
 0x645   : > { %v3180_v12 = vmul.f32 -1.702, %v3173_v5 }
 0x646   : > { %v3158_v48 = vpop.f32.mrf.mxu0 }
 0x647   : > { %v3181_v50 = vmul.f32 1.442695, %v3180_v12  ;;  %v5813_v48 = vld [vmem:[%s8336_s13 + $0x20] sm:$0xff]  }
 0x649   : > { %6239 = vpow2.f32 %v3181_v50 }
 0x656   : > { %v6240_v62 = vpop.eup %6239 }
 0x657   : > { %v3183_v19 = vadd.f32 1.0, %v6240_v62  ;;  %v5814_v62 = vld [vmem:[%s8333_s10 + $0x17c] sm:$0xff]  }
 0x659   : > { %6241 = vrcp.f32 %v3183_v19 }
 0x666   : > { %v6242_v6 = vpop.eup %6241 }
 0x667   : > { %v3185_v3 = vmul.f32 %v6242_v6, %v3173_v5  ;;  %v5812_v5 = vld [vmem:[%s8336_s13 + $0x28] sm:$0xff]   ;;  %v7946_v6 = vpack.c.bf16 %v7776_v21, %v7776_v21 }
 0x668   : > { %v5817_v21 = vld [vmem:[%s8333_s10 + $0x164] sm:$0xff]  }
 0x669   : > { %v3186_v16 = vpack.c.bf16 %v3185_v3, %v3185_v3  ;;  %v5815_v3 = vld [vmem:[%s8333_s10 + $0x174] sm:$0xff]  }
 0x66b   : > { %5557 = vmatmul.mubr.msk.bf16.vlgmr.msra.gmra.mxu1 %vm3199_vm8, %v3186_v16  ;;  %v5818_v16 = vld [vmem:[%s8333_s10 + $0x15c] sm:$0xff]  }
 0x66c   : > { %3397 = vmatpush1.bf16.msra.mxu1 %v5796_v15  ;;  %5036 = vmatprep.mubr.msk.bf16.mxu1 %vm3113_vm7, %v3308_v47  ;;  %v5816_v15 = vld [vmem:[%s8333_s10 + $0x16c] sm:$0xff]   ;;  %v5819_v47 = vld [vmem:[%s8333_s10 + $0x154] sm:$0xff]  }
 0x66d   : > { %3398 = vmatprep.subr.bf16.mxu1 %v6352_v63 }
 0x670   : > { %3399 = vmatpush1.bf16.msra.mxu1 %v5797_v51  ;;  %v5820_v51 = vld [vmem:[%s8333_s10 + $0x14c] sm:$0xff]  }
 0x671   : > { %3400 = vmatprep.subr.bf16.mxu1 %v6352_v63 }
 0x674   : > { %3401 = vmatpush1.bf16.msra.mxu1 %v5798_v60  ;;  %v5821_v60 = vld [vmem:[%s8333_s10 + $0x144] sm:$0xff]  }
 0x675   : > { %3402 = vmatprep.subr.bf16.mxu1 %v6352_v63 }
 0x678   : > { %3403 = vmatpush1.bf16.msra.mxu1 %v5799_v28  ;;  %v3707_v39 = vpop.f32.mrf.mxu0  ;;  %v5822_v28 = vld [vmem:[%s8333_s10 + $0x1ac] ss:$0 sps:$4 sm:$0xff]  }
 0x679   : > { %3404 = vmatprep.subr.bf16.mxu1 %v6352_v63  ;;  %v3719_v29 = vmul.f32 %v5094_v26, %v3707_v39  ;;  %v3943_v39 = vsel %vm1991_vm6, %v5822_v28, 0  ;;  %v5106_v26 = vld [vmem:[%s8338_s15 + $0x2] ss:$0 sm:$0xff]  ;;  %v5842_v28 = vld [vmem:[%s8333_s10 + $0x1f8] sm:$0xff]  }
 0x67a   : > { %v3709_v27 = vpop.f32.mrf.mxu0 }
 0x67b   : > { %v3726_v38 = vadd.f32 %v5095_v10, %v3719_v29  ;;  %v5824_v27 = vld [vmem:[%s8333_s10 + $0x19c] sm:$0xff]  }
 0x67c   : > { %3405 = vmatpush1.bf16.msra.mxu1 %v5800_v40  ;;  %v3710_v55 = vpop.f32.mrf.mxu0  ;;  %v5823_v40 = vld [vmem:[%s8333_s10 + $0x1a4] sm:$0xff]  }
 0x67d   : > { %3406 = vmatprep.subr.bf16.mxu1 %v6352_v63  ;;  %v3736_v56 = vmul.f32 -1.702, %v3726_v38  ;;  %v5825_v55 = vld [vmem:[%s8333_s10 + $0x194] sm:$0xff]  }
 0x67e   : > { %v3711_v36 = vpop.f32.mrf.mxu0 }
 0x67f   : > { %v3737_v17 = vmul.f32 1.442695, %v3736_v56  ;;  %v5827_v36 = vld [vmem:[%s8333_s10 + $0x184] sm:$0xff]  }
 0x680   : > { %3407 = vmatpush1.bf16.msra.mxu1 %v5801_v33  ;;  %v5826_v33 = vld [vmem:[%s8333_s10 + $0x18c] sm:$0xff]  }
 0x681   : > { %3408 = vmatprep.subr.bf16.mxu1 %v6352_v63  ;;  %6243 = vpow2.f32 %v3737_v17 }
 0x684   : > { %3409 = vmatpush1.bf16.msra.mxu1 %v5802_v18  ;;  %v5230_v18 = vld [vmem:[%s8338_s15 + $0x4] ss:$0 sm:$0xff] }
 0x685   : > { %3410 = vmatprep.subr.bf16.mxu1 %v6352_v63 }
 0x688   : > { %3411 = vmatpush1.bf16.msra.mxu1 %v5803_v0  ;;  %v8011_v0 = vpack.c.bf16 %v7772_v30, %v7772_v30  ;;  %v5829_v30 = vld [vmem:[%s8336_s13 + $0x30] sm:$0xff]  }
 0x689   : > { %3416 = vmatprep.subr.bf16.mxu1 %v6352_v63  ;;  %5579 = vmatpush3.bf16.msra.mxu0 %v5829_v30 }
 0x68a   : > { %4201 = vmatprep.subr.bf16.mxu0 %v6352_v63 }
 0x68c   : > { %3417 = vmatpush2.bf16.msra.mxu1 %v3394_v41  ;;  %v4991_v41 = vld [vmem:[%s8337_s14] ss:$0 sm:$0xff] }
 0x68d   : > { %3418 = vmatprep.subr.bf16.mxu1 %v6352_v63 }
 0x68e   : > { %v6244_v45 = vpop.eup %6243 }
 0x68f   : > { %v3739_v52 = vadd.f32 1.0, %v6244_v45 }
 0x690   : > { %3419 = vmatpush2.bf16.msra.mxu1 %v5805_v43  ;;  %v5048_v43 = vld [vmem:[%s8337_s14 + $0x1] ss:$0 sm:$0xff] }
 0x691   : > { %3420 = vmatprep.subr.bf16.mxu1 %v6352_v63 }
 0x694   : > { %3421 = vmatpush2.bf16.msra.mxu1 %v5806_v25 }
 0x695   : > { %3422 = vmatprep.subr.bf16.mxu1 %v6352_v63 }
 0x698   : > { %3423 = vmatpush2.bf16.msra.mxu1 %v5807_v34  ;;  %v4992_v34 = vld [vmem:[%s8338_s15] ss:$0 sm:$0xff] }
 0x699   : > { %3424 = vmatprep.subr.bf16.mxu1 %v6352_v63 }
 0x69c   : > { %3425 = vmatpush2.bf16.msra.mxu1 %v5808_v11  ;;  %v5049_v11 = vld [vmem:[%s8338_s15 + $0x1] ss:$0 sm:$0xff] }
 0x69d   : > { %3426 = vmatprep.subr.bf16.mxu1 %v6352_v63 }
 0x6a0   : > { %3427 = vmatpush2.bf16.msra.mxu1 %v5809_v20 }
 0x6a1   : > { %5560 = vmatprep.subr.bf16.mxu1 %v6350_v59 }
 0x6a3   : > { %3429 = vmatmul.mubr.bf16.vlgmr.msra.gmra.mxu1 %v3307_v35 }
 0x6a4   : > { %5564 = vmatprep.mubr.msk.bf16.mxu1 %vm6351_vm15, %v6350_v59  ;;  %5561 = vmatpush3.bf16.msra.mxu1 %v5810_v1 }
 0x6a5   : > { %5562 = vmatprep.subr.bf16.mxu1 %v6350_v59 }
 0x6a8   : > { %5563 = vmatpush3.bf16.msra.mxu1 %v5811_v58 }
 0x6a9   : > { %5568 = vmatprep.subr.bf16.mxu1 %v6350_v59 }
 0x72b   : > { %v7916_v2 = vpop.f32.mrf.mxu1 }
 0x72c   : > { %v3249_v25 = vmul.f32 %v4991_v41, %v7916_v2  ;;  %v5105_v2 = vld [vmem:[%s8337_s14 + $0x2] ss:$0 sm:$0xff] }
 0x72d   : > { %v5558_v46 = vpop.f32.mrf.mxu1 }
 0x72e   : > { %v3256_v1 = vadd.f32 %v4992_v34, %v3249_v25 }
 0x72f   : > { %v3240_v23 = vpop.f32.mrf.mxu1 }
 0x731   : > { %v5559_v32 = vpop.f32.mrf.mxu1 }
 0x763   : > { %v3430_v14 = vpop.f32.mrf.mxu1 }
 0x764   : > { %v3442_v57 = vmul.f32 %v5037_v37, %v3430_v14 }
 0x765   : > { %v3432_v54 = vpop.f32.mrf.mxu1 }
 0x766   : > { %v3449_v13 = vadd.f32 %v5038_v22, %v3442_v57  ;;  %v5156_v57 = vld [vmem:[%s8334_s11 + $0x3] ss:$0 sm:$0xff] }
 0x767   : > { %v3433_v49 = vpop.f32.mrf.mxu1  ;;  %v5157_v54 = vld [vmem:[%s8335_s12 + $0x3] ss:$0 sm:$0xff] }
 0x768   : > { %v3459_v44 = vmul.f32 -1.702, %v3449_v13 }
 0x769   : > { %v3434_v42 = vpop.f32.mrf.mxu1 }
 0x76a   : > { %v3460_v8 = vmul.f32 1.442695, %v3459_v44 }
 0x76c   : > { %6245 = vpow2.f32 %v3460_v8 }
 0x779   : > { %v6246_v53 = vpop.eup %6245 }
 0x77a   : > { %v3462_v7 = vadd.f32 1.0, %v6246_v53 }
 0x77c   : > { %6247 = vrcp.f32 %v3462_v7 }
 0x77d   : > { %6249 = vrcp.f32 %v3739_v52 }
 0x789   : > { %v6248_v61 = vpop.eup %6247 }
 0x78a   : > { %v3464_v24 = vmul.f32 %v6248_v61, %v3449_v13  ;;  %v6250_v12 = vpop.eup %6249 }
 0x78b   : > { %v3741_v50 = vmul.f32 %v6250_v12, %v3726_v38  ;;  %v5831_v12 = vld [vmem:[%s8333_s10 + $0x1e0] sm:$0xff]  }
 0x78c   : > { %v3465_v9 = vpack.c.bf16 %v3464_v24, %v3464_v24 }
 0x78d   : > { %v3742_v19 = vpack.c.bf16 %v3741_v50, %v3741_v50  ;;  %v5833_v50 = vld [vmem:[%s8333_s10 + $0x1d0] sm:$0xff]  }
 0x78e   : > { %5565 = vmatmul.mubr.msk.bf16.vlgmr.msra.gmra.mxu1 %vm3199_vm8, %v3465_v9 }
 0x78f   : > { %5569 = vmatpush3.bf16.msra.mxu1 %v5812_v5  ;;  %5572 = vmatprep.mubr.msk.bf16.mxu1 %vm6351_vm15, %v6350_v59  ;;  %v5830_v5 = vld [vmem:[%s8333_s10 + $0x1e8] sm:$0xff]  }
 0x790   : > { %5570 = vmatprep.subr.bf16.mxu1 %v6350_v59 }
 0x793   : > { %5571 = vmatpush3.bf16.msra.mxu1 %v5813_v48  ;;  %v5832_v48 = vld [vmem:[%s8333_s10 + $0x1d8] sm:$0xff]  }
 0x794   : > { %3945 = vmatprep.subr.bf16.mxu1 %v6352_v63 }
 0x796   : > { %5573 = vmatmul.mubr.msk.bf16.vlgmr.msra.gmra.mxu1 %vm3199_vm8, %v3742_v19  ;;  %v5835_v19 = vld [vmem:[%s8333_s10 + $0x1c0] sm:$0xff]  }
 0x797   : > { %3946 = vmatpush1.bf16.msra.mxu1 %v5814_v62  ;;  %5150 = vmatprep.mubr.msk.bf16.mxu1 %vm3113_vm7, %v7946_v6  ;;  %v5834_v62 = vld [vmem:[%s8333_s10 + $0x1c8] sm:$0xff]  }
 0x798   : > { %3947 = vmatprep.subr.bf16.mxu1 %v6352_v63 }
 0x79b   : > { %3948 = vmatpush1.bf16.msra.mxu1 %v5815_v3  ;;  %v5836_v3 = vld [vmem:[%s8333_s10 + $0x1b8] sm:$0xff]  }
 0x79c   : > { %3949 = vmatprep.subr.bf16.mxu1 %v6352_v63 }
 0x79f   : > { %3950 = vmatpush1.bf16.msra.mxu1 %v5816_v15  ;;  %v5837_v15 = vld [vmem:[%s8333_s10 + $0x1b0] sm:$0xff]  }
 0x7a0   : > { %3951 = vmatprep.subr.bf16.mxu1 %v6352_v63 }
 0x7a3   : > { %3952 = vmatpush1.bf16.msra.mxu1 %v5817_v21  ;;  %v5838_v21 = vld [vmem:[%s8333_s10 + $0x218] ss:$0 sps:$4 sm:$0xff]  }
 0x7a4   : > { %3953 = vmatprep.subr.bf16.mxu1 %v6352_v63 }
 0x7a7   : > { %3954 = vmatpush1.bf16.msra.mxu1 %v5818_v16  ;;  %v4199_v16 = vsel %vm1991_vm6, %v5838_v21, 0 }
 0x7a8   : > { %3955 = vmatprep.subr.bf16.mxu1 %v6352_v63 }
 0x7ab   : > { %3956 = vmatpush1.bf16.msra.mxu1 %v5819_v47  ;;  %v5839_v47 = vld [vmem:[%s8333_s10 + $0x210] sm:$0xff]  }
 0x7ac   : > { %3957 = vmatprep.subr.bf16.mxu1 %v6352_v63 }
 0x7af   : > { %3958 = vmatpush1.bf16.msra.mxu1 %v5820_v51  ;;  %v5840_v51 = vld [vmem:[%s8333_s10 + $0x208] sm:$0xff]  }
 0x7b0   : > { %3959 = vmatprep.subr.bf16.mxu1 %v6352_v63 }
 0x7b3   : > { %3960 = vmatpush1.bf16.msra.mxu1 %v5821_v60  ;;  %v5841_v60 = vld [vmem:[%s8333_s10 + $0x200] sm:$0xff]  }
 0x7b4   : > { %3965 = vmatprep.subr.bf16.mxu1 %v6352_v63 }
 0x7b7   : > { %3966 = vmatpush2.bf16.msra.mxu1 %v3943_v39  ;;  %v5843_v39 = vld [vmem:[%s8333_s10 + $0x1f0] sm:$0xff]  }
 0x7b8   : > { %3967 = vmatprep.subr.bf16.mxu1 %v6352_v63 }
 0x7bb   : > { %3968 = vmatpush2.bf16.msra.mxu1 %v5823_v40  ;;  %v5844_v40 = vld [vmem:[%s8336_s13 + $0x48] sm:$0xff]  }
 0x7bc   : > { %3969 = vmatprep.subr.bf16.mxu1 %v6352_v63 }
 0x7bf   : > { %3970 = vmatpush2.bf16.msra.mxu1 %v5824_v27  ;;  %v5845_v27 = vld [vmem:[%s8336_s13 + $0x40] sm:$0xff]  }
 0x7c0   : > { %3971 = vmatprep.subr.bf16.mxu1 %v6352_v63 }
 0x7c3   : > { %3972 = vmatpush2.bf16.msra.mxu1 %v5825_v55  ;;  %v5167_v55 = vld [vmem:[%s8337_s14 + $0x3] ss:$0 sm:$0xff] }
 0x7c4   : > { %3973 = vmatprep.subr.bf16.mxu1 %v6352_v63 }
 0x7c7   : > { %3974 = vmatpush2.bf16.msra.mxu1 %v5826_v33  ;;  %v5168_v33 = vld [vmem:[%s8338_s15 + $0x3] ss:$0 sm:$0xff] }
 0x7c8   : > { %3975 = vmatprep.subr.bf16.mxu1 %v6352_v63 }
 0x7cb   : > { %3976 = vmatpush2.bf16.msra.mxu1 %v5827_v36 }
 0x7cc   : > { %5584 = vmatprep.subr.bf16.mxu1 %v6350_v59 }
 0x7ce   : > { %5155 = vmatmul.mubr.msk.bf16.vlgmr.msra.gmra.mxu1 %vm8005_vm10, %v8011_v0 }
 0x7cf   : > { %5588 = vmatprep.mubr.msk.bf16.mxu1 %vm6351_vm15, %v6350_v59  ;;  %5585 = vmatpush3.bf16.msra.mxu1 %v5844_v40 }
 0x7d0   : > { %5586 = vmatprep.subr.bf16.mxu1 %v6350_v59 }
 0x7d3   : > { %5587 = vmatpush3.bf16.msra.mxu1 %v5845_v27 }
 0x7d4   : > { %4457 = vmatprep.subr.bf16.mxu1 %v6352_v63 }
 0x84e   : > { %v3515_v20 = vpop.f32.mrf.mxu1 }
 0x84f   : > { %v3527_v31 = vmul.f32 %v5048_v43, %v3515_v20  ;;  %v5219_v20 = vld [vmem:[%s8335_s12 + $0x4] ss:$0 sm:$0xff] }
 0x850   : > { %v5566_v35 = vpop.f32.mrf.mxu1 }
 0x851   : > { %v3534_v58 = vadd.f32 %v5049_v11, %v3527_v31  ;;  %v5218_v11 = vld [vmem:[%s8334_s11 + $0x4] ss:$0 sm:$0xff] }
 0x852   : > { %v3518_v46 = vpop.f32.mrf.mxu1 }
 0x853   : > { %v3535_v23 = vadd.f32 %v3534_v58, %v3256_v1 }
 0x854   : > { %v5567_v32 = vpop.f32.mrf.mxu1 }
 0x856   : > { %v3792_v29 = vpop.f32.mrf.mxu1 }
 0x857   : > { %v3804_v10 = vmul.f32 %v5105_v2, %v3792_v29 }
 0x858   : > { %v5574_v38 = vpop.f32.mrf.mxu1 }
 0x859   : > { %v3811_v37 = vadd.f32 %v5106_v26, %v3804_v10 }
 0x85a   : > { %v3795_v56 = vpop.f32.mrf.mxu1 }
 0x85b   : > { %v8046_v22 = vadd.f32 %v3811_v37, %v3535_v23  ;;  %v5846_v37 = vld [vmem:[%s8333_s10 + $0x254] sm:$0xff]  }
 0x85c   : > { %v5575_v14 = vpop.f32.mrf.mxu1 }
 0x85d   : > { %v5848_v14 = vld [vmem:[%s8333_s10 + $0x244] sm:$0xff]  }
 0x88e   : > { %v3979_v13 = vpop.f32.mrf.mxu1 }
 0x88f   : > { %v3991_v17 = vmul.f32 %v5156_v57, %v3979_v13  ;;  %v5849_v57 = vld [vmem:[%s8333_s10 + $0x23c] sm:$0xff]   ;;  %v5852_v13 = vld [vmem:[%s8333_s10 + $0x224] sm:$0xff]  }
 0x890   : > { %v3981_v49 = vpop.f32.mrf.mxu1 }
 0x891   : > { %v3998_v44 = vadd.f32 %v5157_v54, %v3991_v17  ;;  %v5851_v54 = vld [vmem:[%s8333_s10 + $0x22c] sm:$0xff]   ;;  %v5853_v17 = vld [vmem:[%s8333_s10 + $0x21c] sm:$0xff]   ;;  %v5854_v49 = vld [vmem:[%s8333_s10 + $0x284] ss:$0 sps:$4 sm:$0xff]  }
 0x892   : > { %v3982_v42 = vpop.f32.mrf.mxu1 }
 0x893   : > { %v4008_v8 = vmul.f32 -1.702, %v3998_v44  ;;  %v5855_v42 = vld [vmem:[%s8333_s10 + $0x27c] sm:$0xff]  }
 0x894   : > { %v3983_v45 = vpop.f32.mrf.mxu1 }
 0x895   : > { %v4009_v53 = vmul.f32 1.442695, %v4008_v8  ;;  %v5856_v8 = vld [vmem:[%s8333_s10 + $0x274] sm:$0xff]   ;;  %v5857_v45 = vld [vmem:[%s8333_s10 + $0x26c] sm:$0xff]  }
 0x897   : > { %6251 = vpow2.f32 %v4009_v53  ;;  %v5858_v53 = vld [vmem:[%s8333_s10 + $0x264] sm:$0xff]  }
 0x8a4   : > { %v6252_v7 = vpop.eup %6251 }
 0x8a5   : > { %v4011_v52 = vadd.f32 1.0, %v6252_v7  ;;  %v5859_v7 = vld [vmem:[%s8333_s10 + $0x25c] sm:$0xff]  }
 0x8a7   : > { %6253 = vrcp.f32 %v4011_v52  ;;  %v5860_v52 = vld [vmem:[%s8336_s13 + $0x58] sm:$0xff]  }
 0x8b4   : > { %v6254_v61 = vpop.eup %6253 }
 0x8b5   : > { %v4013_v24 = vmul.f32 %v6254_v61, %v3998_v44  ;;  %v4455_v44 = vsel %vm1991_vm6, %v5854_v49, 0  ;;  %v5861_v61 = vld [vmem:[%s8336_s13 + $0x50] sm:$0xff]  }
 0x8b7   : > { %v4014_v9 = vpack.c.bf16 %v4013_v24, %v4013_v24 }
 0x8b9   : > { %5581 = vmatmul.mubr.msk.bf16.vlgmr.msra.gmra.mxu0 %vm3199_vm8, %v4014_v9 }
 0x8ba   : > { %4202 = vmatpush1.bf16.msra.mxu0 %v5830_v5  ;;  %5212 = vmatprep.mubr.msk.bf16.mxu0 %vm3113_vm7, %v7946_v6 }
 0x8bb   : > { %4203 = vmatprep.subr.bf16.mxu0 %v6352_v63 }
 0x8be   : > { %4204 = vmatpush1.bf16.msra.mxu0 %v5831_v12 }
 0x8bf   : > { %4205 = vmatprep.subr.bf16.mxu0 %v6352_v63 }
 0x8c2   : > { %4206 = vmatpush1.bf16.msra.mxu0 %v5832_v48 }
 0x8c3   : > { %4207 = vmatprep.subr.bf16.mxu0 %v6352_v63 }
 0x8c6   : > { %4208 = vmatpush1.bf16.msra.mxu0 %v5833_v50 }
 0x8c7   : > { %4209 = vmatprep.subr.bf16.mxu0 %v6352_v63 }
 0x8ca   : > { %4210 = vmatpush1.bf16.msra.mxu0 %v5834_v62  ;;  %v5280_v62 = vld [vmem:[%s8334_s11 + $0x5] ss:$0 sm:$0xff] }
 0x8cb   : > { %4211 = vmatprep.subr.bf16.mxu0 %v6352_v63 }
 0x8ce   : > { %4212 = vmatpush1.bf16.msra.mxu0 %v5835_v19  ;;  %v5281_v19 = vld [vmem:[%s8335_s12 + $0x5] ss:$0 sm:$0xff] }
 0x8cf   : > { %4213 = vmatprep.subr.bf16.mxu0 %v6352_v63 }
 0x8d2   : > { %4214 = vmatpush1.bf16.msra.mxu0 %v5836_v3 }
 0x8d3   : > { %4215 = vmatprep.subr.bf16.mxu0 %v6352_v63 }
 0x8d6   : > { %4216 = vmatpush1.bf16.msra.mxu0 %v5837_v15 }
 0x8d7   : > { %4221 = vmatprep.subr.bf16.mxu0 %v6352_v63 }
 0x8da   : > { %4222 = vmatpush2.bf16.msra.mxu0 %v4199_v16 }
 0x8db   : > { %4223 = vmatprep.subr.bf16.mxu0 %v6352_v63 }
 0x8de   : > { %4224 = vmatpush2.bf16.msra.mxu0 %v5839_v47 }
 0x8df   : > { %4225 = vmatprep.subr.bf16.mxu0 %v6352_v63 }
 0x8e2   : > { %4226 = vmatpush2.bf16.msra.mxu0 %v5840_v51 }
 0x8e3   : > { %4227 = vmatprep.subr.bf16.mxu0 %v6352_v63 }
 0x8e6   : > { %4228 = vmatpush2.bf16.msra.mxu0 %v5841_v60 }
 0x8e7   : > { %4229 = vmatprep.subr.bf16.mxu0 %v6352_v63 }
 0x8ea   : > { %4230 = vmatpush2.bf16.msra.mxu0 %v5842_v28 }
 0x8eb   : > { %4231 = vmatprep.subr.bf16.mxu0 %v6352_v63 }
 0x8ee   : > { %4232 = vmatpush2.bf16.msra.mxu0 %v5843_v39 }
 0x8ef   : > { %5592 = vmatprep.subr.bf16.mxu0 %v6350_v59 }
 0x8f1   : > { %5217 = vmatmul.mubr.msk.bf16.vlgmr.msra.gmra.mxu0 %vm8005_vm10, %v8011_v0 }
 0x8f2   : > { %5596 = vmatprep.mubr.msk.bf16.mxu0 %vm6351_vm15, %v6350_v59  ;;  %5593 = vmatpush3.bf16.msra.mxu0 %v5860_v52 }
 0x8f3   : > { %5594 = vmatprep.subr.bf16.mxu0 %v6350_v59 }
 0x8f6   : > { %5595 = vmatpush3.bf16.msra.mxu0 %v5861_v61 }
 0x8f7   : > { %5600 = vmatprep.subr.bf16.mxu0 %v6350_v59 }
 0x979   : > { %v4064_v36 = vpop.f32.mrf.mxu0 }
 0x97a   : > { %v4076_v4 = vmul.f32 %v5167_v55, %v4064_v36  ;;  %v5862_v36 = vld [vmem:[%s8339_s16 + $0x20] ss:$0 sps:$4 sm:$0xff]  }
 0x97b   : > { %v5582_v30 = vpop.f32.mrf.mxu0 }
 0x97c   : > { %v4083_v41 = vadd.f32 %v5168_v33, %v4076_v4  ;;  %v4644_v4 = vsel %vm1991_vm6, %v5862_v36, 0  ;;  %v5863_v30 = vld [vmem:[%s8339_s16 + $0x18] sm:$0xff]  }
 0x97d   : > { %v4067_v43 = vpop.f32.mrf.mxu0 }
 0x97e   : > { %v8134_v25 = vadd.f32 %v4083_v41, %v8046_v22  ;;  %v5847_v22 = vld [vmem:[%s8333_s10 + $0x24c] sm:$0xff]  }
 0x97f   : > { %v5583_v34 = vpop.f32.mrf.mxu0  ;;  %v5864_v41 = vld [vmem:[%s8339_s16 + $0x10] sm:$0xff]   ;;  %v5865_v43 = vld [vmem:[%s8339_s16 + $0x8] sm:$0xff]  }
 0x980   : > { %v5291_v34 = vld [vmem:[%s8337_s14 + $0x5] ss:$0 sm:$0xff] }
 0x9b1   : > { %v4235_v31 = vpop.f32.mrf.mxu0 }
 0x9b2   : > { %v4247_v35 = vmul.f32 %v5218_v11, %v4235_v31  ;;  %v5292_v11 = vld [vmem:[%s8338_s15 + $0x5] ss:$0 sm:$0xff] }
 0x9b3   : > { %v4237_v1 = vpop.f32.mrf.mxu0 }
 0x9b4   : > { %v4254_v58 = vadd.f32 %v5219_v20, %v4247_v35 }
 0x9b5   : > { %v4238_v46 = vpop.f32.mrf.mxu0 }
 0x9b6   : > { %v4264_v23 = vmul.f32 -1.702, %v4254_v58 }
 0x9b7   : > { %v4239_v32 = vpop.f32.mrf.mxu0 }
 0x9b8   : > { %v4265_v2 = vmul.f32 1.442695, %v4264_v23 }
 0x9ba   : > { %6255 = vpow2.f32 %v4265_v2 }
 0x9c7   : > { %v6256_v26 = vpop.eup %6255 }
 0x9c8   : > { %v4267_v29 = vadd.f32 1.0, %v6256_v26 }
 0x9ca   : > { %6257 = vrcp.f32 %v4267_v29 }
 0x9d7   : > { %v6258_v10 = vpop.eup %6257 }
 0x9d8   : > { %v4269_v38 = vmul.f32 %v6258_v10, %v4254_v58 }
 0x9da   : > { %v4270_v56 = vpack.c.bf16 %v4269_v38, %v4269_v38 }
 0x9dc   : > { %5589 = vmatmul.mubr.msk.bf16.vlgmr.msra.gmra.mxu1 %vm3199_vm8, %v4270_v56  ;;  %v5867_v56 = vld [vmem:[%s8342_s19 + $0x18] sm:$0xff]  }
 0x9dd   : > { %4458 = vmatpush1.bf16.msra.mxu1 %v5846_v37  ;;  %5274 = vmatprep.mubr.msk.bf16.mxu1 %vm3113_vm7, %v7946_v6  ;;  %v5850_v6 = vld [vmem:[%s8333_s10 + $0x234] sm:$0xff]  }
 0x9de   : > { %4459 = vmatprep.subr.bf16.mxu1 %v6352_v63 }
 0x9e1   : > { %4460 = vmatpush1.bf16.msra.mxu1 %v5847_v22  ;;  %v5868_v22 = vld [vmem:[%s8342_s19 + $0x10] sm:$0xff]  }
 0x9e2   : > { %4461 = vmatprep.subr.bf16.mxu1 %v6352_v63 }
 0x9e5   : > { %4462 = vmatpush1.bf16.msra.mxu1 %v5848_v14  ;;  %v5869_v14 = vld [vmem:[%s8342_s19 + $0x8] sm:$0xff]  }
 0x9e6   : > { %4463 = vmatprep.subr.bf16.mxu1 %v6352_v63 }
 0x9e9   : > { %4464 = vmatpush1.bf16.msra.mxu1 %v5849_v57  ;;  %v5870_v57 = vld [vmem:[%s8342_s19] sm:$0xff]  }
 0x9ea   : > { %4465 = vmatprep.subr.bf16.mxu1 %v6352_v63 }
 0x9ed   : > { %4466 = vmatpush1.bf16.msra.mxu1 %v5850_v6  ;;  %v5299_v6 = vld [vmem:[%s8340_s17] ss:$0 sm:$0xff] }
 0x9ee   : > { %4467 = vmatprep.subr.bf16.mxu1 %v6352_v63 }
 0x9f1   : > { %4468 = vmatpush1.bf16.msra.mxu1 %v5851_v54 }
 0x9f2   : > { %4469 = vmatprep.subr.bf16.mxu1 %v6352_v63 }
 0x9f5   : > { %4470 = vmatpush1.bf16.msra.mxu1 %v5852_v13  ;;  %v5300_v13 = vld [vmem:[%s8341_s18] ss:$0 sm:$0xff] }
 0x9f6   : > { %4471 = vmatprep.subr.bf16.mxu1 %v6352_v63 }
 0x9f9   : > { %4472 = vmatpush1.bf16.msra.mxu1 %v5853_v17 }
 0x9fa   : > { %4477 = vmatprep.subr.bf16.mxu1 %v6352_v63 }
 0x9fd   : > { %4478 = vmatpush2.bf16.msra.mxu1 %v4455_v44 }
 0x9fe   : > { %4479 = vmatprep.subr.bf16.mxu1 %v6352_v63 }
 0xa01   : > { %4480 = vmatpush2.bf16.msra.mxu1 %v5855_v42 }
 0xa02   : > { %4481 = vmatprep.subr.bf16.mxu1 %v6352_v63 }
 0xa05   : > { %4482 = vmatpush2.bf16.msra.mxu1 %v5856_v8 }
 0xa06   : > { %4483 = vmatprep.subr.bf16.mxu1 %v6352_v63 }
 0xa09   : > { %4484 = vmatpush2.bf16.msra.mxu1 %v5857_v45 }
 0xa0a   : > { %4485 = vmatprep.subr.bf16.mxu1 %v6352_v63 }
 0xa0d   : > { %4486 = vmatpush2.bf16.msra.mxu1 %v5858_v53 }
 0xa0e   : > { %4487 = vmatprep.subr.bf16.mxu1 %v6352_v63  ;;  %v5229_v63 = vld [vmem:[%s8337_s14 + $0x4] ss:$0 sm:$0xff] }
 0xa11   : > { %4488 = vmatpush2.bf16.msra.mxu1 %v5859_v7 }
 0xa14   : > { %5279 = vmatmul.mubr.msk.bf16.vlgmr.msra.gmra.mxu1 %vm8005_vm10, %v8011_v0 }
 0xa9c   : > { %v4320_v0 = vpop.f32.mrf.mxu1 }
 0xa9d   : > { %v4332_v24 = vmul.f32 %v5229_v63, %v4320_v0 }
 0xa9e   : > { %v5590_v5 = vpop.f32.mrf.mxu1 }
 0xa9f   : > { %v4339_v9 = vadd.f32 %v5230_v18, %v4332_v24  ;;  %v5301_v18 = vld [vmem:[%s8343_s20] ss:$0 sm:$0xff] }
 0xaa0   : > { %v4323_v12 = vpop.f32.mrf.mxu1 }
 0xaa1   : > { %v4340_v48 = vadd.f32 %v4339_v9, %v8134_v25  ;;  %v5866_v25 = vld [vmem:[%s8339_s16] sm:$0xff]  }
 0xaa2   : > { %v5591_v50 = vpop.f32.mrf.mxu1 }
 0xad4   : > { %v4491_v3 = vpop.f32.mrf.mxu1 }
 0xad5   : > { %v4503_v15 = vmul.f32 %v5280_v62, %v4491_v3 }
 0xad6   : > { %v4493_v21 = vpop.f32.mrf.mxu1 }
 0xad7   : > { %v4510_v16 = vadd.f32 %v5281_v19, %v4503_v15 }
 0xad8   : > { %v4494_v47 = vpop.f32.mrf.mxu1 }
 0xad9   : > { %v4520_v51 = vmul.f32 -1.702, %v4510_v16 }
 0xada   : > { %v4495_v60 = vpop.f32.mrf.mxu1 }
 0xadb   : > { %v4521_v28 = vmul.f32 1.442695, %v4520_v51 }
 0xadd   : > { %6259 = vpow2.f32 %v4521_v28 }
 0xaea   : > { %v6260_v39 = vpop.eup %6259 }
 0xaeb   : > { %v4523_v40 = vadd.f32 1.0, %v6260_v39 }
 0xaed   : > { %6261 = vrcp.f32 %v4523_v40 }
 0xafa   : > { %v6262_v27 = vpop.eup %6261 }
 0xafb   : > { %v4525_v55 = vmul.f32 %v6262_v27, %v4510_v16 }
 0xafd   : > { %v4526_v33 = vpack.c.bf16 %v4525_v55, %v4525_v55 }
 0xaff   : > { %5597 = vmatmul.mubr.msk.bf16.vlgmr.msra.gmra.mxu0 %vm3199_vm8, %v4526_v33 }
 0xb00   : > { %5610 = vmatprep.mubr.msk.bf16.mxu0 %vm6351_vm15, %v6350_v59  ;;  %5601 = vmatpush3.bf16.msra.mxu0 %v4644_v4 }
 0xb01   : > { %5602 = vmatprep.subr.bf16.mxu0 %v6350_v59 }
 0xb04   : > { %5603 = vmatpush3.bf16.msra.mxu0 %v5863_v30 }
 0xb05   : > { %5604 = vmatprep.subr.bf16.mxu0 %v6350_v59 }
 0xb08   : > { %5605 = vmatpush3.bf16.msra.mxu0 %v5864_v41 }
 0xb09   : > { %5606 = vmatprep.subr.bf16.mxu0 %v6350_v59 }
 0xb0c   : > { %5607 = vmatpush3.bf16.msra.mxu0 %v5865_v43 }
 0xb0d   : > { %5608 = vmatprep.subr.bf16.mxu0 %v6350_v59 }
 0xb10   : > { %5609 = vmatpush3.bf16.msra.mxu0 %v5866_v25 }
 0xb11   : > { %5614 = vmatprep.subr.bf16.mxu0 %v6350_v59 }
 0xbbf   : > { %v4576_v20 = vpop.f32.mrf.mxu0 }
 0xbc0   : > { %v4588_v31 = vmul.f32 %v5291_v34, %v4576_v20 }
 0xbc1   : > { %v5598_v35 = vpop.f32.mrf.mxu0 }
 0xbc2   : > { %v4595_v1 = vadd.f32 %v5292_v11, %v4588_v31 }
 0xbc3   : > { %v4579_v58 = vpop.f32.mrf.mxu0 }
 0xbc4   : > { %v4596_v46 = vadd.f32 %v4595_v1, %v4340_v48 }
 0xbc5   : > { %v5599_v23 = vpop.f32.mrf.mxu0 }
 0xbc6   : > { %v4597_v32 = vmul.f32 -1.702, %v4596_v46 }
 0xbc8   : > { %v4598_v2 = vmul.f32 1.442695, %v4597_v32 }
 0xbca   : > { %6263 = vpow2.f32 %v4598_v2 }
 0xbd7   : > { %v6264_v26 = vpop.eup %6263 }
 0xbd8   : > { %v4600_v29 = vadd.f32 1.0, %v6264_v26 }
 0xbda   : > { %6265 = vrcp.f32 %v4600_v29 }
 0xbe7   : > { %v6266_v10 = vpop.eup %6265 }
 0xbe8   : > { %v4602_v38 = vmul.f32 %v6266_v10, %v4596_v46 }
 0xbea   : > { %v4612_v37 = vpack.c.bf16 %v4602_v38, %v4602_v38 }
 0xbec   : > { %5611 = vmatmul.mubr.msk.bf16.vlgmr.msra.gmra.mxu0 %vm3026_vm0, %v4612_v37 }
 0xbed   : > { %5622 = vmatprep.mubr.msk.bf16.mxu0 %vm6351_vm15, %v6350_v59  ;;  %5615 = vmatpush3.bf16.msra.mxu0 %v5867_v56 }
 0xbee   : > { %5616 = vmatprep.subr.bf16.mxu0 %v6350_v59 }
 0xbf1   : > { %5617 = vmatpush3.bf16.msra.mxu0 %v5868_v22 }
 0xbf2   : > { %5618 = vmatprep.subr.bf16.mxu0 %v6350_v59 }
 0xbf5   : > { %5619 = vmatpush3.bf16.msra.mxu0 %v5869_v14 }
 0xbf6   : > { %5620 = vmatprep.subr.bf16.mxu0 %v6350_v59 }
 0xbf9   : > { %5621 = vmatpush3.bf16.msra.mxu0 %v5870_v57 }
 0xcac   : > { %v4680_v54 = vpop.f32.mrf.mxu0 }
 0xcad   : > { %v4693_v17 = vmul.f32 %v5299_v6, %v4680_v54 }
 0xcae   : > { %v5612_v49 = vpop.f32.mrf.mxu0 }
 0xcaf   : > { %v4701_v44 = vadd.f32 %v5300_v13, %v4693_v17 }
 0xcb0   : > { %v4683_v42 = vpop.f32.mrf.mxu0 }
 0xcb1   : > { %v4702_v8 = vmul.f32 -1.702, %v4701_v44 }
 0xcb2   : > { %v5613_v59 = vpop.f32.mrf.mxu0 }
 0xcb3   : > { %v4703_v45 = vmul.f32 1.442695, %v4702_v8 }
 0xcb5   : > { %6267 = vpow2.f32 %v4703_v45 }
 0xcc2   : > { %v6268_v53 = vpop.eup %6267 }
 0xcc3   : > { %v4705_v7 = vadd.f32 1.0, %v6268_v53 }
 0xcc5   : > { %6269 = vrcp.f32 %v4705_v7 }
 0xcd2   : > { %v6270_v52 = vpop.eup %6269 }
 0xcd3   : > { %v4707_v61 = vmul.f32 %v6270_v52, %v4701_v44 }
 0xcd5   : > { %v4716_v63 = vpack.c.bf16 %v4707_v61, %v4707_v61 }
 0xcd7   : > { %5623 = vmatmul.mubr.msk.bf16.vlgmr.msra.gmra.mxu0 %vm2017_vm5, %v4716_v63  ;;  %vm4802_vm5 = vcmask 60416  }
 0xd97   : > { %v4785_v0 = vpop.f32.mrf.mxu0 }
 0xd98   : > { %v4786_v24 = vadd.f32 %v5301_v18, %v4785_v0 }
 0xd99   : > { %v5624_v5 = vpop.f32.mrf.mxu0 }
 0xd9a   : > { %v4791_v9 = vand.u32 2147483647, %v4786_v24  ;;  %v4798_v21 = vmax.f32 %v4786_v24, 0.0  ;;  %vm4800_vm6 = vcmp.gt.f32.partialorder %v4786_v24, 1000.0 }
 0xd9b   : > { %v4788_v12 = vpop.f32.mrf.mxu0 }
 0xd9c   : > { %v4792_v48 = vsub.f32 0.0, %v4791_v9 }
 0xd9d   : > { %v5625_v50 = vpop.f32.mrf.mxu0 }
 0xd9e   : > { %v4793_v62 = vmul.f32 1.442695, %v4792_v48 }
 0xda0   : > { %6271 = vpow2.f32 %v4793_v62 }
 0xdad   : > { %v6272_v19 = vpop.eup %6271 }
 0xdae   : > { %v4795_v3 = vadd.f32 1.0, %v6272_v19 }
 0xdb0   : > { %6273 = vlog2.f32 %v4795_v3 }
 0xdbd   : > { %v6274_v15 = vpop.eup %6273 }
 0xdbe   : > { %v4797_v16 = vmul.f32 0.6931472, %v6274_v15 }
 0xdc0   : > { %v4799_v47 = vadd.f32 %v4798_v21, %v4797_v16 }
 0xdc2   : > { %v4801_v51 = vsel %vm4800_vm6, %v4786_v24, %v4799_v47 }
 0xdc3   : > { %4803 = vst.msk [vmem:[%s649_s1] sm:$0xf] %vm4802_vm5, %v4801_v51 }
 0xdc4   : > { %6300 = shalt.err (!%p6297_p3)
}
 0xdc5   : > { %s6301_s23 = scalar_lea.hbm %s8288_s29, 64  ;;  %s6305_s22 = scalar_lea.hbm %s8344_s21, 128 }
 0xdc6   : > { %p6302_p4 = scmp.ne.s32.totalorder %s8288_s29, %s6301_s23  ;;  %p6306_p9 = scmp.lt.s32.totalorder %s8288_s29, %s8344_s21 }
 0xdc7   : > { %p6307_p10 = scmp.lt.s32.totalorder %s6305_s22, %s6301_s23 }
 0xdc8   : > { %p6303_p7 = pnand %p6302_p4, %p6504_p5 }
 0xdc9   : > { %p6308_p11 = por %p6307_p10, %p6306_p9 }
 0xdca   : > { %p6304_p8 = pneg %p6303_p7 }
 0xdcc   : > { %p6309_p12 = pnand %p6308_p11, %p6304_p8 }
 0xdce   : > { %6312 = shalt.err (!%p6309_p12)
}
 0xdcf   : > { %5627 = dma.vmem_to_hbm [thread:$0]  (%p6504_p5), %s4819_s0, 64, %s8288_s29, %s4805_s30  }
 0xdd0 PF: > { %s8447_s6 = sld [smem:[#allocation5_spill]]  ;;  %p5633_p13 = scmp.ge.s32.totalorder %s6347_s27, 2 }
 0xdd2   : > { %p5630_p0 = pnand %p5633_p13, %p6508_p6 }
 0xdd4   : > { %p5631_p1 = pneg %p5630_p0 }
 0xdd6   : > { %s4830_s4 = sand.u32 1, %s8447_s6  }
 0xdd7   : > { %s4831_s2 = scalar_lea.sflag [#allocation3], %s4830_s4 }
 0xdd8   : > { %6330 = dma.done.wait (%p5631_p1), %s4831_s2, 64  }
 0xdd9   : > { %6332 = vsyncadd (%p5631_p1), %s4831_s2, 4294967232  ;;  %s8449_s27 = sld [smem:[#allocation7_spill]]  ;;  %s8452_s2 = smov %s6339_s25 }
 0xdda   : > { %s8450_s23 = sld [smem:[#allocation6_spill]] }
 0xddb   : > { %s8451_s26 = sld [smem:[#allocation8_spill]] }
 0xddf   : > { %p31_p2 = scmp.ge.s32.totalorder %s8449_s27, 4  }
 0xde0   : > { %s8453_s25 = smov %s8450_s23 }
 0xde1   :  { %33 = sbr.rel (!%p31_p2) target bundleno = 12 (0xc), region = 169 }
 0xde6   :  { %4836 = vsyncpa [#allocation3], 1 }
 0xde7   :  { %4838 = vsyncpa [#allocation3 + $0x1], 1 }

</bundles_post_ra>
